<compile_context>
chip_gen: v5e
topology: v5e:2x2
jax: 0.10.0
libtpu: 0.0.40
codegen_flags: <defaults>
</compile_context>

<pallas_src>
import functools

import jax
import jax.numpy as jnp
from jax.experimental import pallas as pl
from jax.experimental.pallas import tpu as pltpu

N_LAYERS = 4          # FNO default n_layers
LIFT_CH = 16          # lifting MLP hidden width (kept small for the demo)
PROJ_CH = 16          # projection MLP hidden width
N_MODES = (32, 32)    # module default; clipped to the spatial resolution below
LN_EPS = 1e-5         # torch.nn.LayerNorm default

# VMEM sizing: budget streamed blocks against ~24 MiB so they fit v7x's 64 MiB
# physical VMEM with headroom; the explicit scoped limit also lifts v5e's
# 16 MiB default so the larger blocks are actually usable there.
TILE_BUDGET = 24 * 1024 * 1024
VMEM_LIMIT = 32 * 1024 * 1024


# ----------------------------------------------------------------------------
# Tiling helpers
# ----------------------------------------------------------------------------
def _divisors(n):
    ds = set()
    i = 1
    while i * i <= n:
        if n % i == 0:
            ds.add(i)
            ds.add(n // i)
        i += 1
    return ds


def _pick_tile(n, cap, align=128):
    """Largest block <= cap dividing n exactly (prefer multiples of `align`).

    Never silently exceeds `cap` (fix for the old fallback that could blow the
    VMEM limit on awkward sizes)."""
    if n <= cap:
        return n
    ds = sorted((d for d in _divisors(n) if d <= cap), reverse=True)
    for d in ds:
        if d % align == 0:
            return d
    if ds:
        return ds[0]
    raise ValueError(
        f"no tile <= {cap} divides {n}; pad the array in the wrapper")


def _dense_2d(n):
    """Factor n into (rows, cols): cols a multiple of 128, rows >= 8 if possible."""
    divs = [c for c in range(128, n + 1, 128) if n % c == 0]
    if not divs:
        raise ValueError(
            f"flattened size {n} has no multiple-of-128 divisor; pad spatial dims")
    good = [c for c in divs if n // c >= 8]
    cols = max(good) if good else min(divs)
    return n // cols, cols


def _lift_lane_cap(cin):
    # double-buffered x (bf16) + out (f32) per lane, plus the [LIFT_CH, TN] f32
    # intermediate (and its gelu copy) that lives in VMEM once.
    per_lane = 2 * (2 * cin + 4) + 8 * LIFT_CH
    return max(128, min(65536, (TILE_BUDGET // per_lane) // 128 * 128))


def _proj_row_cap(cols):
    # double-buffered f32 in + out rows.
    per_row = 2 * 2 * 4 * cols
    return max(8, (TILE_BUDGET // per_row) // 8 * 8)


def _norm_lat_cap(bsz, d):
    # x + gamma resident (f32) plus double-buffered bf16 W column blocks.
    resident = (bsz + 1) * d * 4
    avail = max(TILE_BUDGET - resident, 4 * d * 128)
    return max(128, (avail // (4 * d)) // 128 * 128)


# ----------------------------------------------------------------------------
# FNO lifting: ChannelMLP(seq_len -> LIFT_CH -> 1), fused in one kernel.
# Layout: channels on sublanes, spatial (B*X*Y) on lanes -> lane-dense I/O.
# ----------------------------------------------------------------------------
def _lift_kernel(x_ref, w1_ref, b1_ref, w2_ref, b2_ref, o_ref):
    """o[0,:] = sum_c w2[c] * gelu(W1 @ x + b1)[c,:] + b2 ;  x: [Cin, TN] bf16."""
    h = jnp.dot(w1_ref[...], x_ref[...], preferred_element_type=jnp.float32)
    h = jax.nn.gelu(h + b1_ref[...], approximate=True)
    # cout == 1: VPU multiply + cross-sublane (XLU) reduce instead of pushing a
    # 1-row LHS through the MXU.
    o_ref[...] = jnp.sum(w2_ref[...] * h, axis=0, keepdims=True) + b2_ref[...]


def lift_mlp(x_cf, w1, b1, w2col, b2):
    """x_cf: [Cin, N] (N = B*X*Y on lanes) -> [1, N] float32."""
    cin, n = x_cf.shape
    tn = _pick_tile(n, cap=_lift_lane_cap(cin))
    grid = (n // tn,)
    return pl.pallas_call(
        _lift_kernel,
        out_shape=jax.ShapeDtypeStruct((1, n), jnp.float32),
        grid=grid,
        in_specs=[
            pl.BlockSpec((cin, tn), lambda i: (0, i)),
            pl.BlockSpec((LIFT_CH, cin), lambda i: (0, 0)),
            pl.BlockSpec((LIFT_CH, 1), lambda i: (0, 0)),
            pl.BlockSpec((LIFT_CH, 1), lambda i: (0, 0)),
            pl.BlockSpec((1, 1), lambda i: (0, 0)),
        ],
        out_specs=pl.BlockSpec((1, tn), lambda i: (0, i)),
        compiler_params=pltpu.CompilerParams(
            dimension_semantics=("parallel",),
            vmem_limit_bytes=VMEM_LIMIT),
    )(x_cf.astype(jnp.bfloat16), w1.astype(jnp.bfloat16), b1, w2col, b2)


# ----------------------------------------------------------------------------
# FNO projection: ChannelMLP(1 -> PROJ_CH -> 1) with hidden_channels == 1 is a
# purely pointwise scalar map, so it runs on a dense [rows, cols] layout with
# the 16 channel weights in SMEM (all VPU/EUP work, no MXU, no [1, N] slab).
# ----------------------------------------------------------------------------
def _proj_kernel(h_ref, w1_ref, b1_ref, w2_ref, b2_ref, o_ref, *, n_ch):
    h = h_ref[...]                                   # [TR, C] f32
    acc = jnp.zeros_like(h) + b2_ref[0]
    for c in range(n_ch):                            # unrolled, 16 iters
        t = h * w1_ref[c] + b1_ref[c]
        acc = acc + w2_ref[c] * jax.nn.gelu(t, approximate=True)
    o_ref[...] = acc


def proj_mlp(h2d, w1, b1, w2, b2):
    """h2d: [rows, cols] (rows*cols = B*X*Y) -> [rows, cols] float32."""
    rows, cols = h2d.shape
    tr = _pick_tile(rows, cap=_proj_row_cap(cols), align=8)
    grid = (rows // tr,)
    kern = functools.partial(_proj_kernel, n_ch=w1.shape[0])
    smem = pl.BlockSpec(memory_space=pltpu.MemorySpace.SMEM)
    return pl.pallas_call(
        kern,
        out_shape=jax.ShapeDtypeStruct((rows, cols), jnp.float32),
        grid=grid,
        in_specs=[
            pl.BlockSpec((tr, cols), lambda i: (i, 0)),
            smem, smem, smem, smem,
        ],
        out_specs=pl.BlockSpec((tr, cols), lambda i: (i, 0)),
        compiler_params=pltpu.CompilerParams(
            dimension_semantics=("parallel",),
            vmem_limit_bytes=VMEM_LIMIT),
    )(h2d, w1, b1, w2, b2)


# ----------------------------------------------------------------------------
# Fused LayerNorm -> Linear -> ELU.
#   z = ((x - mu) * rsqrt(var + eps) * gamma) @ W + (beta @ W + b)
# beta@W + b is hoisted out of the kernel (parameter-only); the kernel issues a
# single bf16 MXU matmul with f32 accumulation. The grid tiles the latent dim
# ("parallel"), so on v7x both TensorCores can be used once latent is large.
# ----------------------------------------------------------------------------
def _norm_fc_elu_kernel(x_ref, g_ref, w_ref, bwb_ref, o_ref, *, eps):
    x = x_ref[...]                                           # [B, d] f32
    mu = jnp.mean(x, axis=-1, keepdims=True)
    xc = x - mu
    var = jnp.mean(xc * xc, axis=-1, keepdims=True)          # two-pass LN
    y = (xc * jax.lax.rsqrt(var + eps)) * g_ref[...]
    z = jnp.dot(y.astype(w_ref.dtype), w_ref[...],
                preferred_element_type=jnp.float32) + bwb_ref[...]
    o_ref[...] = jnp.where(z > 0.0, z, jnp.exp(jnp.minimum(z, 0.0)) - 1.0)


def norm_fc_elu(x, gamma, beta, w, bias):
    bsz, d = x.shape
    lat = w.shape[1]
    # Hoisted parameter-only precompute: beta @ W + b  (plain XLA, tiny).
    bwb = (jnp.dot(beta, w) + bias).reshape(1, lat).astype(jnp.float32)
    w_bf = w.astype(jnp.bfloat16)
    tl = _pick_tile(lat, cap=_norm_lat_cap(bsz, d))
    grid = (lat // tl,)
    kern = functools.partial(_norm_fc_elu_kernel, eps=LN_EPS)
    return pl.pallas_call(
        kern,
        out_shape=jax.ShapeDtypeStruct((bsz, lat), jnp.float32),
        grid=grid,
        in_specs=[
            pl.BlockSpec((bsz, d), lambda j: (0, 0)),   # x (f32, LN stats)
            pl.BlockSpec((1, d), lambda j: (0, 0)),     # gamma
            pl.BlockSpec((d, tl), lambda j: (0, j)),    # fc_w (bf16)
            pl.BlockSpec((1, tl), lambda j: (0, j)),    # beta@W + b
        ],
        out_specs=pl.BlockSpec((bsz, tl), lambda j: (0, j)),
        compiler_params=pltpu.CompilerParams(
            dimension_semantics=("parallel",),
            vmem_limit_bytes=VMEM_LIMIT),
    )(x, gamma.reshape(1, d), w_bf, bwb)


# ----------------------------------------------------------------------------
# FNO spectral conv (hidden_channels == 1): FFT + per-mode complex multiply in
# plain JAX (sub-vreg work; a Pallas launch per [B,m1,m2] corner is pure
# overhead).  out_ft is assembled by pad/concat (no full-size zero scatter).
# ----------------------------------------------------------------------------
def spectral_conv(h, sw):
    """h: [B, 1, X, Y] -> [B, 1, X, Y]."""
    b, c, x, y = h.shape
    m1, m2 = sw["wr1"].shape
    h_ft = jnp.fft.rfft2(h, axes=(-2, -1))                 # [B,1,X,Yf] complex64
    yf = h_ft.shape[-1]
    w1 = sw["wr1"] + 1j * sw["wi1"]
    w2 = sw["wr2"] + 1j * sw["wi2"]
    top = h_ft[:, :, :m1, :m2] * w1                        # low (+freq) rows
    bot = h_ft[:, :, x - m1:, :m2] * w2                    # high (-freq) rows
    top = jnp.pad(top, ((0, 0), (0, 0), (0, 0), (0, yf - m2)))
    bot = jnp.pad(bot, ((0, 0), (0, 0), (0, 0), (0, yf - m2)))
    mid = jnp.zeros((b, c, x - 2 * m1, yf), top.dtype)
    out_ft = jnp.concatenate([top, mid, bot], axis=-2)
    return jnp.fft.irfft2(out_ft, s=(x, y), axes=(-2, -1)).astype(jnp.float32)


# ----------------------------------------------------------------------------
# Forward pass
# ----------------------------------------------------------------------------
def operator_encoder_forward(x, params):
    """x: [B, seq_len, X, Y] -> [B, latent_dim]."""
    b, t, sx, sy = x.shape
    n = b * sx * sy

    # ---- FNO lifting: ChannelMLP(seq_len -> LIFT_CH -> hidden=1), fused ----
    x_cf = x.transpose(1, 0, 2, 3).reshape(t, n)            # channels x spatial
    h_flat = lift_mlp(x_cf, params["lift_w1"], params["lift_b1"],
                      params["lift_w2c"], params["lift_b2"])
    h = h_flat.reshape(b, 1, sx, sy)                        # [B, 1, X, Y]

    # ---- FNO blocks: spectral conv + scalar-FMA skip (+ GELU except last) ----
    # hidden_channels == 1  =>  the linear skip is a scalar multiply-add; the
    # FMA+GELU chain is left to XLA's elementwise fusion (one fusion per layer).
    for i in range(N_LAYERS):
        sp = spectral_conv(h, params["spec"][i])
        h = sp + h * params["skip_w"][i][0, 0] + params["skip_b"][i][0]
        if i < N_LAYERS - 1:
            h = jax.nn.gelu(h, approximate=True)

    # ---- FNO projection: pointwise scalar MLP on a dense 2-D layout ----
    rows, cols = _dense_2d(n)
    p = proj_mlp(h.reshape(rows, cols), params["proj_w1"], params["proj_b1"],
                 params["proj_w2"], params["proj_b2"])
    fno_out = p.reshape(b, sx * sy)                         # [B, X*Y]

    # ---- LayerNorm(1*X*Y) -> Linear(latent) -> ELU, fused ----
    return norm_fc_elu(fno_out, params["ln_g"], params["ln_b"],
                       params["fc_w"], params["fc_b"])


# ----------------------------------------------------------------------------
# Deterministic parameter construction (synthetic weights, no checkpoint)
# ----------------------------------------------------------------------------
def init_params(key, seq_len, sx, sy, latent_dim):
    hidden = 1
    m1 = min(N_MODES[0], sx // 2)
    m2 = min(N_MODES[1], sy // 2 + 1)
    keys = iter(jax.random.split(key, 32))

    def uni(shape, scale):
        return jax.random.uniform(next(keys), shape, jnp.float32, -scale, scale)

    d = 1 * sx * sy
    params = {
        # Lifting MLP stored transposed for the channels-on-sublanes layout;
        # the cout==1 second-layer weights are a column vector.
        "lift_w1": uni((LIFT_CH, seq_len), seq_len ** -0.5),
        "lift_b1": uni((LIFT_CH, 1), seq_len ** -0.5),
        "lift_w2c": uni((LIFT_CH, 1), LIFT_CH ** -0.5),
        "lift_b2": uni((1, 1), LIFT_CH ** -0.5),
        # Projection MLP (hidden=1 -> PROJ_CH -> 1): pure per-channel scalars,
        # stored 1-D so they live in SMEM inside the kernel.
        "proj_w1": uni((PROJ_CH,), 1.0),
        "proj_b1": uni((PROJ_CH,), 1.0),
        "proj_w2": uni((PROJ_CH,), PROJ_CH ** -0.5),
        "proj_b2": uni((1,), PROJ_CH ** -0.5),
        "skip_w": [uni((hidden, hidden), 1.0) for _ in range(N_LAYERS)],
        "skip_b": [jnp.zeros((hidden,), jnp.float32) for _ in range(N_LAYERS)],
        "ln_g": jnp.ones((d,), jnp.float32),
        "ln_b": jnp.zeros((d,), jnp.float32),
        "fc_w": uni((d, latent_dim), d ** -0.5),
        "fc_b": uni((latent_dim,), d ** -0.5),
        "spec": [],
    }
    scale = 1.0 / (hidden * hidden)
    for _ in range(N_LAYERS):
        kk = jax.random.split(next(keys), 4)
        params["spec"].append({
            "wr1": scale * jax.random.normal(kk[0], (m1, m2), jnp.float32),
            "wi1": scale * jax.random.normal(kk[1], (m1, m2), jnp.float32),
            "wr2": scale * jax.random.normal(kk[2], (m1, m2), jnp.float32),
            "wi2": scale * jax.random.normal(kk[3], (m1, m2), jnp.float32),
        })
    return params


if __name__ == "__main__":
    B, SEQ_LEN = 2, 8          # batch, steps (FNO in_channels)
    SX, SY = 32, 32            # spatial resolution (module's x, y)
    LATENT_DIM = 32

    key = jax.random.PRNGKey(0)
    k_in, k_par = jax.random.split(key)
    x = jax.random.normal(k_in, (B, SEQ_LEN, SX, SY), jnp.float32)
    params = init_params(k_par, SEQ_LEN, SX, SY, LATENT_DIM)

    out = jax.jit(operator_encoder_forward)(x, params)
    out = jax.block_until_ready(out)
    assert out.shape == (B, LATENT_DIM), out.shape
    assert bool(jnp.all(jnp.isfinite(out)))
    print("KERNEL_OK")
</pallas_src>

<mosaic_0001>
module attributes {stable_mosaic.version = 11 : i64} {
  func.func @_lift_kernel(%arg0: i32, %arg1: memref<8x2048xbf16, #tpu.memory_space<vmem>>, %arg2: memref<16x8xbf16, #tpu.memory_space<vmem>>, %arg3: memref<16x1xf32, #tpu.memory_space<vmem>>, %arg4: memref<16x1xf32, #tpu.memory_space<vmem>>, %arg5: memref<1x1xf32, #tpu.memory_space<vmem>>, %arg6: memref<1x2048xf32, #tpu.memory_space<vmem>>) attributes {dimension_semantics = [#tpu.dimension_semantics<parallel>], iteration_bounds = array<i64: 1>, scalar_prefetch = 0 : i64, scratch_operands = 0 : i64, tpu.core_type = #tpu.core_type<tc>, window_params = [{transform_indices = @transform_0, window_bounds = array<i64: 8, 2048>}, {pipeline_mode = #tpu.pipeline_mode<synchronous>, transform_indices = @transform_1, window_bounds = array<i64: 16, 8>}, {pipeline_mode = #tpu.pipeline_mode<synchronous>, transform_indices = @transform_2, window_bounds = array<i64: 16, 1>}, {pipeline_mode = #tpu.pipeline_mode<synchronous>, transform_indices = @transform_3, window_bounds = array<i64: 16, 1>}, {pipeline_mode = #tpu.pipeline_mode<synchronous>, transform_indices = @transform_4, window_bounds = array<i64: 1, 1>}, {transform_indices = @transform_5, window_bounds = array<i64: 1, 2048>}]} {
    %c0 = arith.constant 0 : index
    %c0_0 = arith.constant 0 : index
    %0 = vector.load %arg2[%c0, %c0_0] : memref<16x8xbf16, #tpu.memory_space<vmem>>, vector<16x8xbf16>
    %c0_1 = arith.constant 0 : index
    %c0_2 = arith.constant 0 : index
    %1 = vector.load %arg1[%c0_1, %c0_2] : memref<8x2048xbf16, #tpu.memory_space<vmem>>, vector<8x2048xbf16>
    %cst = arith.constant dense<0.000000e+00> : vector<16x2048xf32>
    %2 = tpu.matmul %0, %1, %cst {dimension_numbers = #tpu.dot_dimension_numbers<[1], [0], [0], [1], [0, 0, 1, 1], [], []>} : vector<16x8xbf16>, vector<8x2048xbf16>, vector<16x2048xf32> -> vector<16x2048xf32>
    %c0_3 = arith.constant 0 : index
    %c0_4 = arith.constant 0 : index
    %3 = vector.load %arg3[%c0_3, %c0_4] : memref<16x1xf32, #tpu.memory_space<vmem>>, vector<16x1xf32>
    %4 = vector.broadcast %3 : vector<16x1xf32> to vector<16x2048xf32>
    %5 = arith.addf %2, %4 : vector<16x2048xf32>
    %6 = arith.mulf %5, %5 : vector<16x2048xf32>
    %7 = arith.mulf %5, %6 : vector<16x2048xf32>
    %cst_5 = arith.constant 4.471500e-02 : f32
    %8 = vector.broadcast %cst_5 : f32 to vector<16x2048xf32>
    %9 = arith.mulf %8, %7 : vector<16x2048xf32>
    %10 = arith.addf %5, %9 : vector<16x2048xf32>
    %cst_6 = arith.constant 0.797884583 : f32
    %11 = vector.broadcast %cst_6 : f32 to vector<16x2048xf32>
    %12 = arith.mulf %11, %10 : vector<16x2048xf32>
    %13 = math.tanh %12 : vector<16x2048xf32>
    %cst_7 = arith.constant 1.000000e+00 : f32
    %14 = vector.broadcast %cst_7 : f32 to vector<16x2048xf32>
    %15 = arith.addf %14, %13 : vector<16x2048xf32>
    %cst_8 = arith.constant 5.000000e-01 : f32
    %16 = vector.broadcast %cst_8 : f32 to vector<16x2048xf32>
    %17 = arith.mulf %16, %15 : vector<16x2048xf32>
    %18 = arith.mulf %5, %17 : vector<16x2048xf32>
    %c0_9 = arith.constant 0 : index
    %c0_10 = arith.constant 0 : index
    %19 = vector.load %arg4[%c0_9, %c0_10] : memref<16x1xf32, #tpu.memory_space<vmem>>, vector<16x1xf32>
    %20 = vector.broadcast %19 : vector<16x1xf32> to vector<16x2048xf32>
    %21 = arith.mulf %20, %18 : vector<16x2048xf32>
    %cst_11 = arith.constant dense<0.000000e+00> : vector<2048xf32>
    %22 = vector.multi_reduction <add>, %21, %cst_11 [0] : vector<16x2048xf32> to vector<2048xf32>
    %23 = vector.shape_cast %22 : vector<2048xf32> to vector<1x2048xf32>
    %c0_12 = arith.constant 0 : index
    %c0_13 = arith.constant 0 : index
    %24 = vector.load %arg5[%c0_12, %c0_13] : memref<1x1xf32, #tpu.memory_space<vmem>>, vector<1x1xf32>
    %25 = vector.broadcast %24 : vector<1x1xf32> to vector<1x2048xf32>
    %26 = arith.addf %23, %25 : vector<1x2048xf32>
    %c0_14 = arith.constant 0 : index
    %c0_15 = arith.constant 0 : index
    %27 = vector.load %arg6[%c0_14, %c0_15] : memref<1x2048xf32, #tpu.memory_space<vmem>>, vector<1x2048xf32>
    tpu.vector_store %arg6[%c0_14, %c0_15], %26 {strides = array<i32>} : memref<1x2048xf32, #tpu.memory_space<vmem>>, vector<1x2048xf32>,
    return
  }
  func.func @transform_0(%arg0: i32) -> (i32, i32) {
    %c0_i32 = arith.constant 0 : i32
    %c0_i32_0 = arith.constant 0 : i32
    return %c0_i32, %arg0 : i32, i32
  }
  func.func @transform_1(%arg0: i32) -> (i32, i32) {
    %c0_i32 = arith.constant 0 : i32
    %c0_i32_0 = arith.constant 0 : i32
    %c0_i32_1 = arith.constant 0 : i32
    return %c0_i32, %c0_i32_0 : i32, i32
  }
  func.func @transform_2(%arg0: i32) -> (i32, i32) {
    %c0_i32 = arith.constant 0 : i32
    %c0_i32_0 = arith.constant 0 : i32
    %c0_i32_1 = arith.constant 0 : i32
    return %c0_i32, %c0_i32_0 : i32, i32
  }
  func.func @transform_3(%arg0: i32) -> (i32, i32) {
    %c0_i32 = arith.constant 0 : i32
    %c0_i32_0 = arith.constant 0 : i32
    %c0_i32_1 = arith.constant 0 : i32
    return %c0_i32, %c0_i32_0 : i32, i32
  }
  func.func @transform_4(%arg0: i32) -> (i32, i32) {
    %c0_i32 = arith.constant 0 : i32
    %c0_i32_0 = arith.constant 0 : i32
    %c0_i32_1 = arith.constant 0 : i32
    return %c0_i32, %c0_i32_0 : i32, i32
  }
  func.func @transform_5(%arg0: i32) -> (i32, i32) {
    %c0_i32 = arith.constant 0 : i32
    %c0_i32_0 = arith.constant 0 : i32
    return %c0_i32, %arg0 : i32, i32
  }
}

module attributes {stable_mosaic.version = 11 : i64} {
  func.func @_proj_kernel(%arg0: i32, %arg1: memref<8x256xf32, #tpu.memory_space<vmem>>, %arg2: memref<16xf32, #tpu.memory_space<smem>>, %arg3: memref<16xf32, #tpu.memory_space<smem>>, %arg4: memref<16xf32, #tpu.memory_space<smem>>, %arg5: memref<1xf32, #tpu.memory_space<smem>>, %arg6: memref<8x256xf32, #tpu.memory_space<vmem>>) attributes {dimension_semantics = [#tpu.dimension_semantics<parallel>], iteration_bounds = array<i64: 1>, scalar_prefetch = 0 : i64, scratch_operands = 0 : i64, tpu.core_type = #tpu.core_type<tc>, window_params = [{transform_indices = @transform_0, window_bounds = array<i64: 8, 256>}, {transform_indices = @transform_1, window_bounds = array<i64: 16>}, {transform_indices = @transform_2, window_bounds = array<i64: 16>}, {transform_indices = @transform_3, window_bounds = array<i64: 16>}, {transform_indices = @transform_4, window_bounds = array<i64: 1>}, {transform_indices = @transform_5, window_bounds = array<i64: 8, 256>}]} {
    %c0 = arith.constant 0 : index
    %c0_0 = arith.constant 0 : index
    %0 = vector.load %arg1[%c0, %c0_0] : memref<8x256xf32, #tpu.memory_space<vmem>>, vector<8x256xf32>
    %cst = arith.constant 0.000000e+00 : f32
    %1 = vector.broadcast %cst : f32 to vector<8x256xf32>
    %c0_1 = arith.constant 0 : index
    %2 = memref.load %arg5[%c0_1] : memref<1xf32, #tpu.memory_space<smem>>
    %3 = vector.broadcast %2 : f32 to vector<8x256xf32>
    %4 = arith.addf %1, %3 : vector<8x256xf32>
    %c0_2 = arith.constant 0 : index
    %5 = memref.load %arg2[%c0_2] : memref<16xf32, #tpu.memory_space<smem>>
    %6 = vector.broadcast %5 : f32 to vector<8x256xf32>
    %7 = arith.mulf %0, %6 : vector<8x256xf32>
    %c0_3 = arith.constant 0 : index
    %8 = memref.load %arg3[%c0_3] : memref<16xf32, #tpu.memory_space<smem>>
    %9 = vector.broadcast %8 : f32 to vector<8x256xf32>
    %10 = arith.addf %7, %9 : vector<8x256xf32>
    %c0_4 = arith.constant 0 : index
    %11 = memref.load %arg4[%c0_4] : memref<16xf32, #tpu.memory_space<smem>>
    %12 = arith.mulf %10, %10 : vector<8x256xf32>
    %13 = arith.mulf %10, %12 : vector<8x256xf32>
    %cst_5 = arith.constant 4.471500e-02 : f32
    %14 = vector.broadcast %cst_5 : f32 to vector<8x256xf32>
    %15 = arith.mulf %14, %13 : vector<8x256xf32>
    %16 = arith.addf %10, %15 : vector<8x256xf32>
    %cst_6 = arith.constant 0.797884583 : f32
    %17 = vector.broadcast %cst_6 : f32 to vector<8x256xf32>
    %18 = arith.mulf %17, %16 : vector<8x256xf32>
    %19 = math.tanh %18 : vector<8x256xf32>
    %cst_7 = arith.constant 1.000000e+00 : f32
    %20 = vector.broadcast %cst_7 : f32 to vector<8x256xf32>
    %21 = arith.addf %20, %19 : vector<8x256xf32>
    %cst_8 = arith.constant 5.000000e-01 : f32
    %22 = vector.broadcast %cst_8 : f32 to vector<8x256xf32>
    %23 = arith.mulf %22, %21 : vector<8x256xf32>
    %24 = arith.mulf %10, %23 : vector<8x256xf32>
    %25 = vector.broadcast %11 : f32 to vector<8x256xf32>
    %26 = arith.mulf %25, %24 : vector<8x256xf32>
    %27 = arith.addf %4, %26 : vector<8x256xf32>
    %c1 = arith.constant 1 : index
    %28 = memref.load %arg2[%c1] : memref<16xf32, #tpu.memory_space<smem>>
    %29 = vector.broadcast %28 : f32 to vector<8x256xf32>
    %30 = arith.mulf %0, %29 : vector<8x256xf32>
    %c1_9 = arith.constant 1 : index
    %31 = memref.load %arg3[%c1_9] : memref<16xf32, #tpu.memory_space<smem>>
    %32 = vector.broadcast %31 : f32 to vector<8x256xf32>
    %33 = arith.addf %30, %32 : vector<8x256xf32>
    %c1_10 = arith.constant 1 : index
    %34 = memref.load %arg4[%c1_10] : memref<16xf32, #tpu.memory_space<smem>>
    %35 = arith.mulf %33, %33 : vector<8x256xf32>
    %36 = arith.mulf %33, %35 : vector<8x256xf32>
    %cst_11 = arith.constant 4.471500e-02 : f32
    %37 = vector.broadcast %cst_11 : f32 to vector<8x256xf32>
    %38 = arith.mulf %37, %36 : vector<8x256xf32>
    %39 = arith.addf %33, %38 : vector<8x256xf32>
    %cst_12 = arith.constant 0.797884583 : f32
    %40 = vector.broadcast %cst_12 : f32 to vector<8x256xf32>
    %41 = arith.mulf %40, %39 : vector<8x256xf32>
    %42 = math.tanh %41 : vector<8x256xf32>
    %cst_13 = arith.constant 1.000000e+00 : f32
    %43 = vector.broadcast %cst_13 : f32 to vector<8x256xf32>
    %44 = arith.addf %43, %42 : vector<8x256xf32>
    %cst_14 = arith.constant 5.000000e-01 : f32
    %45 = vector.broadcast %cst_14 : f32 to vector<8x256xf32>
    %46 = arith.mulf %45, %44 : vector<8x256xf32>
    %47 = arith.mulf %33, %46 : vector<8x256xf32>
    %48 = vector.broadcast %34 : f32 to vector<8x256xf32>
    %49 = arith.mulf %48, %47 : vector<8x256xf32>
    %50 = arith.addf %27, %49 : vector<8x256xf32>
    %c2 = arith.constant 2 : index
    %51 = memref.load %arg2[%c2] : memref<16xf32, #tpu.memory_space<smem>>
    %52 = vector.broadcast %51 : f32 to vector<8x256xf32>
    %53 = arith.mulf %0, %52 : vector<8x256xf32>
    %c2_15 = arith.constant 2 : index
    %54 = memref.load %arg3[%c2_15] : memref<16xf32, #tpu.memory_space<smem>>
    %55 = vector.broadcast %54 : f32 to vector<8x256xf32>
    %56 = arith.addf %53, %55 : vector<8x256xf32>
    %c2_16 = arith.constant 2 : index
    %57 = memref.load %arg4[%c2_16] : memref<16xf32, #tpu.memory_space<smem>>
    %58 = arith.mulf %56, %56 : vector<8x256xf32>
    %59 = arith.mulf %56, %58 : vector<8x256xf32>
    %cst_17 = arith.constant 4.471500e-02 : f32
    %60 = vector.broadcast %cst_17 : f32 to vector<8x256xf32>
    %61 = arith.mulf %60, %59 : vector<8x256xf32>
    %62 = arith.addf %56, %61 : vector<8x256xf32>
    %cst_18 = arith.constant 0.797884583 : f32
    %63 = vector.broadcast %cst_18 : f32 to vector<8x256xf32>
    %64 = arith.mulf %63, %62 : vector<8x256xf32>
    %65 = math.tanh %64 : vector<8x256xf32>
    %cst_19 = arith.constant 1.000000e+00 : f32
    %66 = vector.broadcast %cst_19 : f32 to vector<8x256xf32>
    %67 = arith.addf %66, %65 : vector<8x256xf32>
    %cst_20 = arith.constant 5.000000e-01 : f32
    %68 = vector.broadcast %cst_20 : f32 to vector<8x256xf32>
    %69 = arith.mulf %68, %67 : vector<8x256xf32>
    %70 = arith.mulf %56, %69 : vector<8x256xf32>
    %71 = vector.broadcast %57 : f32 to vector<8x256xf32>
    %72 = arith.mulf %71, %70 : vector<8x256xf32>
    %73 = arith.addf %50, %72 : vector<8x256xf32>
    %c3 = arith.constant 3 : index
    %74 = memref.load %arg2[%c3] : memref<16xf32, #tpu.memory_space<smem>>
    %75 = vector.broadcast %74 : f32 to vector<8x256xf32>
    %76 = arith.mulf %0, %75 : vector<8x256xf32>
    %c3_21 = arith.constant 3 : index
    %77 = memref.load %arg3[%c3_21] : memref<16xf32, #tpu.memory_space<smem>>
    %78 = vector.broadcast %77 : f32 to vector<8x256xf32>
    %79 = arith.addf %76, %78 : vector<8x256xf32>
    %c3_22 = arith.constant 3 : index
    %80 = memref.load %arg4[%c3_22] : memref<16xf32, #tpu.memory_space<smem>>
    %81 = arith.mulf %79, %79 : vector<8x256xf32>
    %82 = arith.mulf %79, %81 : vector<8x256xf32>
    %cst_23 = arith.constant 4.471500e-02 : f32
    %83 = vector.broadcast %cst_23 : f32 to vector<8x256xf32>
    %84 = arith.mulf %83, %82 : vector<8x256xf32>
    %85 = arith.addf %79, %84 : vector<8x256xf32>
    %cst_24 = arith.constant 0.797884583 : f32
    %86 = vector.broadcast %cst_24 : f32 to vector<8x256xf32>
    %87 = arith.mulf %86, %85 : vector<8x256xf32>
    %88 = math.tanh %87 : vector<8x256xf32>
    %cst_25 = arith.constant 1.000000e+00 : f32
    %89 = vector.broadcast %cst_25 : f32 to vector<8x256xf32>
    %90 = arith.addf %89, %88 : vector<8x256xf32>
    %cst_26 = arith.constant 5.000000e-01 : f32
    %91 = vector.broadcast %cst_26 : f32 to vector<8x256xf32>
    %92 = arith.mulf %91, %90 : vector<8x256xf32>
    %93 = arith.mulf %79, %92 : vector<8x256xf32>
    %94 = vector.broadcast %80 : f32 to vector<8x256xf32>
    %95 = arith.mulf %94, %93 : vector<8x256xf32>
    %96 = arith.addf %73, %95 : vector<8x256xf32>
    %c4 = arith.constant 4 : index
    %97 = memref.load %arg2[%c4] : memref<16xf32, #tpu.memory_space<smem>>
    %98 = vector.broadcast %97 : f32 to vector<8x256xf32>
    %99 = arith.mulf %0, %98 : vector<8x256xf32>
    %c4_27 = arith.constant 4 : index
    %100 = memref.load %arg3[%c4_27] : memref<16xf32, #tpu.memory_space<smem>>
    %101 = vector.broadcast %100 : f32 to vector<8x256xf32>
    %102 = arith.addf %99, %101 : vector<8x256xf32>
    %c4_28 = arith.constant 4 : index
    %103 = memref.load %arg4[%c4_28] : memref<16xf32, #tpu.memory_space<smem>>
    %104 = arith.mulf %102, %102 : vector<8x256xf32>
    %105 = arith.mulf %102, %104 : vector<8x256xf32>
    %cst_29 = arith.constant 4.471500e-02 : f32
    %106 = vector.broadcast %cst_29 : f32 to vector<8x256xf32>
    %107 = arith.mulf %106, %105 : vector<8x256xf32>
    %108 = arith.addf %102, %107 : vector<8x256xf32>
    %cst_30 = arith.constant 0.797884583 : f32
    %109 = vector.broadcast %cst_30 : f32 to vector<8x256xf32>
    %110 = arith.mulf %109, %108 : vector<8x256xf32>
    %111 = math.tanh %110 : vector<8x256xf32>
    %cst_31 = arith.constant 1.000000e+00 : f32
    %112 = vector.broadcast %cst_31 : f32 to vector<8x256xf32>
    %113 = arith.addf %112, %111 : vector<8x256xf32>
    %cst_32 = arith.constant 5.000000e-01 : f32
    %114 = vector.broadcast %cst_32 : f32 to vector<8x256xf32>
    %115 = arith.mulf %114, %113 : vector<8x256xf32>
    %116 = arith.mulf %102, %115 : vector<8x256xf32>
    %117 = vector.broadcast %103 : f32 to vector<8x256xf32>
    %118 = arith.mulf %117, %116 : vector<8x256xf32>
    %119 = arith.addf %96, %118 : vector<8x256xf32>
    %c5 = arith.constant 5 : index
    %120 = memref.load %arg2[%c5] : memref<16xf32, #tpu.memory_space<smem>>
    %121 = vector.broadcast %120 : f32 to vector<8x256xf32>
    %122 = arith.mulf %0, %121 : vector<8x256xf32>
    %c5_33 = arith.constant 5 : index
    %123 = memref.load %arg3[%c5_33] : memref<16xf32, #tpu.memory_space<smem>>
    %124 = vector.broadcast %123 : f32 to vector<8x256xf32>
    %125 = arith.addf %122, %124 : vector<8x256xf32>
    %c5_34 = arith.constant 5 : index
    %126 = memref.load %arg4[%c5_34] : memref<16xf32, #tpu.memory_space<smem>>
    %127 = arith.mulf %125, %125 : vector<8x256xf32>
    %128 = arith.mulf %125, %127 : vector<8x256xf32>
    %cst_35 = arith.constant 4.471500e-02 : f32
    %129 = vector.broadcast %cst_35 : f32 to vector<8x256xf32>
    %130 = arith.mulf %129, %128 : vector<8x256xf32>
    %131 = arith.addf %125, %130 : vector<8x256xf32>
    %cst_36 = arith.constant 0.797884583 : f32
    %132 = vector.broadcast %cst_36 : f32 to vector<8x256xf32>
    %133 = arith.mulf %132, %131 : vector<8x256xf32>
    %134 = math.tanh %133 : vector<8x256xf32>
    %cst_37 = arith.constant 1.000000e+00 : f32
    %135 = vector.broadcast %cst_37 : f32 to vector<8x256xf32>
    %136 = arith.addf %135, %134 : vector<8x256xf32>
    %cst_38 = arith.constant 5.000000e-01 : f32
    %137 = vector.broadcast %cst_38 : f32 to vector<8x256xf32>
    %138 = arith.mulf %137, %136 : vector<8x256xf32>
    %139 = arith.mulf %125, %138 : vector<8x256xf32>
    %140 = vector.broadcast %126 : f32 to vector<8x256xf32>
    %141 = arith.mulf %140, %139 : vector<8x256xf32>
    %142 = arith.addf %119, %141 : vector<8x256xf32>
    %c6 = arith.constant 6 : index
    %143 = memref.load %arg2[%c6] : memref<16xf32, #tpu.memory_space<smem>>
    %144 = vector.broadcast %143 : f32 to vector<8x256xf32>
    %145 = arith.mulf %0, %144 : vector<8x256xf32>
    %c6_39 = arith.constant 6 : index
    %146 = memref.load %arg3[%c6_39] : memref<16xf32, #tpu.memory_space<smem>>
    %147 = vector.broadcast %146 : f32 to vector<8x256xf32>
    %148 = arith.addf %145, %147 : vector<8x256xf32>
    %c6_40 = arith.constant 6 : index
    %149 = memref.load %arg4[%c6_40] : memref<16xf32, #tpu.memory_space<smem>>
    %150 = arith.mulf %148, %148 : vector<8x256xf32>
    %151 = arith.mulf %148, %150 : vector<8x256xf32>
    %cst_41 = arith.constant 4.471500e-02 : f32
    %152 = vector.broadcast %cst_41 : f32 to vector<8x256xf32>
    %153 = arith.mulf %152, %151 : vector<8x256xf32>
    %154 = arith.addf %148, %153 : vector<8x256xf32>
    %cst_42 = arith.constant 0.797884583 : f32
    %155 = vector.broadcast %cst_42 : f32 to vector<8x256xf32>
    %156 = arith.mulf %155, %154 : vector<8x256xf32>
    %157 = math.tanh %156 : vector<8x256xf32>
    %cst_43 = arith.constant 1.000000e+00 : f32
    %158 = vector.broadcast %cst_43 : f32 to vector<8x256xf32>
    %159 = arith.addf %158, %157 : vector<8x256xf32>
    %cst_44 = arith.constant 5.000000e-01 : f32
    %160 = vector.broadcast %cst_44 : f32 to vector<8x256xf32>
    %161 = arith.mulf %160, %159 : vector<8x256xf32>
    %162 = arith.mulf %148, %161 : vector<8x256xf32>
    %163 = vector.broadcast %149 : f32 to vector<8x256xf32>
    %164 = arith.mulf %163, %162 : vector<8x256xf32>
    %165 = arith.addf %142, %164 : vector<8x256xf32>
    %c7 = arith.constant 7 : index
    %166 = memref.load %arg2[%c7] : memref<16xf32, #tpu.memory_space<smem>>
    %167 = vector.broadcast %166 : f32 to vector<8x256xf32>
    %168 = arith.mulf %0, %167 : vector<8x256xf32>
    %c7_45 = arith.constant 7 : index
    %169 = memref.load %arg3[%c7_45] : memref<16xf32, #tpu.memory_space<smem>>
    %170 = vector.broadcast %169 : f32 to vector<8x256xf32>
    %171 = arith.addf %168, %170 : vector<8x256xf32>
    %c7_46 = arith.constant 7 : index
    %172 = memref.load %arg4[%c7_46] : memref<16xf32, #tpu.memory_space<smem>>
    %173 = arith.mulf %171, %171 : vector<8x256xf32>
    %174 = arith.mulf %171, %173 : vector<8x256xf32>
    %cst_47 = arith.constant 4.471500e-02 : f32
    %175 = vector.broadcast %cst_47 : f32 to vector<8x256xf32>
    %176 = arith.mulf %175, %174 : vector<8x256xf32>
    %177 = arith.addf %171, %176 : vector<8x256xf32>
    %cst_48 = arith.constant 0.797884583 : f32
    %178 = vector.broadcast %cst_48 : f32 to vector<8x256xf32>
    %179 = arith.mulf %178, %177 : vector<8x256xf32>
    %180 = math.tanh %179 : vector<8x256xf32>
    %cst_49 = arith.constant 1.000000e+00 : f32
    %181 = vector.broadcast %cst_49 : f32 to vector<8x256xf32>
    %182 = arith.addf %181, %180 : vector<8x256xf32>
    %cst_50 = arith.constant 5.000000e-01 : f32
    %183 = vector.broadcast %cst_50 : f32 to vector<8x256xf32>
    %184 = arith.mulf %183, %182 : vector<8x256xf32>
    %185 = arith.mulf %171, %184 : vector<8x256xf32>
    %186 = vector.broadcast %172 : f32 to vector<8x256xf32>
    %187 = arith.mulf %186, %185 : vector<8x256xf32>
    %188 = arith.addf %165, %187 : vector<8x256xf32>
    %c8 = arith.constant 8 : index
    %189 = memref.load %arg2[%c8] : memref<16xf32, #tpu.memory_space<smem>>
    %190 = vector.broadcast %189 : f32 to vector<8x256xf32>
    %191 = arith.mulf %0, %190 : vector<8x256xf32>
    %c8_51 = arith.constant 8 : index
    %192 = memref.load %arg3[%c8_51] : memref<16xf32, #tpu.memory_space<smem>>
    %193 = vector.broadcast %192 : f32 to vector<8x256xf32>
    %194 = arith.addf %191, %193 : vector<8x256xf32>
    %c8_52 = arith.constant 8 : index
    %195 = memref.load %arg4[%c8_52] : memref<16xf32, #tpu.memory_space<smem>>
    %196 = arith.mulf %194, %194 : vector<8x256xf32>
    %197 = arith.mulf %194, %196 : vector<8x256xf32>
    %cst_53 = arith.constant 4.471500e-02 : f32
    %198 = vector.broadcast %cst_53 : f32 to vector<8x256xf32>
    %199 = arith.mulf %198, %197 : vector<8x256xf32>
    %200 = arith.addf %194, %199 : vector<8x256xf32>
    %cst_54 = arith.constant 0.797884583 : f32
    %201 = vector.broadcast %cst_54 : f32 to vector<8x256xf32>
    %202 = arith.mulf %201, %200 : vector<8x256xf32>
    %203 = math.tanh %202 : vector<8x256xf32>
    %cst_55 = arith.constant 1.000000e+00 : f32
    %204 = vector.broadcast %cst_55 : f32 to vector<8x256xf32>
    %205 = arith.addf %204, %203 : vector<8x256xf32>
    %cst_56 = arith.constant 5.000000e-01 : f32
    %206 = vector.broadcast %cst_56 : f32 to vector<8x256xf32>
    %207 = arith.mulf %206, %205 : vector<8x256xf32>
    %208 = arith.mulf %194, %207 : vector<8x256xf32>
    %209 = vector.broadcast %195 : f32 to vector<8x256xf32>
    %210 = arith.mulf %209, %208 : vector<8x256xf32>
    %211 = arith.addf %188, %210 : vector<8x256xf32>
    %c9 = arith.constant 9 : index
    %212 = memref.load %arg2[%c9] : memref<16xf32, #tpu.memory_space<smem>>
    %213 = vector.broadcast %212 : f32 to vector<8x256xf32>
    %214 = arith.mulf %0, %213 : vector<8x256xf32>
    %c9_57 = arith.constant 9 : index
    %215 = memref.load %arg3[%c9_57] : memref<16xf32, #tpu.memory_space<smem>>
    %216 = vector.broadcast %215 : f32 to vector<8x256xf32>
    %217 = arith.addf %214, %216 : vector<8x256xf32>
    %c9_58 = arith.constant 9 : index
    %218 = memref.load %arg4[%c9_58] : memref<16xf32, #tpu.memory_space<smem>>
    %219 = arith.mulf %217, %217 : vector<8x256xf32>
    %220 = arith.mulf %217, %219 : vector<8x256xf32>
    %cst_59 = arith.constant 4.471500e-02 : f32
    %221 = vector.broadcast %cst_59 : f32 to vector<8x256xf32>
    %222 = arith.mulf %221, %220 : vector<8x256xf32>
    %223 = arith.addf %217, %222 : vector<8x256xf32>
    %cst_60 = arith.constant 0.797884583 : f32
    %224 = vector.broadcast %cst_60 : f32 to vector<8x256xf32>
    %225 = arith.mulf %224, %223 : vector<8x256xf32>
    %226 = math.tanh %225 : vector<8x256xf32>
    %cst_61 = arith.constant 1.000000e+00 : f32
    %227 = vector.broadcast %cst_61 : f32 to vector<8x256xf32>
    %228 = arith.addf %227, %226 : vector<8x256xf32>
    %cst_62 = arith.constant 5.000000e-01 : f32
    %229 = vector.broadcast %cst_62 : f32 to vector<8x256xf32>
    %230 = arith.mulf %229, %228 : vector<8x256xf32>
    %231 = arith.mulf %217, %230 : vector<8x256xf32>
    %232 = vector.broadcast %218 : f32 to vector<8x256xf32>
    %233 = arith.mulf %232, %231 : vector<8x256xf32>
    %234 = arith.addf %211, %233 : vector<8x256xf32>
    %c10 = arith.constant 10 : index
    %235 = memref.load %arg2[%c10] : memref<16xf32, #tpu.memory_space<smem>>
    %236 = vector.broadcast %235 : f32 to vector<8x256xf32>
    %237 = arith.mulf %0, %236 : vector<8x256xf32>
    %c10_63 = arith.constant 10 : index
    %238 = memref.load %arg3[%c10_63] : memref<16xf32, #tpu.memory_space<smem>>
    %239 = vector.broadcast %238 : f32 to vector<8x256xf32>
    %240 = arith.addf %237, %239 : vector<8x256xf32>
    %c10_64 = arith.constant 10 : index
    %241 = memref.load %arg4[%c10_64] : memref<16xf32, #tpu.memory_space<smem>>
    %242 = arith.mulf %240, %240 : vector<8x256xf32>
    %243 = arith.mulf %240, %242 : vector<8x256xf32>
    %cst_65 = arith.constant 4.471500e-02 : f32
    %244 = vector.broadcast %cst_65 : f32 to vector<8x256xf32>
    %245 = arith.mulf %244, %243 : vector<8x256xf32>
    %246 = arith.addf %240, %245 : vector<8x256xf32>
    %cst_66 = arith.constant 0.797884583 : f32
    %247 = vector.broadcast %cst_66 : f32 to vector<8x256xf32>
    %248 = arith.mulf %247, %246 : vector<8x256xf32>
    %249 = math.tanh %248 : vector<8x256xf32>
    %cst_67 = arith.constant 1.000000e+00 : f32
    %250 = vector.broadcast %cst_67 : f32 to vector<8x256xf32>
    %251 = arith.addf %250, %249 : vector<8x256xf32>
    %cst_68 = arith.constant 5.000000e-01 : f32
    %252 = vector.broadcast %cst_68 : f32 to vector<8x256xf32>
    %253 = arith.mulf %252, %251 : vector<8x256xf32>
    %254 = arith.mulf %240, %253 : vector<8x256xf32>
    %255 = vector.broadcast %241 : f32 to vector<8x256xf32>
    %256 = arith.mulf %255, %254 : vector<8x256xf32>
    %257 = arith.addf %234, %256 : vector<8x256xf32>
    %c11 = arith.constant 11 : index
    %258 = memref.load %arg2[%c11] : memref<16xf32, #tpu.memory_space<smem>>
    %259 = vector.broadcast %258 : f32 to vector<8x256xf32>
    %260 = arith.mulf %0, %259 : vector<8x256xf32>
    %c11_69 = arith.constant 11 : index
    %261 = memref.load %arg3[%c11_69] : memref<16xf32, #tpu.memory_space<smem>>
    %262 = vector.broadcast %261 : f32 to vector<8x256xf32>
    %263 = arith.addf %260, %262 : vector<8x256xf32>
    %c11_70 = arith.constant 11 : index
    %264 = memref.load %arg4[%c11_70] : memref<16xf32, #tpu.memory_space<smem>>
    %265 = arith.mulf %263, %263 : vector<8x256xf32>
    %266 = arith.mulf %263, %265 : vector<8x256xf32>
    %cst_71 = arith.constant 4.471500e-02 : f32
    %267 = vector.broadcast %cst_71 : f32 to vector<8x256xf32>
    %268 = arith.mulf %267, %266 : vector<8x256xf32>
    %269 = arith.addf %263, %268 : vector<8x256xf32>
    %cst_72 = arith.constant 0.797884583 : f32
    %270 = vector.broadcast %cst_72 : f32 to vector<8x256xf32>
    %271 = arith.mulf %270, %269 : vector<8x256xf32>
    %272 = math.tanh %271 : vector<8x256xf32>
    %cst_73 = arith.constant 1.000000e+00 : f32
    %273 = vector.broadcast %cst_73 : f32 to vector<8x256xf32>
    %274 = arith.addf %273, %272 : vector<8x256xf32>
    %cst_74 = arith.constant 5.000000e-01 : f32
    %275 = vector.broadcast %cst_74 : f32 to vector<8x256xf32>
    %276 = arith.mulf %275, %274 : vector<8x256xf32>
    %277 = arith.mulf %263, %276 : vector<8x256xf32>
    %278 = vector.broadcast %264 : f32 to vector<8x256xf32>
    %279 = arith.mulf %278, %277 : vector<8x256xf32>
    %280 = arith.addf %257, %279 : vector<8x256xf32>
    %c12 = arith.constant 12 : index
    %281 = memref.load %arg2[%c12] : memref<16xf32, #tpu.memory_space<smem>>
    %282 = vector.broadcast %281 : f32 to vector<8x256xf32>
    %283 = arith.mulf %0, %282 : vector<8x256xf32>
    %c12_75 = arith.constant 12 : index
    %284 = memref.load %arg3[%c12_75] : memref<16xf32, #tpu.memory_space<smem>>
    %285 = vector.broadcast %284 : f32 to vector<8x256xf32>
    %286 = arith.addf %283, %285 : vector<8x256xf32>
    %c12_76 = arith.constant 12 : index
    %287 = memref.load %arg4[%c12_76] : memref<16xf32, #tpu.memory_space<smem>>
    %288 = arith.mulf %286, %286 : vector<8x256xf32>
    %289 = arith.mulf %286, %288 : vector<8x256xf32>
    %cst_77 = arith.constant 4.471500e-02 : f32
    %290 = vector.broadcast %cst_77 : f32 to vector<8x256xf32>
    %291 = arith.mulf %290, %289 : vector<8x256xf32>
    %292 = arith.addf %286, %291 : vector<8x256xf32>
    %cst_78 = arith.constant 0.797884583 : f32
    %293 = vector.broadcast %cst_78 : f32 to vector<8x256xf32>
    %294 = arith.mulf %293, %292 : vector<8x256xf32>
    %295 = math.tanh %294 : vector<8x256xf32>
    %cst_79 = arith.constant 1.000000e+00 : f32
    %296 = vector.broadcast %cst_79 : f32 to vector<8x256xf32>
    %297 = arith.addf %296, %295 : vector<8x256xf32>
    %cst_80 = arith.constant 5.000000e-01 : f32
    %298 = vector.broadcast %cst_80 : f32 to vector<8x256xf32>
    %299 = arith.mulf %298, %297 : vector<8x256xf32>
    %300 = arith.mulf %286, %299 : vector<8x256xf32>
    %301 = vector.broadcast %287 : f32 to vector<8x256xf32>
    %302 = arith.mulf %301, %300 : vector<8x256xf32>
    %303 = arith.addf %280, %302 : vector<8x256xf32>
    %c13 = arith.constant 13 : index
    %304 = memref.load %arg2[%c13] : memref<16xf32, #tpu.memory_space<smem>>
    %305 = vector.broadcast %304 : f32 to vector<8x256xf32>
    %306 = arith.mulf %0, %305 : vector<8x256xf32>
    %c13_81 = arith.constant 13 : index
    %307 = memref.load %arg3[%c13_81] : memref<16xf32, #tpu.memory_space<smem>>
    %308 = vector.broadcast %307 : f32 to vector<8x256xf32>
    %309 = arith.addf %306, %308 : vector<8x256xf32>
    %c13_82 = arith.constant 13 : index
    %310 = memref.load %arg4[%c13_82] : memref<16xf32, #tpu.memory_space<smem>>
    %311 = arith.mulf %309, %309 : vector<8x256xf32>
    %312 = arith.mulf %309, %311 : vector<8x256xf32>
    %cst_83 = arith.constant 4.471500e-02 : f32
    %313 = vector.broadcast %cst_83 : f32 to vector<8x256xf32>
    %314 = arith.mulf %313, %312 : vector<8x256xf32>
    %315 = arith.addf %309, %314 : vector<8x256xf32>
    %cst_84 = arith.constant 0.797884583 : f32
    %316 = vector.broadcast %cst_84 : f32 to vector<8x256xf32>
    %317 = arith.mulf %316, %315 : vector<8x256xf32>
    %318 = math.tanh %317 : vector<8x256xf32>
    %cst_85 = arith.constant 1.000000e+00 : f32
    %319 = vector.broadcast %cst_85 : f32 to vector<8x256xf32>
    %320 = arith.addf %319, %318 : vector<8x256xf32>
    %cst_86 = arith.constant 5.000000e-01 : f32
    %321 = vector.broadcast %cst_86 : f32 to vector<8x256xf32>
    %322 = arith.mulf %321, %320 : vector<8x256xf32>
    %323 = arith.mulf %309, %322 : vector<8x256xf32>
    %324 = vector.broadcast %310 : f32 to vector<8x256xf32>
    %325 = arith.mulf %324, %323 : vector<8x256xf32>
    %326 = arith.addf %303, %325 : vector<8x256xf32>
    %c14 = arith.constant 14 : index
    %327 = memref.load %arg2[%c14] : memref<16xf32, #tpu.memory_space<smem>>
    %328 = vector.broadcast %327 : f32 to vector<8x256xf32>
    %329 = arith.mulf %0, %328 : vector<8x256xf32>
    %c14_87 = arith.constant 14 : index
    %330 = memref.load %arg3[%c14_87] : memref<16xf32, #tpu.memory_space<smem>>
    %331 = vector.broadcast %330 : f32 to vector<8x256xf32>
    %332 = arith.addf %329, %331 : vector<8x256xf32>
    %c14_88 = arith.constant 14 : index
    %333 = memref.load %arg4[%c14_88] : memref<16xf32, #tpu.memory_space<smem>>
    %334 = arith.mulf %332, %332 : vector<8x256xf32>
    %335 = arith.mulf %332, %334 : vector<8x256xf32>
    %cst_89 = arith.constant 4.471500e-02 : f32
    %336 = vector.broadcast %cst_89 : f32 to vector<8x256xf32>
    %337 = arith.mulf %336, %335 : vector<8x256xf32>
    %338 = arith.addf %332, %337 : vector<8x256xf32>
    %cst_90 = arith.constant 0.797884583 : f32
    %339 = vector.broadcast %cst_90 : f32 to vector<8x256xf32>
    %340 = arith.mulf %339, %338 : vector<8x256xf32>
    %341 = math.tanh %340 : vector<8x256xf32>
    %cst_91 = arith.constant 1.000000e+00 : f32
    %342 = vector.broadcast %cst_91 : f32 to vector<8x256xf32>
    %343 = arith.addf %342, %341 : vector<8x256xf32>
    %cst_92 = arith.constant 5.000000e-01 : f32
    %344 = vector.broadcast %cst_92 : f32 to vector<8x256xf32>
    %345 = arith.mulf %344, %343 : vector<8x256xf32>
    %346 = arith.mulf %332, %345 : vector<8x256xf32>
    %347 = vector.broadcast %333 : f32 to vector<8x256xf32>
    %348 = arith.mulf %347, %346 : vector<8x256xf32>
    %349 = arith.addf %326, %348 : vector<8x256xf32>
    %c15 = arith.constant 15 : index
    %350 = memref.load %arg2[%c15] : memref<16xf32, #tpu.memory_space<smem>>
    %351 = vector.broadcast %350 : f32 to vector<8x256xf32>
    %352 = arith.mulf %0, %351 : vector<8x256xf32>
    %c15_93 = arith.constant 15 : index
    %353 = memref.load %arg3[%c15_93] : memref<16xf32, #tpu.memory_space<smem>>
    %354 = vector.broadcast %353 : f32 to vector<8x256xf32>
    %355 = arith.addf %352, %354 : vector<8x256xf32>
    %c15_94 = arith.constant 15 : index
    %356 = memref.load %arg4[%c15_94] : memref<16xf32, #tpu.memory_space<smem>>
    %357 = arith.mulf %355, %355 : vector<8x256xf32>
    %358 = arith.mulf %355, %357 : vector<8x256xf32>
    %cst_95 = arith.constant 4.471500e-02 : f32
    %359 = vector.broadcast %cst_95 : f32 to vector<8x256xf32>
    %360 = arith.mulf %359, %358 : vector<8x256xf32>
    %361 = arith.addf %355, %360 : vector<8x256xf32>
    %cst_96 = arith.constant 0.797884583 : f32
    %362 = vector.broadcast %cst_96 : f32 to vector<8x256xf32>
    %363 = arith.mulf %362, %361 : vector<8x256xf32>
    %364 = math.tanh %363 : vector<8x256xf32>
    %cst_97 = arith.constant 1.000000e+00 : f32
    %365 = vector.broadcast %cst_97 : f32 to vector<8x256xf32>
    %366 = arith.addf %365, %364 : vector<8x256xf32>
    %cst_98 = arith.constant 5.000000e-01 : f32
    %367 = vector.broadcast %cst_98 : f32 to vector<8x256xf32>
    %368 = arith.mulf %367, %366 : vector<8x256xf32>
    %369 = arith.mulf %355, %368 : vector<8x256xf32>
    %370 = vector.broadcast %356 : f32 to vector<8x256xf32>
    %371 = arith.mulf %370, %369 : vector<8x256xf32>
    %372 = arith.addf %349, %371 : vector<8x256xf32>
    %c0_99 = arith.constant 0 : index
    %c0_100 = arith.constant 0 : index
    %373 = vector.load %arg6[%c0_99, %c0_100] : memref<8x256xf32, #tpu.memory_space<vmem>>, vector<8x256xf32>
    tpu.vector_store %arg6[%c0_99, %c0_100], %372 {strides = array<i32>} : memref<8x256xf32, #tpu.memory_space<vmem>>, vector<8x256xf32>,
    return
  }
  func.func @transform_0(%arg0: i32) -> (i32, i32) {
    %c0_i32 = arith.constant 0 : i32
    %c0_i32_0 = arith.constant 0 : i32
    return %arg0, %c0_i32 : i32, i32
  }
  func.func @transform_1(%arg0: i32) -> i32 {
    %c0_i32 = arith.constant 0 : i32
    %c0_i32_0 = arith.constant 0 : i32
    return %c0_i32 : i32
  }
  func.func @transform_2(%arg0: i32) -> i32 {
    %c0_i32 = arith.constant 0 : i32
    %c0_i32_0 = arith.constant 0 : i32
    return %c0_i32 : i32
  }
  func.func @transform_3(%arg0: i32) -> i32 {
    %c0_i32 = arith.constant 0 : i32
    %c0_i32_0 = arith.constant 0 : i32
    return %c0_i32 : i32
  }
  func.func @transform_4(%arg0: i32) -> i32 {
    %c0_i32 = arith.constant 0 : i32
    %c0_i32_0 = arith.constant 0 : i32
    return %c0_i32 : i32
  }
  func.func @transform_5(%arg0: i32) -> (i32, i32) {
    %c0_i32 = arith.constant 0 : i32
    %c0_i32_0 = arith.constant 0 : i32
    return %arg0, %c0_i32 : i32, i32
  }
}

module attributes {stable_mosaic.version = 11 : i64} {
  func.func @_norm_fc_elu_kernel(%arg0: i32, %arg1: memref<2x1024xf32, #tpu.memory_space<vmem>>, %arg2: memref<1x1024xf32, #tpu.memory_space<vmem>>, %arg3: memref<1024x32xbf16, #tpu.memory_space<vmem>>, %arg4: memref<1x32xf32, #tpu.memory_space<vmem>>, %arg5: memref<2x32xf32, #tpu.memory_space<vmem>>) attributes {dimension_semantics = [#tpu.dimension_semantics<parallel>], iteration_bounds = array<i64: 1>, scalar_prefetch = 0 : i64, scratch_operands = 0 : i64, tpu.core_type = #tpu.core_type<tc>, window_params = [{pipeline_mode = #tpu.pipeline_mode<synchronous>, transform_indices = @transform_0, window_bounds = array<i64: 2, 1024>}, {pipeline_mode = #tpu.pipeline_mode<synchronous>, transform_indices = @transform_1, window_bounds = array<i64: 1, 1024>}, {transform_indices = @transform_2, window_bounds = array<i64: 1024, 32>}, {transform_indices = @transform_3, window_bounds = array<i64: 1, 32>}, {transform_indices = @transform_4, window_bounds = array<i64: 2, 32>}]} {
    %c0 = arith.constant 0 : index
    %c0_0 = arith.constant 0 : index
    %0 = vector.load %arg1[%c0, %c0_0] : memref<2x1024xf32, #tpu.memory_space<vmem>>, vector<2x1024xf32>
    %cst = arith.constant dense<0.000000e+00> : vector<2xf32>
    %1 = vector.multi_reduction <add>, %0, %cst [1] : vector<2x1024xf32> to vector<2xf32>
    %2 = vector.shape_cast %1 : vector<2xf32> to vector<2x1xf32>
    %cst_1 = arith.constant 1.024000e+03 : f32
    %3 = vector.broadcast %cst_1 : f32 to vector<2x1xf32>
    %4 = arith.divf %2, %3 : vector<2x1xf32>
    %5 = vector.broadcast %4 : vector<2x1xf32> to vector<2x1024xf32>
    %6 = arith.subf %0, %5 : vector<2x1024xf32>
    %7 = arith.mulf %6, %6 : vector<2x1024xf32>
    %cst_2 = arith.constant dense<0.000000e+00> : vector<2xf32>
    %8 = vector.multi_reduction <add>, %7, %cst_2 [1] : vector<2x1024xf32> to vector<2xf32>
    %9 = vector.shape_cast %8 : vector<2xf32> to vector<2x1xf32>
    %cst_3 = arith.constant 1.024000e+03 : f32
    %10 = vector.broadcast %cst_3 : f32 to vector<2x1xf32>
    %11 = arith.divf %9, %10 : vector<2x1xf32>
    %cst_4 = arith.constant 9.99999974E-6 : f32
    %12 = vector.broadcast %cst_4 : f32 to vector<2x1xf32>
    %13 = arith.addf %11, %12 : vector<2x1xf32>
    %14 = math.rsqrt %13 : vector<2x1xf32>
    %15 = vector.broadcast %14 : vector<2x1xf32> to vector<2x1024xf32>
    %16 = arith.mulf %6, %15 : vector<2x1024xf32>
    %c0_5 = arith.constant 0 : index
    %c0_6 = arith.constant 0 : index
    %17 = vector.load %arg2[%c0_5, %c0_6] : memref<1x1024xf32, #tpu.memory_space<vmem>>, vector<1x1024xf32>
    %18 = vector.broadcast %17 : vector<1x1024xf32> to vector<2x1024xf32>
    %19 = arith.mulf %16, %18 : vector<2x1024xf32>
    %20 = arith.truncf %19 : vector<2x1024xf32> to vector<2x1024xbf16>
    %c0_7 = arith.constant 0 : index
    %c0_8 = arith.constant 0 : index
    %21 = vector.load %arg3[%c0_7, %c0_8] : memref<1024x32xbf16, #tpu.memory_space<vmem>>, vector<1024x32xbf16>
    %cst_9 = arith.constant dense<0.000000e+00> : vector<2x32xf32>
    %22 = tpu.matmul %20, %21, %cst_9 {dimension_numbers = #tpu.dot_dimension_numbers<[1], [0], [0], [1], [0, 0, 1, 1], [], []>} : vector<2x1024xbf16>, vector<1024x32xbf16>, vector<2x32xf32> -> vector<2x32xf32>
    %c0_10 = arith.constant 0 : index
    %c0_11 = arith.constant 0 : index
    %23 = vector.load %arg4[%c0_10, %c0_11] : memref<1x32xf32, #tpu.memory_space<vmem>>, vector<1x32xf32>
    %24 = vector.broadcast %23 : vector<1x32xf32> to vector<2x32xf32>
    %25 = arith.addf %22, %24 : vector<2x32xf32>
    %cst_12 = arith.constant 0.000000e+00 : f32
    %26 = vector.broadcast %cst_12 : f32 to vector<2x32xf32>
    %27 = arith.cmpf ogt, %25, %26 : vector<2x32xf32>
    %cst_13 = arith.constant 0.000000e+00 : f32
    %28 = vector.broadcast %cst_13 : f32 to vector<2x32xf32>
    %29 = arith.minimumf %25, %28 : vector<2x32xf32>
    %30 = math.exp %29 : vector<2x32xf32>
    %cst_14 = arith.constant 1.000000e+00 : f32
    %31 = vector.broadcast %cst_14 : f32 to vector<2x32xf32>
    %32 = arith.subf %30, %31 : vector<2x32xf32>
    %33 = arith.select %27, %25, %32 : vector<2x32xi1>, vector<2x32xf32>
    %c0_15 = arith.constant 0 : index
    %c0_16 = arith.constant 0 : index
    %34 = vector.load %arg5[%c0_15, %c0_16] : memref<2x32xf32, #tpu.memory_space<vmem>>, vector<2x32xf32>
    tpu.vector_store %arg5[%c0_15, %c0_16], %33 {strides = array<i32>} : memref<2x32xf32, #tpu.memory_space<vmem>>, vector<2x32xf32>,
    return
  }
  func.func @transform_0(%arg0: i32) -> (i32, i32) {
    %c0_i32 = arith.constant 0 : i32
    %c0_i32_0 = arith.constant 0 : i32
    %c0_i32_1 = arith.constant 0 : i32
    return %c0_i32, %c0_i32_0 : i32, i32
  }
  func.func @transform_1(%arg0: i32) -> (i32, i32) {
    %c0_i32 = arith.constant 0 : i32
    %c0_i32_0 = arith.constant 0 : i32
    %c0_i32_1 = arith.constant 0 : i32
    return %c0_i32, %c0_i32_0 : i32, i32
  }
  func.func @transform_2(%arg0: i32) -> (i32, i32) {
    %c0_i32 = arith.constant 0 : i32
    %c0_i32_0 = arith.constant 0 : i32
    return %c0_i32, %arg0 : i32, i32
  }
  func.func @transform_3(%arg0: i32) -> (i32, i32) {
    %c0_i32 = arith.constant 0 : i32
    %c0_i32_0 = arith.constant 0 : i32
    return %c0_i32, %arg0 : i32, i32
  }
  func.func @transform_4(%arg0: i32) -> (i32, i32) {
    %c0_i32 = arith.constant 0 : i32
    %c0_i32_0 = arith.constant 0 : i32
    return %c0_i32, %arg0 : i32, i32
  }
}

</mosaic_0001>

<bundles_post_ra>
// kernel: operator_encoder_forward.3
= control target key start
LH: loop header
LB: loop body
LE: loop exit
PB: predicated region body
PF: predicated region fallthrough
CT: control target
= control target key end

     0   :  { %vm94_vm0 = vcmask 1043456   ;;  %v981_v2 = vmov 0   ;;  %vm90_vm1 = vcmask 64512   ;;  %vm870_vm2 = vcmask 1044484   ;;  %s1509_s0 = inlined_call_operand.vmem [shape: bf16[8,2048], index: 0, kind: input, shape index: {}]   ;;  %s1510_s2 = inlined_call_operand.vmem [shape: f32[16,1], index: 2, kind: input, shape index: {}]   ;;  %s1511_s1 = inlined_call_operand.vmem [shape: bf16[16,8], index: 1, kind: input, shape index: {}]   ;;  %s1512_s3 = inlined_call_operand.vmem [shape: f32[16,1], index: 3, kind: input, shape index: {}]   ;;  %s1513_s4 = inlined_call_operand.<no memory space> [shape: f32[1,1], index: 4, kind: input, shape index: {}]   ;;  %s1514_s5 = inlined_call_operand.vmem [shape: f32[1,2048], index: 5, kind: output, shape index: {}]  }
   0x1   :  { %v25_v0 = vld [vmem:[%s1509_s0] sm:$0xff]  ;;  %v26_v1 = vld [vmem:[%s1509_s0 + $0x8] sm:$0xff]  ;;  %914 = vset.pattern.permute.xlu0 %v981_v2  ;;  %915 = vset.pattern.permute.xlu1 %v981_v2  ;;  %v28_v7 = vld [vmem:[%s1509_s0 + $0x18] sm:$0xff]  ;;  %v10_v62 = vstv %s1513_s4  ;;  %vm866_vm3 = vcmask 1042434   ;;  %vm864_vm4 = vcmask 1040384   ;;  %vm868_vm5 = vcmask 1041408  }
   0x2   :  { %v58_v3 = vunpack.c.l.b16 %v25_v0  ;;  %v59_v4 = vunpack.c.h.b16 %v25_v0  ;;  %v60_v5 = vunpack.c.l.b16 %v26_v1  ;;  %v61_v6 = vunpack.c.h.b16 %v26_v1  ;;  %v27_v8 = vld [vmem:[%s1509_s0 + $0x10] sm:$0xff]  ;;  %v33_v9 = vld [vmem:[%s1510_s2] sm:$0xff]  ;;  %916 = vset.pattern.permute.xlu2 %v981_v2  ;;  %v30_v22 = vld [vmem:[%s1509_s0 + $0x28] sm:$0xff]  ;;  %11 = vst [vmem:[#allocation2] sm:$0x1] %v10_v62 }
   0x3   :  { %v64_v10 = vunpack.c.l.b16 %v28_v7  ;;  %v65_v11 = vunpack.c.h.b16 %v28_v7  ;;  %v62_v12 = vunpack.c.l.b16 %v27_v8  ;;  %v63_v13 = vunpack.c.h.b16 %v27_v8  ;;  %37 = vperm.xlu0 %914, %v33_v9   ;;  %v29_v23 = vld [vmem:[%s1509_s0 + $0x20] sm:$0xff]  ;;  %v34_v40 = vld [vmem:[%s1510_s2 + $0x8] sm:$0xff]  ;;  %v32_v47 = vld [vmem:[%s1509_s0 + $0x38] sm:$0xff] }
   0x4   :  { %v74_v14 = vpack.c.b16 %v58_v3, %v58_v3  ;;  %v75_v15 = vpack.c.b16 %v59_v4, %v59_v4  ;;  %v76_v16 = vpack.c.b16 %v60_v5, %v60_v5  ;;  %v77_v17 = vpack.c.b16 %v61_v6, %v61_v6  ;;  %v1040_v28 = vld [vmem:[%s1511_s1] sm:$0xff]  ;;  %v31_v48 = vld [vmem:[%s1509_s0 + $0x30] sm:$0xff]  ;;  %v656_v53 = vld [vmem:[%s1512_s3 + $0x8] sm:$0xff] }
   0x5   :  { %v80_v18 = vpack.c.b16 %v64_v10, %v64_v10  ;;  %v81_v19 = vpack.c.b16 %v65_v11, %v65_v11  ;;  %v78_v20 = vpack.c.b16 %v62_v12, %v62_v12  ;;  %v79_v21 = vpack.c.b16 %v63_v13, %v63_v13  ;;  %v655_v45 = vld [vmem:[%s1512_s3] sm:$0xff] }
   0x6   :  { %v96_v24 = vsel %vm94_vm0, %v74_v14, 0  ;;  %v99_v25 = vsel %vm94_vm0, %v75_v15, 0  ;;  %v102_v26 = vsel %vm94_vm0, %v76_v16, 0  ;;  %v105_v27 = vsel %vm94_vm0, %v77_v17, 0  ;;  %659 = vperm.xlu1 %915, %v655_v45  }
   0x7   :  { %150 = vmatpush.bf16.msra.mxu0 %v96_v24  ;;  %164 = vmatpush.bf16.msra.mxu1 %v99_v25  ;;  %v114_v29 = vsel %vm94_vm0, %v80_v18, 0  ;;  %v117_v30 = vsel %vm94_vm0, %v81_v19, 0  ;;  %v68_v31 = vunpack.c.l.b16 %v30_v22  ;;  %v69_v32 = vunpack.c.h.b16 %v30_v22 }
   0x8   :  { %178 = vmatpush.bf16.msra.mxu2 %v102_v26  ;;  %192 = vmatpush.bf16.msra.mxu3 %v105_v27  ;;  %v66_v33 = vunpack.c.l.b16 %v29_v23  ;;  %v67_v34 = vunpack.c.h.b16 %v29_v23  ;;  %v108_v35 = vsel %vm94_vm0, %v78_v20, 0  ;;  %v111_v36 = vsel %vm94_vm0, %v79_v21, 0 }
   0x9   :  { %v84_v37 = vpack.c.b16 %v68_v31, %v68_v31  ;;  %v85_v38 = vpack.c.b16 %v69_v32, %v69_v32  ;;  %v72_v49 = vunpack.c.l.b16 %v32_v47  ;;  %v73_v50 = vunpack.c.h.b16 %v32_v47  ;;  %v811_v63 = vld [vmem:[#allocation2] sm:$0x1] }
   0xa   :  { %896 = vmatmul.msk.bf16.vlgmr.msra.gmra.mxu0 %vm90_vm1, %v1040_v28  ;;  %897 = vmatmul.msk.bf16.vlgmr.msra.gmra.mxu1 %vm90_vm1, %v1040_v28  ;;  %v82_v39 = vpack.c.b16 %v66_v33, %v66_v33  ;;  %v83_v41 = vpack.c.b16 %v67_v34, %v67_v34  ;;  %v70_v51 = vunpack.c.l.b16 %v31_v48  ;;  %v71_v52 = vunpack.c.h.b16 %v31_v48 }
   0xb   :  { %898 = vmatmul.msk.bf16.vlgmr.msra.gmra.mxu2 %vm90_vm1, %v1040_v28  ;;  %899 = vmatmul.msk.bf16.vlgmr.msra.gmra.mxu3 %vm90_vm1, %v1040_v28  ;;  %v126_v42 = vsel %vm94_vm0, %v84_v37, 0  ;;  %v129_v43 = vsel %vm94_vm0, %v85_v38, 0  ;;  %v88_v54 = vpack.c.b16 %v72_v49, %v72_v49  ;;  %v89_v55 = vpack.c.b16 %v73_v50, %v73_v50 }
   0xc   :  { %234 = vmatpush.bf16.msrb.mxu2 %v114_v29  ;;  %248 = vmatpush.bf16.msrb.mxu3 %v117_v30  ;;  %v120_v44 = vsel %vm94_vm0, %v82_v39, 0  ;;  %v123_v46 = vsel %vm94_vm0, %v83_v41, 0  ;;  %v86_v56 = vpack.c.b16 %v70_v51, %v70_v51  ;;  %v87_v57 = vpack.c.b16 %v71_v52, %v71_v52 }
   0xd   :  { %206 = vmatpush.bf16.msrb.mxu0 %v108_v35  ;;  %220 = vmatpush.bf16.msrb.mxu1 %v111_v36  ;;  %v138_v58 = vsel %vm94_vm0, %v88_v54, 0  ;;  %v141_v59 = vsel %vm94_vm0, %v89_v55, 0  ;;  %vm872_vm6 = vcmask 1046534   ;;  %vm874_vm7 = vcmask 1045508  }
   0xe   :  { %42 = vperm.xlu0 %914, %v34_v40   ;;  %664 = vperm.xlu1 %915, %v656_v53   ;;  %v132_v60 = vsel %vm94_vm0, %v86_v56, 0  ;;  %v135_v61 = vsel %vm94_vm0, %v87_v57, 0 }
   0xf   :  { %814 = vperm.xlu2 %916, %v811_v63  }
  0x10   :  { %290 = vmatpush.bf16.msra.mxu2 %v126_v42  ;;  %304 = vmatpush.bf16.msra.mxu3 %v129_v43 }
  0x11   :  { %262 = vmatpush.bf16.msra.mxu0 %v120_v44  ;;  %276 = vmatpush.bf16.msra.mxu1 %v123_v46 }
  0x1a   :  { %900 = vmatmul.msk.bf16.vlgmr.msrb.gmra.mxu0 %vm90_vm1, %v1040_v28  ;;  %901 = vmatmul.msk.bf16.vlgmr.msrb.gmra.mxu1 %vm90_vm1, %v1040_v28 }
  0x1b   :  { %902 = vmatmul.msk.bf16.vlgmr.msrb.gmra.mxu2 %vm90_vm1, %v1040_v28  ;;  %903 = vmatmul.msk.bf16.vlgmr.msrb.gmra.mxu3 %vm90_vm1, %v1040_v28 }
  0x1c   :  { %346 = vmatpush.bf16.msrb.mxu2 %v138_v58  ;;  %360 = vmatpush.bf16.msrb.mxu3 %v141_v59 }
  0x1d   :  { %318 = vmatpush.bf16.msrb.mxu0 %v132_v60  ;;  %332 = vmatpush.bf16.msrb.mxu1 %v135_v61 }
  0x2a   :  { %904 = vmatmul.msk.bf16.vlgmr.msra.gmra.mxu0 %vm90_vm1, %v1040_v28  ;;  %905 = vmatmul.msk.bf16.vlgmr.msra.gmra.mxu1 %vm90_vm1, %v1040_v28 }
  0x2b   :  { %906 = vmatmul.msk.bf16.vlgmr.msra.gmra.mxu2 %vm90_vm1, %v1040_v28  ;;  %907 = vmatmul.msk.bf16.vlgmr.msra.gmra.mxu3 %vm90_vm1, %v1040_v28 }
  0x3a   :  { %908 = vmatmul.msk.bf16.vlgmr.msrb.gmra.mxu0 %vm90_vm1, %v1040_v28  ;;  %909 = vmatmul.msk.bf16.vlgmr.msrb.gmra.mxu1 %vm90_vm1, %v1040_v28 }
  0x3b   :  { %910 = vmatmul.msk.bf16.vlgmr.msrb.gmra.mxu2 %vm90_vm1, %v1040_v28  ;;  %911 = vmatmul.msk.bf16.vlgmr.msrb.gmra.mxu3 %vm90_vm1, %v1040_v28 }
  0x75   :  { %v1104_v0 = vpop.permute.xlu0 %37 }
  0x80   :  { %v1118_v9 = vpop.permute.xlu0 %42 }
  0x87   :  { %v152_v1 = vpop.f32.mrf.mxu0  ;;  %v166_v2 = vpop.f32.mrf.mxu1 }
  0x88   :  { %v1107_v3 = vadd.f32 %v152_v1, %v1104_v0  ;;  %v1110_v4 = vadd.f32 %v166_v2, %v1104_v0 }
  0x8a   :  { %v367_v5 = vmul.f32 %v1107_v3, %v1107_v3  ;;  %v368_v6 = vmul.f32 %v1110_v4, %v1110_v4 }
  0x8c   :  { %v399_v7 = vmul.f32 %v367_v5, %v1107_v3  ;;  %v400_v8 = vmul.f32 %v368_v6, %v1110_v4 }
  0x8e   :  { %v431_v10 = vmul.f32 0.044715, %v399_v7  ;;  %v432_v11 = vmul.f32 0.044715, %v400_v8  ;;  %v180_v12 = vpop.f32.mrf.mxu2  ;;  %v194_v13 = vpop.f32.mrf.mxu3 }
  0x8f   :  { %v1121_v14 = vadd.f32 %v180_v12, %v1104_v0  ;;  %v1124_v15 = vadd.f32 %v194_v13, %v1104_v0  ;;  %v154_v16 = vpop.f32.mrf.mxu0  ;;  %v168_v17 = vpop.f32.mrf.mxu1 }
  0x90   :  { %v463_v18 = vadd.f32 %v431_v10, %v1107_v3  ;;  %v1128_v19 = vadd.f32 %v154_v16, %v1118_v9  ;;  %v1131_v20 = vadd.f32 %v168_v17, %v1118_v9  ;;  %v464_v23 = vadd.f32 %v432_v11, %v1110_v4 }
  0x91   :  { %v369_v21 = vmul.f32 %v1121_v14, %v1121_v14  ;;  %v370_v22 = vmul.f32 %v1124_v15, %v1124_v15 }
  0x92   :  { %v383_v24 = vmul.f32 %v1128_v19, %v1128_v19  ;;  %v384_v25 = vmul.f32 %v1131_v20, %v1131_v20  ;;  %v495_v28 = vmul.f32 0.7978846, %v463_v18  ;;  %v496_v33 = vmul.f32 0.7978846, %v464_v23 }
  0x93   :  { %v401_v26 = vmul.f32 %v369_v21, %v1121_v14  ;;  %v402_v27 = vmul.f32 %v370_v22, %v1124_v15 }
  0x94   :  { %v415_v29 = vmul.f32 %v383_v24, %v1128_v19  ;;  %v416_v30 = vmul.f32 %v384_v25, %v1131_v20  ;;  %917 = vtanh.f32 %v495_v28 }
  0x95   :  { %v433_v31 = vmul.f32 0.044715, %v401_v26  ;;  %v434_v32 = vmul.f32 0.044715, %v402_v27  ;;  %919 = vtanh.f32 %v496_v33 }
  0x96   :  { %v447_v34 = vmul.f32 0.044715, %v415_v29  ;;  %v448_v35 = vmul.f32 0.044715, %v416_v30  ;;  %v182_v36 = vpop.f32.mrf.mxu2  ;;  %v196_v37 = vpop.f32.mrf.mxu3 }
  0x97   :  { %v465_v38 = vadd.f32 %v433_v31, %v1121_v14  ;;  %v466_v39 = vadd.f32 %v434_v32, %v1124_v15  ;;  %v1149_v40 = vadd.f32 %v182_v36, %v1118_v9  ;;  %v1152_v41 = vadd.f32 %v196_v37, %v1118_v9  ;;  %v208_v42 = vpop.f32.mrf.mxu0  ;;  %v222_v43 = vpop.f32.mrf.mxu1 }
  0x98   :  { %v479_v44 = vadd.f32 %v447_v34, %v1128_v19  ;;  %v1156_v45 = vadd.f32 %v208_v42, %v1104_v0  ;;  %v1159_v46 = vadd.f32 %v222_v43, %v1104_v0  ;;  %v480_v52 = vadd.f32 %v448_v35, %v1131_v20 }
  0x99   :  { %v497_v47 = vmul.f32 0.7978846, %v465_v38  ;;  %v498_v48 = vmul.f32 0.7978846, %v466_v39  ;;  %v385_v49 = vmul.f32 %v1149_v40, %v1149_v40  ;;  %v386_v50 = vmul.f32 %v1152_v41, %v1152_v41 }
  0x9a   :  { %v511_v51 = vmul.f32 0.7978846, %v479_v44  ;;  %v371_v53 = vmul.f32 %v1156_v45, %v1156_v45  ;;  %v372_v54 = vmul.f32 %v1159_v46, %v1159_v46  ;;  %v918_v61 = vpop.eup %917  ;;  %v512_v62 = vmul.f32 0.7978846, %v480_v52 }
  0x9b   :  { %v417_v55 = vmul.f32 %v385_v49, %v1149_v40  ;;  %v418_v56 = vmul.f32 %v386_v50, %v1152_v41  ;;  %921 = vtanh.f32 %v497_v47  ;;  %v920_v16 = vpop.eup %919  ;;  %v559_v31 = vadd.f32 1.0, %v918_v61 }
  0x9c   :  { %v403_v57 = vmul.f32 %v371_v53, %v1156_v45  ;;  %v404_v58 = vmul.f32 %v372_v54, %v1159_v46  ;;  %923 = vtanh.f32 %v498_v48  ;;  %v560_v34 = vadd.f32 1.0, %v920_v16 }
  0x9d   :  { %v449_v59 = vmul.f32 0.044715, %v417_v55  ;;  %v450_v60 = vmul.f32 0.044715, %v418_v56  ;;  %925 = vtanh.f32 %v511_v51  ;;  %v591_v52 = vmul.f32 0.5, %v559_v31 }
  0x9e   :  { %v435_v63 = vmul.f32 0.044715, %v403_v57  ;;  %v436_v1 = vmul.f32 0.044715, %v404_v58  ;;  %v236_v2 = vpop.f32.mrf.mxu2  ;;  %v250_v5 = vpop.f32.mrf.mxu3  ;;  %927 = vtanh.f32 %v512_v62  ;;  %v592_v53 = vmul.f32 0.5, %v560_v34 }
  0x9f   :  { %v481_v6 = vadd.f32 %v449_v59, %v1149_v40  ;;  %v482_v7 = vadd.f32 %v450_v60, %v1152_v41  ;;  %v1177_v8 = vadd.f32 %v236_v2, %v1104_v0  ;;  %v210_v10 = vpop.f32.mrf.mxu0  ;;  %v1182_v13 = vadd.f32 %v250_v5, %v1104_v0  ;;  %v224_v23 = vpop.f32.mrf.mxu1 }
  0xa0   :  { %v467_v11 = vadd.f32 %v435_v63, %v1156_v45  ;;  %v468_v12 = vadd.f32 %v436_v1, %v1159_v46  ;;  %v1187_v22 = vadd.f32 %v210_v10, %v1118_v9  ;;  %v1198_v48 = vadd.f32 %v224_v23, %v1118_v9 }
  0xa1   :  { %v513_v17 = vmul.f32 0.7978846, %v481_v6  ;;  %v514_v18 = vmul.f32 0.7978846, %v482_v7  ;;  %v373_v21 = vmul.f32 %v1177_v8, %v1177_v8  ;;  %v922_v24 = vpop.eup %921  ;;  %v374_v26 = vmul.f32 %v1182_v13, %v1182_v13 }
  0xa2   :  { %v499_v25 = vmul.f32 0.7978846, %v467_v11  ;;  %v924_v27 = vpop.eup %923  ;;  %v387_v29 = vmul.f32 %v1187_v22, %v1187_v22  ;;  %v500_v32 = vmul.f32 0.7978846, %v468_v12  ;;  %v561_v35 = vadd.f32 1.0, %v922_v24 }
  0xa3   :  { %929 = vtanh.f32 %v513_v17  ;;  %v405_v28 = vmul.f32 %v373_v21, %v1177_v8  ;;  %v926_v30 = vpop.eup %925  ;;  %v406_v33 = vmul.f32 %v374_v26, %v1182_v13  ;;  %v562_v37 = vadd.f32 1.0, %v924_v27 }
  0xa4   :  { %931 = vtanh.f32 %v514_v18  ;;  %v575_v39 = vadd.f32 1.0, %v926_v30  ;;  %v419_v43 = vmul.f32 %v387_v29, %v1187_v22  ;;  %v928_v44 = vpop.eup %927  ;;  %v593_v54 = vmul.f32 0.5, %v561_v35 }
  0xa5   :  { %933 = vtanh.f32 %v499_v25  ;;  %v437_v36 = vmul.f32 0.044715, %v405_v28  ;;  %v438_v42 = vmul.f32 0.044715, %v406_v33  ;;  %v594_v56 = vmul.f32 0.5, %v562_v37 }
  0xa6   :  { %v238_v38 = vpop.f32.mrf.mxu2  ;;  %935 = vtanh.f32 %v500_v32  ;;  %v252_v50 = vpop.f32.mrf.mxu3  ;;  %v451_v57 = vmul.f32 0.044715, %v419_v43  ;;  %v388_v58 = vmul.f32 %v1198_v48, %v1198_v48  ;;  %v607_v60 = vmul.f32 0.5, %v575_v39 }
  0xa7   :  { %v469_v47 = vadd.f32 %v437_v36, %v1177_v8  ;;  %v1201_v49 = vadd.f32 %v238_v38, %v1118_v9  ;;  %v576_v61 = vadd.f32 1.0, %v928_v44  ;;  %v470_v62 = vadd.f32 %v438_v42, %v1182_v13  ;;  %v264_v1 = vpop.f32.mrf.mxu0  ;;  %v278_v2 = vpop.f32.mrf.mxu1 }
  0xa8   :  { %v1207_v63 = vadd.f32 %v252_v50, %v1118_v9  ;;  %v1212_v10 = vmul.f32 %v591_v52, %v1107_v3  ;;  %v1215_v11 = vmul.f32 %v592_v53, %v1110_v4  ;;  %v1218_v12 = vmul.f32 %v593_v54, %v1121_v14 }
  0xa9   :  { %v930_v51 = vpop.eup %929  ;;  %v501_v6 = vmul.f32 0.7978846, %v469_v47  ;;  %v389_v7 = vmul.f32 %v1201_v49, %v1201_v49  ;;  %v1221_v18 = vmul.f32 %v594_v56, %v1124_v15  ;;  %v483_v23 = vadd.f32 %v451_v57, %v1187_v22 }
  0xaa   :  { %v932_v55 = vpop.eup %931  ;;  %v577_v5 = vadd.f32 1.0, %v930_v51  ;;  %v420_v24 = vmul.f32 %v388_v58, %v1198_v48  ;;  %v1226_v3 = vmul.f32 %v607_v60, %v1128_v19  ;;  %v608_v26 = vmul.f32 0.5, %v576_v61 }
  0xab   :  { %v934_v59 = vpop.eup %933  ;;  %v578_v16 = vadd.f32 1.0, %v932_v55  ;;  %v502_v4 = vmul.f32 0.7978846, %v470_v62  ;;  %v390_v14 = vmul.f32 %v1207_v63, %v1207_v63  ;;  %937 = vtanh.f32 %v501_v6 }
  0xac   :  { %v936_v17 = vpop.eup %935  ;;  %v563_v21 = vadd.f32 1.0, %v934_v59  ;;  %v609_v27 = vmul.f32 0.5, %v577_v5  ;;  %v421_v28 = vmul.f32 %v389_v7, %v1201_v49  ;;  %v1232_v15 = vadd.f32 %v264_v1, %v1104_v0 }
  0xad   :  { %v610_v29 = vmul.f32 0.5, %v578_v16  ;;  %v564_v30 = vadd.f32 1.0, %v936_v17  ;;  %v1235_v31 = vadd.f32 %v278_v2, %v1104_v0  ;;  %v515_v33 = vmul.f32 0.7978846, %v483_v23 }
  0xae   :  { %v292_v25 = vpop.f32.mrf.mxu2  ;;  %v595_v32 = vmul.f32 0.5, %v563_v21  ;;  %v452_v34 = vmul.f32 0.044715, %v420_v24  ;;  %v375_v35 = vmul.f32 %v1232_v15, %v1232_v15  ;;  %v1243_v36 = vmul.f32 %v608_v26, %v1131_v20  ;;  %v306_v42 = vpop.f32.mrf.mxu3 }
  0xaf   :  { %v1238_v19 = vadd.f32 %v292_v25, %v1104_v0  ;;  %v422_v37 = vmul.f32 %v390_v14, %v1207_v63  ;;  %v376_v38 = vmul.f32 %v1235_v31, %v1235_v31  ;;  %v1251_v43 = vmul.f32 %v609_v27, %v1149_v40  ;;  %v266_v53 = vpop.f32.mrf.mxu0  ;;  %v280_v54 = vpop.f32.mrf.mxu1 }
  0xb0   :  { %939 = vtanh.f32 %v502_v4  ;;  %v453_v44 = vmul.f32 0.044715, %v421_v28  ;;  %v407_v47 = vmul.f32 %v375_v35, %v1232_v15  ;;  %v1255_v50 = vmul.f32 %v610_v29, %v1152_v41 }
  0xb1   :  { %v377_v39 = vmul.f32 %v1238_v19, %v1238_v19  ;;  %v596_v20 = vmul.f32 0.5, %v564_v30  ;;  %v408_v51 = vmul.f32 %v376_v38, %v1235_v31  ;;  %v938_v55 = vpop.eup %937  ;;  %v1260_v56 = vmul.f32 %v595_v32, %v1156_v45 }
  0xb2   :  { %941 = vtanh.f32 %v515_v33  ;;  %v484_v40 = vadd.f32 %v452_v34, %v1198_v48  ;;  %v439_v57 = vmul.f32 0.044715, %v407_v47  ;;  %v454_v58 = vmul.f32 0.044715, %v422_v37 }
  0xb3   :  { %v409_v52 = vmul.f32 %v377_v39, %v1238_v19  ;;  %v440_v59 = vmul.f32 0.044715, %v408_v51  ;;  %v1264_v41 = vadd.f32 %v306_v42, %v1104_v0  ;;  %v485_v61 = vadd.f32 %v453_v44, %v1201_v49 }
  0xb4   :  { %v471_v62 = vadd.f32 %v439_v57, %v1232_v15  ;;  %v1269_v1 = vadd.f32 %v266_v53, %v1118_v9  ;;  %v1272_v45 = vadd.f32 %v280_v54, %v1118_v9  ;;  %v565_v5 = vadd.f32 1.0, %v938_v55 }
  0xb5   :  { %v441_v60 = vmul.f32 0.044715, %v409_v52  ;;  %v472_v6 = vadd.f32 %v440_v59, %v1235_v31  ;;  %v378_v16 = vmul.f32 %v1264_v41, %v1264_v41  ;;  %v516_v21 = vmul.f32 0.7978846, %v484_v40 }
  0xb6   :  { %v294_v2 = vpop.f32.mrf.mxu2  ;;  %v940_v17 = vpop.eup %939  ;;  %v503_v23 = vmul.f32 0.7978846, %v471_v62  ;;  %v391_v24 = vmul.f32 %v1269_v1, %v1269_v1  ;;  %v392_v25 = vmul.f32 %v1272_v45, %v1272_v45  ;;  %v517_v29 = vmul.f32 0.7978846, %v485_v61 }
  0xb7   :  { %v473_v7 = vadd.f32 %v441_v60, %v1238_v19  ;;  %v504_v26 = vmul.f32 0.7978846, %v472_v6  ;;  %v410_v14 = vmul.f32 %v378_v16, %v1264_v41  ;;  %v1284_v27 = vadd.f32 %v294_v2, %v1118_v9  ;;  %v308_v37 = vpop.f32.mrf.mxu3  ;;  %v334_v54 = vpop.f32.mrf.mxu1 }
  0xb8   :  { %v942_v28 = vpop.eup %941  ;;  %943 = vtanh.f32 %v503_v23  ;;  %v423_v30 = vmul.f32 %v391_v24, %v1269_v1  ;;  %v424_v32 = vmul.f32 %v392_v25, %v1272_v45  ;;  %v1289_v33 = vmul.f32 %v596_v20, %v1159_v46  ;;  %v320_v46 = vpop.f32.mrf.mxu0 }
  0xb9   :  { %v505_v4 = vmul.f32 0.7978846, %v473_v7  ;;  %v486_v34 = vadd.f32 %v454_v58, %v1207_v63  ;;  %945 = vtanh.f32 %v504_v26  ;;  %v442_v35 = vmul.f32 0.044715, %v410_v14 }
  0xba   :  { %v1292_v38 = vadd.f32 1.0, %v940_v17  ;;  %v455_v39 = vmul.f32 0.044715, %v423_v30  ;;  %v456_v42 = vmul.f32 0.044715, %v424_v32  ;;  %v1294_v44 = vmul.f32 0.5, %v565_v5  ;;  %v1319_v30 = vpop.permute.xlu1 %659 }
  0xbb   :  { %947 = vtanh.f32 %v505_v4  ;;  %v474_v47 = vadd.f32 %v442_v35, %v1264_v41  ;;  %v393_v51 = vmul.f32 %v1284_v27, %v1284_v27  ;;  %v1302_v53 = vadd.f32 %v308_v37, %v1118_v9 }
  0xbc   :  { %949 = vtanh.f32 %v516_v21  ;;  %v487_v20 = vadd.f32 %v455_v39, %v1269_v1  ;;  %v488_v52 = vadd.f32 %v456_v42, %v1272_v45  ;;  %v1304_v55 = vadd.f32 1.0, %v942_v28 }
  0xbd   :  { %951 = vtanh.f32 %v517_v29  ;;  %v518_v40 = vmul.f32 0.7978846, %v486_v34  ;;  %v506_v57 = vmul.f32 0.7978846, %v474_v47  ;;  %v425_v58 = vmul.f32 %v393_v51, %v1284_v27 }
  0xbe   :  { %v944_v59 = vpop.eup %943  ;;  %v519_v60 = vmul.f32 0.7978846, %v487_v20  ;;  %v520_v61 = vmul.f32 0.7978846, %v488_v52  ;;  %v394_v62 = vmul.f32 %v1302_v53, %v1302_v53  ;;  %v1310_v2 = vadd.f32 %v320_v46, %v1104_v0  ;;  %v348_v25 = vpop.f32.mrf.mxu2 }
  0xbf   :  { %v946_v5 = vpop.eup %945  ;;  %v567_v6 = vadd.f32 1.0, %v944_v59  ;;  %953 = vtanh.f32 %v506_v57  ;;  %v457_v7 = vmul.f32 0.044715, %v425_v58  ;;  %v1313_v16 = vadd.f32 %v334_v54, %v1104_v0 }
  0xc0   :  { %v568_v21 = vadd.f32 1.0, %v946_v5  ;;  %955 = vtanh.f32 %v519_v60  ;;  %v426_v23 = vmul.f32 %v394_v62, %v1302_v53  ;;  %v379_v24 = vmul.f32 %v1310_v2, %v1310_v2  ;;  %v362_v5 = vpop.f32.mrf.mxu3 }
  0xc1   :  { %v948_v17 = vpop.eup %947  ;;  %v599_v4 = vmul.f32 0.5, %v567_v6  ;;  %957 = vtanh.f32 %v520_v61  ;;  %v489_v28 = vadd.f32 %v457_v7, %v1284_v27  ;;  %v380_v37 = vmul.f32 %v1313_v16, %v1313_v16 }
  0xc2   :  { %v950_v26 = vpop.eup %949  ;;  %v569_v14 = vadd.f32 1.0, %v948_v17  ;;  %v600_v32 = vmul.f32 0.5, %v568_v21  ;;  %v458_v34 = vmul.f32 0.044715, %v426_v23  ;;  %v411_v35 = vmul.f32 %v379_v24, %v1310_v2  ;;  %v322_v24 = vpop.f32.mrf.mxu0 }
  0xc3   :  { %v952_v29 = vpop.eup %951  ;;  %v631_v39 = vmul.f32 %v599_v4, %v1232_v15  ;;  %v521_v47 = vmul.f32 0.7978846, %v489_v28  ;;  %v1326_v51 = vadd.f32 %v348_v25, %v1104_v0  ;;  %959 = vtanh.f32 %v518_v40 }
  0xc4   :  { %v601_v42 = vmul.f32 0.5, %v569_v14  ;;  %v490_v46 = vadd.f32 %v458_v34, %v1302_v53  ;;  %v443_v20 = vmul.f32 0.044715, %v411_v35  ;;  %v412_v52 = vmul.f32 %v380_v37, %v1313_v16 }
  0xc5   :  { %v954_v54 = vpop.eup %953  ;;  %v1330_v57 = vadd.f32 1.0, %v950_v26  ;;  %v1332_v58 = vadd.f32 1.0, %v952_v29  ;;  %961 = vtanh.f32 %v521_v47  ;;  %v381_v15 = vmul.f32 %v1326_v51, %v1326_v51 }
  0xc6   :  { %v956_v59 = vpop.eup %955  ;;  %v632_v60 = vmul.f32 %v600_v32, %v1235_v31  ;;  %v633_v61 = vmul.f32 %v601_v42, %v1238_v19  ;;  %v522_v40 = vmul.f32 0.7978846, %v490_v46  ;;  %v475_v62 = vadd.f32 %v443_v20, %v1310_v2 }
  0xc7   :  { %v958_v6 = vpop.eup %957  ;;  %v675_v7 = vmul.f32 %v1319_v30, %v631_v39  ;;  %v583_v17 = vadd.f32 1.0, %v956_v59  ;;  %v444_v21 = vmul.f32 0.044715, %v412_v52  ;;  %v413_v23 = vmul.f32 %v381_v15, %v1326_v51  ;;  %v1354_v52 = vpop.permute.xlu1 %664 }
  0xc8   :  { %v570_v25 = vadd.f32 1.0, %v954_v54  ;;  %v584_v26 = vadd.f32 1.0, %v958_v6  ;;  %963 = vtanh.f32 %v522_v40  ;;  %v507_v4 = vmul.f32 0.7978846, %v475_v62 }
  0xc9   :  { %v615_v14 = vmul.f32 0.5, %v583_v17  ;;  %v476_v31 = vadd.f32 %v444_v21, %v1313_v16  ;;  %v445_v19 = vmul.f32 0.044715, %v413_v23  ;;  %v1343_v28 = vadd.f32 %v362_v5, %v1104_v0  ;;  %v960_v29 = vpop.eup %959  ;;  %v336_v0 = vpop.f32.mrf.mxu1 }
  0xca   :  { %v676_v32 = vmul.f32 %v1319_v30, %v632_v60  ;;  %v677_v34 = vmul.f32 %v1319_v30, %v633_v61  ;;  %v616_v35 = vmul.f32 0.5, %v584_v26  ;;  %v1348_v37 = vadd.f32 %v322_v24, %v1118_v9 }
  0xcb   :  { %v962_v39 = vpop.eup %961  ;;  %v647_v42 = vmul.f32 %v615_v14, %v1269_v1  ;;  %v508_v47 = vmul.f32 0.7978846, %v476_v31  ;;  %v477_v46 = vadd.f32 %v445_v19, %v1326_v51  ;;  %v382_v20 = vmul.f32 %v1343_v28, %v1343_v28 }
  0xcc   :  { %v602_v54 = vmul.f32 0.5, %v570_v25  ;;  %v648_v15 = vmul.f32 %v616_v35, %v1272_v45  ;;  %v585_v59 = vadd.f32 1.0, %v962_v39  ;;  %v395_v60 = vmul.f32 %v1348_v37, %v1348_v37 }
  0xcd   :  { %v691_v61 = vmul.f32 %v1354_v52, %v647_v42  ;;  %965 = vtanh.f32 %v507_v4  ;;  %v509_v1 = vmul.f32 0.7978846, %v477_v46  ;;  %v414_v40 = vmul.f32 %v382_v20, %v1343_v28 }
  0xce   :  { %v964_v62 = vpop.eup %963  ;;  %v692_v5 = vmul.f32 %v1354_v52, %v648_v15  ;;  %v617_v6 = vmul.f32 0.5, %v585_v59  ;;  %v427_v17 = vmul.f32 %v395_v60, %v1348_v37  ;;  %v1364_v21 = vadd.f32 %v336_v0, %v1118_v9 }
  0xcf   :  { %v755_v45 = vadd.f32 %v691_v61, %v675_v7  ;;  %v586_v23 = vadd.f32 1.0, %v964_v62  ;;  %967 = vtanh.f32 %v508_v47  ;;  %v446_v24 = vmul.f32 0.044715, %v414_v40 }
  0xd0   :  { %v634_v25 = vmul.f32 %v602_v54, %v1264_v41  ;;  %v762_v26 = vadd.f32 %v692_v5, %v676_v32  ;;  %v649_v4 = vmul.f32 %v617_v6, %v1284_v27  ;;  %v459_v14 = vmul.f32 0.044715, %v427_v17 }
  0xd1   :  { %v756_v31 = vrot.slane %v755_v45, 4  ;;  %v618_v19 = vmul.f32 0.5, %v586_v23  ;;  %969 = vtanh.f32 %v509_v1  ;;  %v396_v35 = vmul.f32 %v1364_v21, %v1364_v21  ;;  %v815_v23 = vpop.permute.xlu2 %814 }
  0xd2   :  { %v763_v39 = vrot.slane %v762_v26, 4  ;;  %v693_v42 = vmul.f32 %v1354_v52, %v649_v4  ;;  %v478_v7 = vadd.f32 %v446_v24, %v1343_v28  ;;  %v491_v47 = vadd.f32 %v459_v14, %v1348_v37 }
  0xd3   :  { %v966_v46 = vpop.eup %965  ;;  %v598_v41 = vmul.f32 0.5, %v1292_v38  ;;  %v611_v32 = vmul.f32 0.5, %v1304_v55  ;;  %v582_v27 = vadd.f32 1.0, %v960_v29  ;;  %v650_v20 = vmul.f32 %v618_v19, %v1302_v53 }
  0xd4   :  { %v612_v0 = vmul.f32 0.5, %v1330_v57  ;;  %v757_v54 = vadd.f32 %v756_v31, %v755_v45  ;;  %v769_v15 = vadd.f32 %v693_v42, %v677_v34  ;;  %v523_v59 = vmul.f32 0.7978846, %v491_v47 }
  0xd5   :  { %v968_v60 = vpop.eup %967  ;;  %v613_v61 = vmul.f32 0.5, %v1332_v58  ;;  %v678_v1 = vmul.f32 %v1319_v30, %v634_v25  ;;  %v694_v40 = vmul.f32 %v1354_v52, %v650_v20  ;;  %v428_v62 = vmul.f32 %v396_v35, %v1364_v21 }
  0xd6   :  { %v764_v38 = vadd.f32 %v763_v39, %v762_v26  ;;  %v770_v5 = vrot.slane %v769_v15, 4  ;;  %v571_v55 = vadd.f32 1.0, %v966_v46  ;;  %v510_v29 = vmul.f32 0.7978846, %v478_v7 }
  0xd7   :  { %v970_v6 = vpop.eup %969  ;;  %v1383_v53 = vmul.f32 %v1294_v44, %v1177_v8  ;;  %v614_v57 = vmul.f32 0.5, %v582_v27  ;;  %v776_v34 = vadd.f32 %v694_v40, %v678_v1  ;;  %971 = vtanh.f32 %v523_v59 }
  0xd8   :  { %v1386_v58 = vmul.f32 %v598_v41, %v1182_v13  ;;  %v758_v17 = vrot.slane %v757_v54, 2  ;;  %v771_v45 = vadd.f32 %v770_v5, %v769_v15  ;;  %v572_v24 = vadd.f32 1.0, %v968_v60  ;;  %v364_v15 = vpop.f32.mrf.mxu3 }
  0xd9   :  { %v643_v25 = vmul.f32 %v611_v32, %v1187_v22  ;;  %v644_v26 = vmul.f32 %v612_v0, %v1198_v48  ;;  %v1391_v4 = vmul.f32 %v613_v61, %v1201_v49  ;;  %v460_v14 = vmul.f32 0.044715, %v428_v62  ;;  %v350_v32 = vpop.f32.mrf.mxu2 }
  0xda   :  { %v765_v8 = vrot.slane %v764_v38, 2  ;;  %v603_v44 = vmul.f32 0.5, %v571_v55  ;;  %v573_v31 = vadd.f32 1.0, %v970_v6  ;;  %973 = vtanh.f32 %v510_v29 }
  0xdb   :  { %v1394_v19 = vmul.f32 %v614_v57, %v1207_v63  ;;  %v777_v13 = vrot.slane %v776_v34, 4  ;;  %v1396_v35 = vperm.slane %v815_v23, 0  ;;  %v492_v39 = vadd.f32 %v460_v14, %v1364_v21 }
  0xdc   :  { %v759_v42 = vadd.f32 %v758_v17, %v757_v54  ;;  %v772_v22 = vrot.slane %v771_v45, 2  ;;  %v604_v7 = vmul.f32 0.5, %v572_v24  ;;  %v671_v48 = vmul.f32 %v1319_v30, %v1260_v56 }
  0xdd   :  { %v972_v49 = vpop.eup %971  ;;  %v524_v47 = vmul.f32 0.7978846, %v492_v39  ;;  %v672_v46 = vmul.f32 %v1319_v30, %v1289_v33  ;;  %v687_v41 = vmul.f32 %v1354_v52, %v643_v25  ;;  %v688_v63 = vmul.f32 %v1354_v52, %v644_v26 }
  0xde   :  { %v766_v27 = vadd.f32 %v765_v8, %v764_v38  ;;  %v635_v20 = vmul.f32 %v603_v44, %v1310_v2  ;;  %v605_v0 = vmul.f32 0.5, %v573_v31  ;;  %v587_v54 = vadd.f32 1.0, %v972_v49 }
  0xdf   :  { %v778_v59 = vadd.f32 %v777_v13, %v776_v34  ;;  %975 = vtanh.f32 %v524_v47  ;;  %v727_v60 = vadd.f32 %v687_v41, %v671_v48  ;;  %v734_v56 = vadd.f32 %v688_v63, %v672_v46 }
  0xe0   :  { %v974_v61 = vpop.eup %973  ;;  %v773_v1 = vadd.f32 %v772_v22, %v771_v45  ;;  %v636_v40 = vmul.f32 %v604_v7, %v1313_v16  ;;  %v619_v33 = vmul.f32 0.5, %v587_v54  ;;  %v1408_v62 = vadd.f32 %v350_v32, %v1118_v9 }
  0xe1   :  { %v760_v5 = vrot.slane %v759_v42, 1  ;;  %v728_v55 = vrot.slane %v727_v60, 4  ;;  %v735_v38 = vrot.slane %v734_v56, 4  ;;  %v1411_v2 = vadd.f32 %v364_v15, %v1118_v9 }
  0xe2   :  { %v767_v29 = vrot.slane %v766_v27, 1  ;;  %v679_v6 = vmul.f32 %v1319_v30, %v635_v20  ;;  %v651_v57 = vmul.f32 %v619_v33, %v1348_v37  ;;  %v397_v34 = vmul.f32 %v1408_v62, %v1408_v62 }
  0xe3   :  { %v779_v17 = vrot.slane %v778_v59, 2  ;;  %v637_v16 = vmul.f32 %v605_v0, %v1326_v51  ;;  %v574_v45 = vadd.f32 1.0, %v974_v61  ;;  %v398_v23 = vmul.f32 %v1411_v2, %v1411_v2 }
  0xe4   :  { %v774_v24 = vrot.slane %v773_v1, 1  ;;  %v680_v25 = vmul.f32 %v1319_v30, %v636_v40  ;;  %v695_v9 = vmul.f32 %v1354_v52, %v651_v57  ;;  %v429_v26 = vmul.f32 %v397_v34, %v1408_v62 }
  0xe5   :  { %v976_v14 = vpop.eup %975  ;;  %v1423_v8 = vadd.f32 %v760_v5, %v759_v42  ;;  %v729_v37 = vadd.f32 %v728_v55, %v727_v60  ;;  %v736_v44 = vadd.f32 %v735_v38, %v734_v56  ;;  %v430_v31 = vmul.f32 %v398_v23, %v1411_v2 }
  0xe6   :  { %v1426_v13 = vadd.f32 %v767_v29, %v766_v27  ;;  %v783_v51 = vadd.f32 %v695_v9, %v679_v6  ;;  %v588_v39 = vadd.f32 1.0, %v976_v14  ;;  %v461_v22 = vmul.f32 0.044715, %v429_v26 }
  0xe7   :  { %v1428_v7 = vadd.f32 %v779_v17, %v778_v59  ;;  %v1431_v48 = vmul.f32 %v1319_v30, %v637_v16  ;;  %v606_v49 = vmul.f32 0.5, %v574_v45  ;;  %v462_v47 = vmul.f32 0.044715, %v430_v31 }
  0xe8   :  { %v1433_v46 = vadd.f32 %v774_v24, %v773_v1  ;;  %v784_v42 = vrot.slane %v783_v51, 4  ;;  %v620_v41 = vmul.f32 0.5, %v588_v39  ;;  %v493_v63 = vadd.f32 %v461_v22, %v1408_v62 }
  0xe9   :  { %v730_v32 = vrot.slane %v729_v37, 2  ;;  %v737_v20 = vrot.slane %v736_v44, 2  ;;  %v494_v27 = vadd.f32 %v462_v47, %v1411_v2  ;;  %v667_v0 = vmul.f32 %v1319_v30, %v1212_v10 }
  0xea   :  { %v652_v54 = vmul.f32 %v620_v41, %v1364_v21  ;;  %v525_v15 = vmul.f32 0.7978846, %v493_v63  ;;  %v683_v59 = vmul.f32 %v1354_v52, %v1226_v3  ;;  %v684_v60 = vmul.f32 %v1354_v52, %v1243_v36 }
  0xeb   :  { %v785_v56 = vadd.f32 %v784_v42, %v783_v51  ;;  %v526_v61 = vmul.f32 0.7978846, %v494_v27  ;;  %v685_v1 = vmul.f32 %v1354_v52, %v1251_v43  ;;  %v686_v40 = vmul.f32 %v1354_v52, %v1255_v50 }
  0xec   :  { %v696_v33 = vmul.f32 %v1354_v52, %v652_v54  ;;  %977 = vtanh.f32 %v525_v15  ;;  %v668_v10 = vmul.f32 %v1319_v30, %v1215_v11  ;;  %v669_v3 = vmul.f32 %v1319_v30, %v1218_v12 }
  0xed   :  { %v731_v21 = vadd.f32 %v730_v32, %v729_v37  ;;  %979 = vtanh.f32 %v526_v61  ;;  %v670_v36 = vmul.f32 %v1319_v30, %v1221_v18  ;;  %v689_v43 = vmul.f32 %v1354_v52, %v1391_v4 }
  0xee   :  { %v738_v5 = vadd.f32 %v737_v20, %v736_v44  ;;  %v790_v55 = vadd.f32 %v696_v33, %v680_v25  ;;  %v699_v50 = vadd.f32 %v683_v59, %v667_v0  ;;  %v706_v38 = vadd.f32 %v684_v60, %v668_v10 }
  0xef   :  { %v786_v29 = vrot.slane %v785_v56, 2  ;;  %v673_v6 = vmul.f32 %v1319_v30, %v1383_v53  ;;  %v713_v11 = vadd.f32 %v685_v1, %v669_v3  ;;  %v720_v57 = vadd.f32 %v686_v40, %v670_v36 }
  0xf0   :  { %v638_v12 = vmul.f32 %v606_v49, %v1343_v28  ;;  %v791_v34 = vrot.slane %v790_v55, 4  ;;  %v700_v17 = vrot.slane %v699_v50, 4  ;;  %v707_v16 = vrot.slane %v706_v38, 4 }
  0xf1   :  { %v732_v45 = vrot.slane %v731_v21, 1  ;;  %v714_v18 = vrot.slane %v713_v11, 4  ;;  %v721_v23 = vrot.slane %v720_v57, 4  ;;  %v741_v24 = vadd.f32 %v689_v43, %v673_v6 }
  0xf2   :  { %v978_v4 = vpop.eup %977  ;;  %v739_v9 = vrot.slane %v738_v5, 1  ;;  %v792_v25 = vadd.f32 %v791_v34, %v790_v55  ;;  %v701_v26 = vadd.f32 %v700_v17, %v699_v50  ;;  %v708_v14 = vadd.f32 %v707_v16, %v706_v38 }
  0xf3   :  { %v980_v37 = vpop.eup %979  ;;  %v787_v44 = vadd.f32 %v786_v29, %v785_v56  ;;  %v589_v31 = vadd.f32 1.0, %v978_v4  ;;  %v715_v53 = vadd.f32 %v714_v18, %v713_v11  ;;  %v722_v51 = vadd.f32 %v721_v23, %v720_v57 }
  0xf4   :  { %v793_v39 = vrot.slane %v792_v25, 2  ;;  %v590_v22 = vadd.f32 1.0, %v980_v37  ;;  %v702_v28 = vrot.slane %v701_v26, 2  ;;  %v742_v49 = vrot.slane %v741_v24, 4 }
  0xf5   :  { %v621_v47 = vmul.f32 0.5, %v589_v31  ;;  %v709_v42 = vrot.slane %v708_v14, 2  ;;  %v716_v41 = vrot.slane %v715_v53, 2  ;;  %v723_v63 = vrot.slane %v722_v51, 2 }
  0xf6   :  { %v781_v32 = vrot.slane %v1428_v7, 1  ;;  %v682_v20 = vmul.f32 %v1319_v30, %v638_v12  ;;  %v794_v27 = vadd.f32 %v793_v39, %v792_v25  ;;  %v622_v0 = vmul.f32 0.5, %v590_v22 }
  0xf7   :  { %v733_v54 = vadd.f32 %v732_v45, %v731_v21  ;;  %v653_v15 = vmul.f32 %v621_v47, %v1408_v62  ;;  %v717_v59 = vadd.f32 %v716_v41, %v715_v53  ;;  %v724_v60 = vadd.f32 %v723_v63, %v722_v51 }
  0xf8   :  { %v788_v56 = vrot.slane %v787_v44, 1  ;;  %v654_v61 = vmul.f32 %v622_v0, %v1411_v2  ;;  %v690_v1 = vmul.f32 %v1354_v52, %v1394_v19  ;;  %v743_v40 = vadd.f32 %v742_v49, %v741_v24 }
  0xf9   :  { %v740_v33 = vadd.f32 %v739_v9, %v738_v5  ;;  %v697_v10 = vmul.f32 %v1354_v52, %v653_v15  ;;  %v703_v3 = vadd.f32 %v702_v28, %v701_v26  ;;  %v710_v36 = vadd.f32 %v709_v42, %v708_v14 }
  0xfa   :  { %v795_v43 = vrot.slane %v794_v27, 1  ;;  %v674_v21 = vmul.f32 %v1319_v30, %v1386_v58  ;;  %v698_v62 = vmul.f32 %v1354_v52, %v654_v61  ;;  %v744_v55 = vrot.slane %v743_v40, 2 }
  0xfb   :  { %v1471_v50 = vadd.f32 %v1396_v35, %v733_v54  ;;  %v797_v2 = vadd.f32 %v697_v10, %v1431_v48  ;;  %v718_v38 = vrot.slane %v717_v59, 1  ;;  %v725_v19 = vrot.slane %v724_v60, 1 }
  0xfc   :  { %v789_v29 = vadd.f32 %v788_v56, %v787_v44  ;;  %v745_v5 = vadd.f32 %v744_v55, %v743_v40  ;;  %v748_v6 = vadd.f32 %v690_v1, %v674_v21  ;;  %v804_v11 = vadd.f32 %v698_v62, %v682_v20 }
  0xfd   :  { %v1475_v57 = vadd.f32 %v1396_v35, %v740_v33  ;;  %v798_v12 = vrot.slane %v797_v2, 4  ;;  %v704_v34 = vrot.slane %v703_v3, 1  ;;  %v711_v30 = vrot.slane %v710_v36, 1 }
  0xfe   :  { %v796_v58 = vadd.f32 %v795_v43, %v794_v27  ;;  %v746_v52 = vrot.slane %v745_v5, 1  ;;  %v749_v17 = vrot.slane %v748_v6, 4  ;;  %v805_v16 = vrot.slane %v804_v11, 4 }
  0xff   :  { %v782_v45 = vadd.f32 %v781_v32, %v1428_v7  ;;  %v799_v18 = vadd.f32 %v798_v12, %v797_v2  ;;  %v719_v48 = vadd.f32 %v718_v38, %v717_v59  ;;  %v726_v23 = vadd.f32 %v725_v19, %v724_v60 }
 0x100   :  { %v830_v24 = vadd.f32 %v1396_v35, %v789_v29  ;;  %v853_v4 = vrot.slane %v1471_v50, 4  ;;  %v750_v9 = vadd.f32 %v749_v17, %v748_v6  ;;  %v806_v25 = vadd.f32 %v805_v16, %v804_v11 }
 0x101   :  { %v854_v26 = vrot.slane %v1475_v57, 3  ;;  %v800_v14 = vrot.slane %v799_v18, 2  ;;  %v705_v37 = vadd.f32 %v704_v34, %v703_v3  ;;  %v712_v44 = vadd.f32 %v711_v30, %v710_v36 }
 0x102   :  { %v831_v31 = vadd.f32 %v1396_v35, %v796_v58  ;;  %v747_v53 = vadd.f32 %v746_v52, %v745_v5  ;;  %v751_v51 = vrot.slane %v750_v9, 2  ;;  %v807_v7 = vrot.slane %v806_v25, 2 }
 0x103   :  { %v801_v39 = vadd.f32 %v800_v14, %v799_v18  ;;  %v820_v22 = vadd.f32 %v1396_v35, %v719_v48  ;;  %v821_v28 = vadd.f32 %v1396_v35, %v726_v23  ;;  %v828_v49 = vadd.f32 %v1396_v35, %v1433_v46 }
 0x104   :  { %v860_v47 = vrot.slane %v830_v24, 4  ;;  %v752_v42 = vadd.f32 %v751_v51, %v750_v9  ;;  %v808_v41 = vadd.f32 %v807_v7, %v806_v25  ;;  %v829_v63 = vadd.f32 %v1396_v35, %v782_v45 }
 0x105   :  { %v802_v32 = vrot.slane %v801_v39, 1  ;;  %v818_v20 = vadd.f32 %v1396_v35, %v705_v37  ;;  %v819_v27 = vadd.f32 %v1396_v35, %v712_v44  ;;  %v827_v0 = vadd.f32 %v1396_v35, %v1426_v13 }
 0x106   :  { %v861_v54 = vrot.slane %v831_v31, 3  ;;  %v753_v15 = vrot.slane %v752_v42, 1  ;;  %v809_v59 = vrot.slane %v808_v41, 1  ;;  %v824_v60 = vadd.f32 %v1396_v35, %v747_v53 }
 0x107   :  { %v803_v56 = vadd.f32 %v802_v32, %v801_v39  ;;  %v851_v46 = vrot.slane %v820_v22, 6  ;;  %v852_v61 = vrot.slane %v821_v28, 5  ;;  %v858_v1 = vrot.slane %v828_v49, 6 }
 0x108   :  { %v754_v40 = vadd.f32 %v753_v15, %v752_v42  ;;  %v810_v33 = vadd.f32 %v809_v59, %v808_v41  ;;  %v859_v10 = vrot.slane %v829_v63, 5  ;;  %v826_v36 = vadd.f32 %v1396_v35, %v1423_v8 }
 0x109   :  { %v832_v3 = vadd.f32 %v1396_v35, %v803_v56  ;;  %v850_v43 = vrot.slane %v819_v27, 7  ;;  %v857_v13 = vrot.slane %v827_v0, 7  ;;  %v855_v55 = vrot.slane %v824_v60, 2 }
 0x10a   :  { %v825_v21 = vadd.f32 %v1396_v35, %v754_v40  ;;  %v833_v62 = vadd.f32 %v1396_v35, %v810_v33  ;;  %v867_v2 = vsel %vm866_vm3, %v851_v46, %v852_v61  ;;  %v878_v29 = vsel %vm866_vm3, %v858_v1, %v859_v10 }
 0x10b   :  { %v862_v50 = vrot.slane %v832_v3, 2  ;;  %v871_v8 = vsel %vm870_vm2, %v853_v4, %v854_v26  ;;  %v880_v5 = vsel %vm870_vm2, %v860_v47, %v861_v54  ;;  %v865_v6 = vsel %vm864_vm4, %v818_v20, %v850_v43 }
 0x10c   :  { %v856_v38 = vrot.slane %v825_v21, 1  ;;  %v863_v19 = vrot.slane %v833_v62, 1  ;;  %v877_v57 = vsel %vm864_vm4, %v826_v36, %v857_v13  ;;  %v869_v12 = vsel %vm868_vm5, %v865_v6, %v867_v2 }
 0x10d   :  { %v879_v30 = vsel %vm868_vm5, %v877_v57, %v878_v29 }
 0x10e   :  { %v873_v11 = vsel %vm872_vm6, %v855_v55, %v856_v38  ;;  %v881_v35 = vsel %vm872_vm6, %v862_v50, %v863_v19 }
 0x10f   :  { %v875_v34 = vsel %vm874_vm7, %v871_v8, %v873_v11  ;;  %v882_v58 = vsel %vm874_vm7, %v880_v5, %v881_v35 }
 0x110   :  { %v876_v52 = vsel %vm94_vm0, %v869_v12, %v875_v34  ;;  %v883_v17 = vsel %vm94_vm0, %v879_v30, %v882_v58 }
 0x111   :  { %886 = vst [vmem:[%s1514_s5] sm:$0xff] %v876_v52 }
 0x112   :  { %887 = vst [vmem:[%s1514_s5 + $0x8] sm:$0xff] %v883_v17 }

// kernel: reverse.9
= control target key start
LH: loop header
LB: loop body
LE: loop exit
PB: predicated region body
PF: predicated region fallthrough
CT: control target
= control target key end

     0   :  { %v57_v4 = vlaneseq  ;;  %v63_v5 = vld [vmem:[#allocation0 + $0x7] ss:$-1 sm:$0xff]  ;;  %v91_v6 = vld [vmem:[#allocation0 + $0x1f] ss:$-1 sm:$0xff]  ;;  %s200_s0 = inlined_call_operand.vmem [shape: f32[2,1,32,15], index: 0, kind: input, shape index: {}]   ;;  %s201_s1 = inlined_call_operand.vmem [shape: f32[2,1,32,15], index: 1, kind: output, shape index: {}]  }
   0x1   :  { %v37_v0 = vld [vmem:[%s200_s0] sm:$0xff]  ;;  %v39_v1 = vld [vmem:[%s200_s0 + $0x8] sm:$0xff]  ;;  %v41_v2 = vld [vmem:[%s200_s0 + $0x10] sm:$0xff]  ;;  %v64_v7 = vrot.slane %v63_v5, 1  ;;  %v92_v8 = vrot.slane %v91_v6, 1 }
   0x2   :  { %38 = vst [vmem:[#allocation0 + $0x8] sm:$0xff] %v37_v0  ;;  %v43_v3 = vld [vmem:[%s200_s0 + $0x18] sm:$0xff]  ;;  %v58_v9 = vshrl.u32 %v57_v4, 7 }
   0x3   :  { %40 = vst [vmem:[#allocation0 + $0x10] sm:$0xff] %v39_v1 }
   0x4   :  { %42 = vst [vmem:[#allocation0 + $0x20] sm:$0xff] %v41_v2  ;;  %vm59_vm0 = vcmp.lt.s32.totalorder %v58_v9, 7 }
   0x5   :  { %44 = vst [vmem:[#allocation0 + $0x28] sm:$0xff] %v43_v3 }
   0x6   :  { %65 = vst [vmem:[#allocation1 + $0x8] sm:$0xff] %v64_v7 }
   0x7   :  { %93 = vst [vmem:[#allocation1 + $0x18] sm:$0xff] %v92_v8 }
   0x9   :  { %v50_v10 = vld [vmem:[#allocation0 + $0xf] ss:$-1 sm:$0xff] }
   0xa   :  { %v68_v11 = vld [vmem:[#allocation0 + $0xf] ss:$-1 sm:$0xff]  ;;  %v51_v12 = vrot.slane %v50_v10, 1  ;;  %v55_v13 = vld [vmem:[#allocation0 + $0x17] ss:$-1 sm:$0xff] }
   0xb   :  { %v69_v14 = vrot.slane %v68_v11, 1  ;;  %v56_v15 = vrot.slane %v55_v13, 1  ;;  %v78_v16 = vld [vmem:[#allocation0 + $0x27] ss:$-1 sm:$0xff] }
   0xc   :  { %v96_v17 = vld [vmem:[#allocation0 + $0x27] ss:$-1 sm:$0xff]  ;;  %52 = vst [vmem:[#allocation1] sm:$0xff] %v51_v12  ;;  %v79_v18 = vrot.slane %v78_v16, 1  ;;  %v83_v19 = vld [vmem:[#allocation0 + $0x2f] ss:$-1 sm:$0xff] }
   0xd   :  { %60 = vst.msk [vmem:[#allocation1] sm:$0xff] %vm59_vm0, %v56_v15  ;;  %v84_v20 = vrot.slane %v83_v19, 1  ;;  %v97_v21 = vrot.slane %v96_v17, 1 }
   0xe   :  { %73 = vst.msk [vmem:[#allocation1 + $0x8] sm:$0xff] %vm59_vm0, %v69_v14 }
   0xf   :  { %80 = vst [vmem:[#allocation1 + $0x10] sm:$0xff] %v79_v18 }
  0x10   :  { %88 = vst.msk [vmem:[#allocation1 + $0x10] sm:$0xff] %vm59_vm0, %v84_v20 }
  0x11   :  { %101 = vst.msk [vmem:[#allocation1 + $0x18] sm:$0xff] %vm59_vm0, %v97_v21 }
  0x14   :  { %v136_v22 = vld [vmem:[#allocation1] sm:$0xff] }
  0x15   :  { %137 = vst [vmem:[%s201_s1] sm:$0xff] %v136_v22  ;;  %v138_v23 = vld [vmem:[#allocation1 + $0x8] sm:$0xff] }
  0x16   :  { %139 = vst [vmem:[%s201_s1 + $0x8] sm:$0xff] %v138_v23 }
  0x17   :  { %v140_v24 = vld [vmem:[#allocation1 + $0x10] sm:$0xff] }
  0x18   :  { %141 = vst [vmem:[%s201_s1 + $0x10] sm:$0xff] %v140_v24  ;;  %v142_v25 = vld [vmem:[#allocation1 + $0x18] sm:$0xff] }
  0x19   :  { %143 = vst [vmem:[%s201_s1 + $0x18] sm:$0xff] %v142_v25 }

// kernel: operator_encoder_forward.4
= control target key start
LH: loop header
LB: loop body
LE: loop exit
PB: predicated region body
PF: predicated region fallthrough
CT: control target
= control target key end

     0   :  { %11 = vsyncpa [#allocation4], 0  ;;  %s1200_s0 = inlined_call_operand.vmem [shape: f32[8,256], index: 0, kind: input, shape index: {}]   ;;  %s1201_s1 = inlined_call_operand.vmem [shape: f32[16], index: 1, kind: input, shape index: {}]   ;;  %s1202_s2 = inlined_call_operand.vmem [shape: f32[16], index: 2, kind: input, shape index: {}]   ;;  %s1203_s3 = inlined_call_operand.vmem [shape: f32[16], index: 3, kind: input, shape index: {}]   ;;  %s1204_s4 = inlined_call_operand.<no memory space> [shape: f32[1], index: 4, kind: input, shape index: {}]   ;;  %s1205_s5 = inlined_call_operand.vmem [shape: f32[8,256], index: 5, kind: output, shape index: {}]  }
   0x1   :  { %12 = vsyncpa [#allocation6], 0  ;;  %s29_s20 = sshll.u32 %s1202_s2, 4  ;;  %s20_s23 = sshll.u32 %s1201_s1, 4  ;;  %s30_s20 = int_to_ptr.vmem [resolvable:$true] %s29_s20  ;;  %s21_s23 = int_to_ptr.vmem [resolvable:$true] %s20_s23 }
   0x2   :  { %s734_s24 = smov [#allocation5]   ;;  %s735_s25 = smov [#allocation3]  }
   0x3   :  { %32 = dma.vmem_to_smem %s30_s20, 16, %s734_s24, [#allocation6]  }
   0x4   :  { %23 = dma.vmem_to_smem %s21_s23, 16, %s735_s25, [#allocation4]  }
   0x5   :  { %s38_s28 = sshll.u32 %s1203_s3, 4  ;;  %s736_s29 = smov [#allocation7]   ;;  %s39_s28 = int_to_ptr.vmem [resolvable:$true] %s38_s28 }
   0x6   :  { %41 = dma.vmem_to_smem %s39_s28, 16, %s736_s29, [#allocation6]  }
   0x7   :  { %730 = dma.done.wait [#allocation4], 16  }
   0x8   :  { %731 = vsyncadd [#allocation4], 4294967280 }
   0x9   :  { %732 = dma.done.wait [#allocation6], 32  }
   0xa   :  { %733 = vsyncadd [#allocation6], 4294967264 }
   0xb   :  { %56 = sfence }
   0xc   :  { %s62_s2 = sld [smem:[#allocation3]]  ;;  %v779_v0 = vld [vmem:[%s1200_s0] sm:$0xff]  ;;  %v784_v1 = vld [vmem:[%s1200_s0 + $0x8] sm:$0xff] }
   0xd   :  { %s66_s30 = sld [smem:[#allocation5]] }
   0xe   :  { %s582_s1 = sld [smem:[#allocation3 + $0x1]] }
   0xf   :  { %s583_s3 = sld [smem:[#allocation5 + $0x1]] }
  0x10   :  { %s585_s10 = sld [smem:[#allocation3 + $0x2]] }
  0x11   :  { %s586_s11 = sld [smem:[#allocation5 + $0x2]] }
  0x12   :  { %v63_v2 = vstv %s62_s2  ;;  %s792_s12 = sld [smem:[#allocation3 + $0x3]] }
  0x13   :  { %v64_v3 = vmul.f32 %v63_v2, %v779_v0  ;;  %v65_v4 = vmul.f32 %v63_v2, %v784_v1  ;;  %v67_v5 = vstv %s66_s30  ;;  %s796_s0 = sld [smem:[#allocation5 + $0x3]] }
  0x14   :  { %v95_v8 = vstv %s582_s1  ;;  %s818_s13 = sld [smem:[#allocation3 + $0x4]] }
  0x15   :  { %v788_v6 = vadd.f32 %v67_v5, %v64_v3  ;;  %v790_v7 = vadd.f32 %v67_v5, %v65_v4  ;;  %v96_v9 = vmul.f32 %v95_v8, %v779_v0  ;;  %v97_v10 = vmul.f32 %v95_v8, %v784_v1  ;;  %s832_s14 = sld [smem:[#allocation5 + $0x4]] }
  0x16   :  { %v99_v11 = vstv %s583_s3  ;;  %v127_v16 = vstv %s585_s10  ;;  %s842_s15 = sld [smem:[#allocation3 + $0x5]] }
  0x17   :  { %v71_v12 = vmul.f32 %v788_v6, %v788_v6  ;;  %v72_v13 = vmul.f32 %v790_v7, %v790_v7  ;;  %v802_v14 = vadd.f32 %v99_v11, %v96_v9  ;;  %v804_v15 = vadd.f32 %v99_v11, %v97_v10  ;;  %s844_s16 = sld [smem:[#allocation7]] }
  0x18   :  { %v128_v19 = vmul.f32 %v127_v16, %v779_v0  ;;  %v129_v20 = vmul.f32 %v127_v16, %v784_v1  ;;  %v131_v23 = vstv %s586_s11  ;;  %v159_v30 = vstv %s792_s12  ;;  %s857_s17 = sld [smem:[#allocation7 + $0x1]] }
  0x19   :  { %v73_v17 = vmul.f32 %v71_v12, %v788_v6  ;;  %v74_v18 = vmul.f32 %v72_v13, %v790_v7  ;;  %v103_v21 = vmul.f32 %v802_v14, %v802_v14  ;;  %v104_v22 = vmul.f32 %v804_v15, %v804_v15  ;;  %s864_s18 = sld [smem:[#allocation5 + $0x5]] }
  0x1a   :  { %v814_v26 = vadd.f32 %v131_v23, %v128_v19  ;;  %v816_v27 = vadd.f32 %v131_v23, %v129_v20  ;;  %v163_v31 = vstv %s796_s0  ;;  %v160_v38 = vmul.f32 %v159_v30, %v779_v0  ;;  %s880_s21 = sld [smem:[#allocation7 + $0x2]] }
  0x1b   :  { %v75_v24 = vmul.f32 0.044715, %v73_v17  ;;  %v76_v25 = vmul.f32 0.044715, %v74_v18  ;;  %v105_v28 = vmul.f32 %v103_v21, %v802_v14  ;;  %v106_v29 = vmul.f32 %v104_v22, %v804_v15  ;;  %s891_s22 = sld [smem:[#allocation5 + $0x6]] }
  0x1c   :  { %v135_v34 = vmul.f32 %v814_v26, %v814_v26  ;;  %v136_v35 = vmul.f32 %v816_v27, %v816_v27  ;;  %v161_v39 = vmul.f32 %v159_v30, %v784_v1  ;;  %v838_v46 = vadd.f32 %v163_v31, %v160_v38  ;;  %s895_s23 = sld [smem:[#allocation7 + $0x3]] }
  0x1d   :  { %v77_v32 = vadd.f32 %v75_v24, %v788_v6  ;;  %v78_v33 = vadd.f32 %v76_v25, %v790_v7  ;;  %v107_v36 = vmul.f32 0.044715, %v105_v28  ;;  %v108_v37 = vmul.f32 0.044715, %v106_v29  ;;  %s899_s24 = sld [smem:[#allocation7 + $0x4]] }
  0x1e   :  { %v137_v42 = vmul.f32 %v135_v34, %v814_v26  ;;  %v138_v43 = vmul.f32 %v136_v35, %v816_v27  ;;  %v840_v47 = vadd.f32 %v163_v31, %v161_v39  ;;  %v167_v52 = vmul.f32 %v838_v46, %v838_v46  ;;  %s907_s25 = sld [smem:[#allocation3 + $0x7]] }
  0x1f   :  { %v79_v40 = vmul.f32 0.7978846, %v77_v32  ;;  %v80_v41 = vmul.f32 0.7978846, %v78_v33  ;;  %v109_v44 = vadd.f32 %v107_v36, %v802_v14  ;;  %v110_v45 = vadd.f32 %v108_v37, %v804_v15  ;;  %s917_s26 = sld [smem:[#allocation5 + $0x7]] }
  0x20   :  { %v139_v48 = vmul.f32 0.044715, %v137_v42  ;;  %v140_v49 = vmul.f32 0.044715, %v138_v43  ;;  %v168_v55 = vmul.f32 %v840_v47, %v840_v47  ;;  %v191_v56 = vstv %s818_s13  ;;  %s927_s27 = sld [smem:[#allocation3 + $0x8]] }
  0x21   :  { %630 = vtanh.f32 %v79_v40  ;;  %v111_v50 = vmul.f32 0.7978846, %v109_v44  ;;  %v112_v51 = vmul.f32 0.7978846, %v110_v45  ;;  %v169_v57 = vmul.f32 %v167_v52, %v838_v46  ;;  %s937_s28 = sld [smem:[#allocation5 + $0x8]] }
  0x22   :  { %632 = vtanh.f32 %v80_v41  ;;  %v141_v53 = vadd.f32 %v139_v48, %v814_v26  ;;  %v142_v54 = vadd.f32 %v140_v49, %v816_v27  ;;  %v192_v58 = vmul.f32 %v191_v56, %v779_v0  ;;  %s944_s29 = sld [smem:[#allocation3 + $0x9]] }
  0x23   :  { %634 = vtanh.f32 %v111_v50  ;;  %v193_v59 = vmul.f32 %v191_v56, %v784_v1  ;;  %v170_v62 = vmul.f32 %v168_v55, %v840_v47  ;;  %v171_v63 = vmul.f32 0.044715, %v169_v57  ;;  %s963_s2 = sld [smem:[#allocation5 + $0x9]] }
  0x24   :  { %636 = vtanh.f32 %v112_v51  ;;  %v143_v60 = vmul.f32 0.7978846, %v141_v53  ;;  %v144_v61 = vmul.f32 0.7978846, %v142_v54  ;;  %v195_v2 = vstv %s832_s14  ;;  %s965_s30 = sld [smem:[#allocation7 + $0x5]] }
  0x25   :  { %v172_v4 = vmul.f32 0.044715, %v170_v62  ;;  %v860_v5 = vadd.f32 %v195_v2, %v192_v58  ;;  %v862_v8 = vadd.f32 %v195_v2, %v193_v59  ;;  %v173_v11 = vadd.f32 %v171_v63, %v838_v46  ;;  %s983_s1 = sld [smem:[#allocation3 + $0xa]] }
  0x26   :  { %638 = vtanh.f32 %v143_v60  ;;  %v223_v12 = vstv %s842_s15  ;;  %v60_v20 = vstv %s1204_s4  ;;  %v89_v22 = vstv %s844_s16  ;;  %s884_s4 = sld [smem:[#allocation3 + $0x6]] }
  0x27   :  { %v631_v3 = vpop.eup %630  ;;  %640 = vtanh.f32 %v144_v61  ;;  %v174_v16 = vadd.f32 %v172_v4, %v840_v47  ;;  %v199_v17 = vmul.f32 %v860_v5, %v860_v5  ;;  %v200_v18 = vmul.f32 %v862_v8, %v862_v8  ;;  %s994_s6 = sld [smem:[#allocation5 + $0xa]] }
  0x28   :  { %v633_v9 = vpop.eup %632  ;;  %v83_v10 = vadd.f32 1.0, %v631_v3  ;;  %v175_v23 = vmul.f32 0.7978846, %v173_v11  ;;  %v224_v30 = vmul.f32 %v223_v12, %v779_v0  ;;  %v121_v44 = vstv %s857_s17  ;;  %s1007_s7 = sld [smem:[#allocation7 + $0x6]] }
  0x29   :  { %v84_v13 = vadd.f32 1.0, %v633_v9  ;;  %v635_v19 = vpop.eup %634  ;;  %v201_v29 = vmul.f32 %v199_v17, %v860_v5  ;;  %v176_v33 = vmul.f32 0.7978846, %v174_v16  ;;  %v202_v34 = vmul.f32 %v200_v18, %v862_v8  ;;  %s1016_s8 = sld [smem:[#allocation3 + $0xb]] }
  0x2a   :  { %v85_v21 = vmul.f32 0.5, %v83_v10  ;;  %v637_v24 = vpop.eup %636  ;;  %v115_v28 = vadd.f32 1.0, %v635_v19  ;;  %642 = vtanh.f32 %v175_v23  ;;  %v227_v48 = vstv %s864_s18  ;;  %s1025_s9 = sld [smem:[#allocation5 + $0xb]] }
  0x2b   :  { %v86_v25 = vmul.f32 0.5, %v84_v13  ;;  %v116_v32 = vadd.f32 1.0, %v637_v24  ;;  %v203_v38 = vmul.f32 0.044715, %v201_v29  ;;  %v204_v43 = vmul.f32 0.044715, %v202_v34 }
  0x2c   :  { %v87_v31 = vmul.f32 %v85_v21, %v788_v6  ;;  %v639_v35 = vpop.eup %638  ;;  %v117_v37 = vmul.f32 0.5, %v115_v28  ;;  %644 = vtanh.f32 %v176_v33  ;;  %v153_v58 = vstv %s880_s21  ;;  %s1034_s3 = sld [smem:[#allocation7 + $0x7]] }
  0x2d   :  { %v88_v36 = vmul.f32 %v86_v25, %v790_v7  ;;  %v641_v39 = vpop.eup %640  ;;  %v118_v41 = vmul.f32 0.5, %v116_v32  ;;  %v147_v42 = vadd.f32 1.0, %v639_v35  ;;  %v205_v49 = vadd.f32 %v203_v38, %v860_v5  ;;  %s1042_s10 = sld [smem:[#allocation3 + $0xc]] }
  0x2e   :  { %v90_v40 = vmul.f32 %v89_v22, %v87_v31  ;;  %v119_v6 = vmul.f32 %v117_v37, %v802_v14  ;;  %v148_v45 = vadd.f32 1.0, %v641_v39  ;;  %v225_v7 = vmul.f32 %v223_v12, %v784_v1  ;;  %s1045_s11 = sld [smem:[#allocation7 + $0x8]] }
  0x2f   :  { %v91_v50 = vmul.f32 %v89_v22, %v88_v36  ;;  %v149_v51 = vmul.f32 0.5, %v147_v42  ;;  %v206_v52 = vadd.f32 %v204_v43, %v862_v8  ;;  %v120_v54 = vmul.f32 %v118_v41, %v804_v15  ;;  %s1052_s12 = sld [smem:[#allocation5 + $0xc]] }
  0x30   :  { %v92_v53 = vadd.f32 %v90_v40, %v60_v20  ;;  %v122_v55 = vmul.f32 %v121_v44, %v119_v6  ;;  %v897_v14 = vadd.f32 %v227_v48, %v224_v30  ;;  %v643_v56 = vpop.eup %642  ;;  %v150_v57 = vmul.f32 0.5, %v148_v45  ;;  %s1061_s0 = sld [smem:[#allocation3 + $0xd]] }
  0x31   :  { %v207_v59 = vmul.f32 0.7978846, %v205_v49  ;;  %v151_v60 = vmul.f32 %v149_v51, %v814_v26  ;;  %v208_v61 = vmul.f32 0.7978846, %v206_v52  ;;  %v903_v62 = vadd.f32 %v227_v48, %v225_v7  ;;  %s1065_s13 = sld [smem:[#allocation7 + $0x9]] }
  0x32   :  { %v231_v15 = vmul.f32 %v897_v14, %v897_v14  ;;  %v93_v63 = vadd.f32 %v91_v50, %v60_v20  ;;  %v123_v2 = vmul.f32 %v121_v44, %v120_v54  ;;  %v124_v3 = vadd.f32 %v122_v55, %v92_v53  ;;  %v645_v9 = vpop.eup %644  ;;  %s1069_s14 = sld [smem:[#allocation7 + $0xa]] }
  0x33   :  { %v255_v4 = vstv %s884_s4  ;;  %v152_v10 = vmul.f32 %v150_v57, %v816_v27  ;;  %v179_v11 = vadd.f32 1.0, %v643_v56  ;;  %v232_v26 = vmul.f32 %v903_v62, %v903_v62  ;;  %s1079_s15 = sld [smem:[#allocation5 + $0xd]] }
  0x34   :  { %v233_v12 = vmul.f32 %v231_v15, %v897_v14  ;;  %646 = vtanh.f32 %v207_v59  ;;  %v256_v13 = vmul.f32 %v255_v4, %v779_v0  ;;  %v257_v16 = vmul.f32 %v255_v4, %v784_v1  ;;  %s1086_s16 = sld [smem:[#allocation3 + $0xe]] }
  0x35   :  { %v259_v17 = vstv %s891_s22  ;;  %v154_v18 = vmul.f32 %v153_v58, %v151_v60  ;;  %648 = vtanh.f32 %v208_v61  ;;  %v234_v19 = vmul.f32 %v232_v26, %v903_v62  ;;  %s1096_s17 = sld [smem:[#allocation5 + $0xe]] }
  0x36   :  { %v235_v27 = vmul.f32 0.044715, %v233_v12  ;;  %v180_v20 = vadd.f32 1.0, %v645_v9  ;;  %v185_v21 = vstv %s895_s23  ;;  %v921_v22 = vadd.f32 %v259_v17, %v256_v13  ;;  %s1099_s18 = sld [smem:[#allocation7 + $0xb]] }
  0x37   :  { %v923_v23 = vadd.f32 %v259_v17, %v257_v16  ;;  %v181_v24 = vmul.f32 0.5, %v179_v11  ;;  %v217_v25 = vstv %s899_s24  ;;  %v236_v28 = vmul.f32 0.044715, %v234_v19  ;;  %s1112_s19 = sld [smem:[#allocation3 + $0xf]] }
  0x38   :  { %v237_v29 = vadd.f32 %v235_v27, %v897_v14  ;;  %v125_v30 = vadd.f32 %v123_v2, %v93_v63  ;;  %v155_v31 = vmul.f32 %v153_v58, %v152_v10  ;;  %v263_v32 = vmul.f32 %v921_v22, %v921_v22  ;;  %s1125_s20 = sld [smem:[#allocation5 + $0xf]] }
  0x39   :  { %v264_v33 = vmul.f32 %v923_v23, %v923_v23  ;;  %v933_v34 = vadd.f32 %v154_v18, %v124_v3  ;;  %v238_v35 = vadd.f32 %v236_v28, %v903_v62  ;;  %v287_v37 = vstv %s907_s25  ;;  %s1150_s21 = sld [smem:[#allocation7 + $0xc]] }
  0x3a   :  { %v239_v36 = vmul.f32 0.7978846, %v237_v29  ;;  %v647_v38 = vpop.eup %646  ;;  %v182_v39 = vmul.f32 0.5, %v180_v20  ;;  %v265_v40 = vmul.f32 %v263_v32, %v921_v22  ;;  %v288_v42 = vmul.f32 %v287_v37, %v779_v0  ;;  %s1164_s4 = sld [smem:[#allocation7 + $0xd]] }
  0x3b   :  { %v266_v41 = vmul.f32 %v264_v33, %v923_v23  ;;  %v649_v43 = vpop.eup %648  ;;  %v183_v6 = vmul.f32 %v181_v24, %v838_v46  ;;  %v240_v44 = vmul.f32 0.7978846, %v238_v35  ;;  %v289_v45 = vmul.f32 %v287_v37, %v784_v1  ;;  %s1182_s22 = sld [smem:[#allocation7 + $0xe]] }
  0x3c   :  { %650 = vtanh.f32 %v239_v36  ;;  %v946_v48 = vadd.f32 %v155_v31, %v125_v30  ;;  %v267_v49 = vmul.f32 0.044715, %v265_v40  ;;  %v291_v50 = vstv %s917_s26  ;;  %s626_s23 = sld [smem:[#allocation7 + $0xf]] }
  0x3d   :  { %v268_v7 = vmul.f32 0.044715, %v266_v41  ;;  %v211_v51 = vadd.f32 1.0, %v647_v38  ;;  %652 = vtanh.f32 %v240_v44  ;;  %v949_v52 = vadd.f32 %v291_v50, %v288_v42 }
  0x3e   :  { %v951_v53 = vadd.f32 %v291_v50, %v289_v45  ;;  %v184_v46 = vmul.f32 %v182_v39, %v840_v47  ;;  %v212_v54 = vadd.f32 1.0, %v649_v43  ;;  %v269_v55 = vadd.f32 %v267_v49, %v921_v22 }
  0x3f   :  { %v270_v56 = vadd.f32 %v268_v7, %v923_v23  ;;  %v186_v57 = vmul.f32 %v185_v21, %v183_v6  ;;  %v295_v58 = vmul.f32 %v949_v52, %v949_v52  ;;  %v319_v60 = vstv %s927_s27 }
  0x40   :  { %v296_v59 = vmul.f32 %v951_v53, %v951_v53  ;;  %v271_v47 = vmul.f32 0.7978846, %v269_v55  ;;  %v320_v15 = vmul.f32 %v319_v60, %v779_v0  ;;  %v321_v63 = vmul.f32 %v319_v60, %v784_v1 }
  0x41   :  { %v272_v61 = vmul.f32 0.7978846, %v270_v56  ;;  %v213_v3 = vmul.f32 0.5, %v211_v51  ;;  %v297_v4 = vmul.f32 %v295_v58, %v949_v52  ;;  %v323_v10 = vstv %s937_s28 }
  0x42   :  { %v651_v2 = vpop.eup %650  ;;  %v298_v9 = vmul.f32 %v296_v59, %v951_v53  ;;  %v214_v11 = vmul.f32 0.5, %v212_v54  ;;  %654 = vtanh.f32 %v271_v47  ;;  %v972_v26 = vadd.f32 %v323_v10, %v320_v15 }
  0x43   :  { %v974_v12 = vadd.f32 %v323_v10, %v321_v63  ;;  %v653_v13 = vpop.eup %652  ;;  %656 = vtanh.f32 %v272_v61  ;;  %v299_v16 = vmul.f32 0.044715, %v297_v4  ;;  %v351_v18 = vstv %s944_s29 }
  0x44   :  { %v300_v17 = vmul.f32 0.044715, %v298_v9  ;;  %v187_v19 = vmul.f32 %v185_v21, %v184_v46  ;;  %v243_v27 = vadd.f32 1.0, %v651_v2  ;;  %v327_v20 = vmul.f32 %v972_v26, %v972_v26 }
  0x45   :  { %v328_v24 = vmul.f32 %v974_v12, %v974_v12  ;;  %v301_v28 = vadd.f32 %v299_v16, %v949_v52  ;;  %v352_v30 = vmul.f32 %v351_v18, %v779_v0  ;;  %v353_v31 = vmul.f32 %v351_v18, %v784_v1 }
  0x46   :  { %v302_v29 = vadd.f32 %v300_v17, %v951_v53  ;;  %v215_v21 = vmul.f32 %v213_v3, %v860_v5  ;;  %v244_v32 = vadd.f32 1.0, %v653_v13  ;;  %v329_v33 = vmul.f32 %v327_v20, %v972_v26 }
  0x47   :  { %v330_v35 = vmul.f32 %v328_v24, %v974_v12  ;;  %v216_v36 = vmul.f32 %v214_v11, %v862_v8  ;;  %v303_v37 = vmul.f32 0.7978846, %v301_v28  ;;  %v355_v39 = vstv %s963_s2 }
  0x48   :  { %v304_v38 = vmul.f32 0.7978846, %v302_v29  ;;  %v655_v40 = vpop.eup %654  ;;  %v188_v41 = vadd.f32 %v186_v57, %v933_v34  ;;  %v249_v42 = vstv %s965_s30  ;;  %v331_v43 = vmul.f32 0.044715, %v329_v33 }
  0x49   :  { %v332_v5 = vmul.f32 0.044715, %v330_v35  ;;  %v657_v6 = vpop.eup %656  ;;  %v245_v44 = vmul.f32 0.5, %v243_v27  ;;  %658 = vtanh.f32 %v303_v37  ;;  %v998_v45 = vadd.f32 %v355_v39, %v352_v30 }
  0x4a   :  { %v1000_v8 = vadd.f32 %v355_v39, %v353_v31  ;;  %v189_v49 = vadd.f32 %v187_v19, %v946_v48  ;;  %v218_v7 = vmul.f32 %v217_v25, %v215_v21  ;;  %v246_v50 = vmul.f32 0.5, %v244_v32 }
  0x4b   :  { %660 = vtanh.f32 %v304_v38  ;;  %v219_v51 = vmul.f32 %v217_v25, %v216_v36  ;;  %v333_v34 = vadd.f32 %v331_v43, %v972_v26  ;;  %v334_v46 = vadd.f32 %v332_v5, %v974_v12 }
  0x4c   :  { %v359_v54 = vmul.f32 %v998_v45, %v998_v45  ;;  %v275_v55 = vadd.f32 1.0, %v655_v40  ;;  %v276_v56 = vadd.f32 1.0, %v657_v6  ;;  %v360_v48 = vmul.f32 %v1000_v8, %v1000_v8 }
  0x4d   :  { %v383_v57 = vstv %s983_s1  ;;  %v247_v25 = vmul.f32 %v245_v44, %v897_v14  ;;  %v335_v58 = vmul.f32 0.7978846, %v333_v34  ;;  %v336_v59 = vmul.f32 0.7978846, %v334_v46 }
  0x4e   :  { %v361_v60 = vmul.f32 %v359_v54, %v998_v45  ;;  %v248_v47 = vmul.f32 %v246_v50, %v903_v62  ;;  %v362_v61 = vmul.f32 %v360_v48, %v1000_v8  ;;  %v384_v15 = vmul.f32 %v383_v57, %v779_v0 }
  0x4f   :  { %v385_v63 = vmul.f32 %v383_v57, %v784_v1  ;;  %v659_v2 = vpop.eup %658  ;;  %v220_v3 = vadd.f32 %v218_v7, %v188_v41  ;;  %662 = vtanh.f32 %v335_v58  ;;  %v387_v9 = vstv %s994_s6 }
  0x50   :  { %v363_v4 = vmul.f32 0.044715, %v361_v60  ;;  %v221_v14 = vadd.f32 %v219_v51, %v189_v49  ;;  %v277_v11 = vmul.f32 0.5, %v275_v55  ;;  %v278_v13 = vmul.f32 0.5, %v276_v56 }
  0x51   :  { %v661_v10 = vpop.eup %660  ;;  %v364_v16 = vmul.f32 0.044715, %v362_v61  ;;  %v307_v62 = vadd.f32 1.0, %v659_v2  ;;  %664 = vtanh.f32 %v336_v59  ;;  %v1028_v18 = vadd.f32 %v387_v9, %v384_v15 }
  0x52   :  { %v365_v17 = vadd.f32 %v363_v4, %v998_v45  ;;  %v250_v19 = vmul.f32 %v249_v42, %v247_v25  ;;  %v251_v27 = vmul.f32 %v249_v42, %v248_v47  ;;  %v1031_v24 = vadd.f32 %v387_v9, %v385_v63 }
  0x53   :  { %v366_v20 = vadd.f32 %v364_v16, %v1000_v8  ;;  %v281_v28 = vstv %s1007_s7  ;;  %v308_v29 = vadd.f32 1.0, %v661_v10  ;;  %v391_v30 = vmul.f32 %v1028_v18, %v1028_v18 }
  0x54   :  { %v279_v31 = vmul.f32 %v277_v11, %v921_v22  ;;  %v367_v21 = vmul.f32 0.7978846, %v365_v17  ;;  %v392_v32 = vmul.f32 %v1031_v24, %v1031_v24  ;;  %v415_v33 = vstv %s1016_s8 }
  0x55   :  { %v663_v35 = vpop.eup %662  ;;  %v280_v36 = vmul.f32 %v278_v13, %v923_v23  ;;  %v309_v37 = vmul.f32 0.5, %v307_v62  ;;  %v393_v38 = vmul.f32 %v391_v30, %v1028_v18  ;;  %v416_v39 = vmul.f32 %v415_v33, %v779_v0 }
  0x56   :  { %v252_v40 = vadd.f32 %v250_v19, %v220_v3  ;;  %v253_v22 = vadd.f32 %v251_v27, %v221_v14  ;;  %v368_v41 = vmul.f32 0.7978846, %v366_v20  ;;  %v394_v42 = vmul.f32 %v392_v32, %v1031_v24 }
  0x57   :  { %v665_v43 = vpop.eup %664  ;;  %v310_v5 = vmul.f32 0.5, %v308_v29  ;;  %v339_v6 = vadd.f32 1.0, %v663_v35  ;;  %v395_v44 = vmul.f32 0.044715, %v393_v38  ;;  %v417_v49 = vmul.f32 %v415_v33, %v784_v1 }
  0x58   :  { %v282_v23 = vmul.f32 %v281_v28, %v279_v31  ;;  %666 = vtanh.f32 %v367_v21  ;;  %v396_v7 = vmul.f32 0.044715, %v394_v42  ;;  %v419_v50 = vstv %s1025_s9 }
  0x59   :  { %v283_v51 = vmul.f32 %v281_v28, %v280_v36  ;;  %v311_v34 = vmul.f32 %v309_v37, %v949_v52  ;;  %v397_v46 = vadd.f32 %v395_v44, %v1028_v18  ;;  %v1056_v54 = vadd.f32 %v419_v50, %v416_v39 }
  0x5a   :  { %v340_v55 = vadd.f32 1.0, %v665_v43  ;;  %668 = vtanh.f32 %v368_v41  ;;  %v398_v56 = vadd.f32 %v396_v7, %v1031_v24  ;;  %v1059_v48 = vadd.f32 %v419_v50, %v417_v49 }
  0x5b   :  { %v312_v57 = vmul.f32 %v310_v5, %v951_v53  ;;  %v313_v25 = vstv %s1034_s3  ;;  %v341_v58 = vmul.f32 0.5, %v339_v6  ;;  %v423_v52 = vmul.f32 %v1056_v54, %v1056_v54 }
  0x5c   :  { %v399_v59 = vmul.f32 0.7978846, %v397_v46  ;;  %v424_v60 = vmul.f32 %v1059_v48, %v1059_v48  ;;  %v447_v47 = vstv %s1042_s10  ;;  %v284_v61 = vadd.f32 %v282_v23, %v252_v40 }
  0x5d   :  { %v345_v15 = vstv %s1045_s11  ;;  %v400_v63 = vmul.f32 0.7978846, %v398_v56  ;;  %v425_v53 = vmul.f32 %v423_v52, %v1056_v54  ;;  %v285_v3 = vadd.f32 %v283_v51, %v253_v22 }
  0x5e   :  { %v667_v2 = vpop.eup %666  ;;  %v314_v4 = vmul.f32 %v313_v25, %v311_v34  ;;  %v342_v9 = vmul.f32 0.5, %v340_v55  ;;  %v426_v10 = vmul.f32 %v424_v60, %v1059_v48  ;;  %v315_v14 = vmul.f32 %v313_v25, %v312_v57 }
  0x5f   :  { %v343_v11 = vmul.f32 %v341_v58, %v972_v26  ;;  %v427_v13 = vmul.f32 0.044715, %v425_v53  ;;  %v448_v16 = vmul.f32 %v447_v47, %v779_v0  ;;  %670 = vtanh.f32 %v399_v59 }
  0x60   :  { %v669_v62 = vpop.eup %668  ;;  %v428_v17 = vmul.f32 0.044715, %v426_v10  ;;  %v449_v19 = vmul.f32 %v447_v47, %v784_v1  ;;  %v451_v27 = vstv %s1052_s12  ;;  %v371_v20 = vadd.f32 1.0, %v667_v2 }
  0x61   :  { %672 = vtanh.f32 %v400_v63  ;;  %v429_v28 = vadd.f32 %v427_v13, %v1056_v54  ;;  %v1084_v29 = vadd.f32 %v451_v27, %v448_v16  ;;  %v344_v26 = vmul.f32 %v342_v9, %v974_v12 }
  0x62   :  { %v430_v30 = vadd.f32 %v428_v17, %v1059_v48  ;;  %v1090_v31 = vadd.f32 %v451_v27, %v449_v19  ;;  %v479_v21 = vstv %s1061_s0  ;;  %v372_v32 = vadd.f32 1.0, %v669_v62 }
  0x63   :  { %v377_v33 = vstv %s1065_s13  ;;  %v431_v35 = vmul.f32 0.7978846, %v429_v28  ;;  %v455_v36 = vmul.f32 %v1084_v29, %v1084_v29  ;;  %v409_v37 = vstv %s1069_s14 }
  0x64   :  { %v432_v38 = vmul.f32 0.7978846, %v430_v30  ;;  %v456_v12 = vmul.f32 %v1090_v31, %v1090_v31  ;;  %v480_v39 = vmul.f32 %v479_v21, %v779_v0  ;;  %v316_v40 = vadd.f32 %v314_v4, %v284_v61 }
  0x65   :  { %v317_v22 = vadd.f32 %v315_v14, %v285_v3  ;;  %v373_v41 = vmul.f32 0.5, %v371_v20  ;;  %v457_v42 = vmul.f32 %v455_v36, %v1084_v29  ;;  %v671_v43 = vpop.eup %670  ;;  %v346_v5 = vmul.f32 %v345_v15, %v343_v11 }
  0x66   :  { %v347_v6 = vmul.f32 %v345_v15, %v344_v26  ;;  %v458_v44 = vmul.f32 %v456_v12, %v1090_v31  ;;  %v481_v49 = vmul.f32 %v479_v21, %v784_v1  ;;  %v374_v7 = vmul.f32 0.5, %v372_v32 }
  0x67   :  { %v673_v23 = vpop.eup %672  ;;  %674 = vtanh.f32 %v431_v35  ;;  %v459_v50 = vmul.f32 0.044715, %v457_v42  ;;  %v483_v51 = vstv %s1079_s15  ;;  %v375_v56 = vmul.f32 %v373_v41, %v998_v45 }
  0x68   :  { %676 = vtanh.f32 %v432_v38  ;;  %v460_v34 = vmul.f32 0.044715, %v458_v44  ;;  %v1108_v46 = vadd.f32 %v483_v51, %v480_v39  ;;  %v1110_v55 = vadd.f32 %v483_v51, %v481_v49 }
  0x69   :  { %v403_v57 = vadd.f32 1.0, %v671_v43  ;;  %v461_v25 = vadd.f32 %v459_v50, %v1084_v29  ;;  %v511_v58 = vstv %s1086_s16  ;;  %v404_v52 = vadd.f32 1.0, %v673_v23 }
  0x6a   :  { %v462_v59 = vadd.f32 %v460_v34, %v1090_v31  ;;  %v487_v60 = vmul.f32 %v1108_v46, %v1108_v46  ;;  %v488_v47 = vmul.f32 %v1110_v55, %v1110_v55  ;;  %v512_v15 = vmul.f32 %v511_v58, %v779_v0 }
  0x6b   :  { %v463_v61 = vmul.f32 0.7978846, %v461_v25  ;;  %v513_v63 = vmul.f32 %v511_v58, %v784_v1  ;;  %v515_v45 = vstv %s1096_s17  ;;  %v348_v53 = vadd.f32 %v346_v5, %v316_v40 }
  0x6c   :  { %v441_v2 = vstv %s1099_s18  ;;  %v464_v3 = vmul.f32 0.7978846, %v462_v59  ;;  %v489_v4 = vmul.f32 %v487_v60, %v1108_v46  ;;  %v349_v10 = vadd.f32 %v347_v6, %v317_v22 }
  0x6d   :  { %v675_v9 = vpop.eup %674  ;;  %v376_v14 = vmul.f32 %v374_v7, %v1000_v8  ;;  %678 = vtanh.f32 %v463_v61  ;;  %v490_v11 = vmul.f32 %v488_v47, %v1110_v55  ;;  %v378_v16 = vmul.f32 %v377_v33, %v375_v56 }
  0x6e   :  { %v677_v13 = vpop.eup %676  ;;  %680 = vtanh.f32 %v464_v3  ;;  %v491_v62 = vmul.f32 0.044715, %v489_v4  ;;  %v1133_v17 = vadd.f32 %v515_v45, %v512_v15  ;;  %v405_v19 = vmul.f32 0.5, %v403_v57 }
  0x6f   :  { %v406_v27 = vmul.f32 0.5, %v404_v52  ;;  %v492_v20 = vmul.f32 0.044715, %v490_v11  ;;  %v1135_v28 = vadd.f32 %v515_v45, %v513_v63  ;;  %v435_v26 = vadd.f32 1.0, %v675_v9 }
  0x70   :  { %v493_v30 = vadd.f32 %v491_v62, %v1108_v46  ;;  %v519_v8 = vmul.f32 %v1133_v17, %v1133_v17  ;;  %v543_v21 = vstv %s1112_s19  ;;  %v379_v32 = vmul.f32 %v377_v33, %v376_v14 }
  0x71   :  { %v436_v35 = vadd.f32 1.0, %v677_v13  ;;  %v494_v36 = vadd.f32 %v492_v20, %v1110_v55  ;;  %v520_v38 = vmul.f32 %v1135_v28, %v1135_v28  ;;  %v544_v40 = vmul.f32 %v543_v21, %v779_v0 }
  0x72   :  { %v495_v12 = vmul.f32 0.7978846, %v493_v30  ;;  %v521_v39 = vmul.f32 %v519_v8, %v1133_v17  ;;  %v545_v22 = vmul.f32 %v543_v21, %v784_v1  ;;  %v407_v42 = vmul.f32 %v405_v19, %v1028_v18 }
  0x73   :  { %v679_v41 = vpop.eup %678  ;;  %v496_v43 = vmul.f32 0.7978846, %v494_v36  ;;  %v522_v33 = vmul.f32 %v520_v38, %v1135_v28  ;;  %v547_v5 = vstv %s1125_s20  ;;  %v408_v44 = vmul.f32 %v406_v27, %v1031_v24 }
  0x74   :  { %v681_v6 = vpop.eup %680  ;;  %v437_v49 = vmul.f32 0.5, %v435_v26  ;;  %682 = vtanh.f32 %v495_v12  ;;  %v523_v23 = vmul.f32 0.044715, %v521_v39  ;;  %v438_v7 = vmul.f32 0.5, %v436_v35 }
  0x75   :  { %v467_v0 = vadd.f32 1.0, %v679_v41  ;;  %684 = vtanh.f32 %v496_v43  ;;  %v524_v1 = vmul.f32 0.044715, %v522_v33  ;;  %v468_v50 = vadd.f32 1.0, %v681_v6 }
  0x76   :  { %v525_v18 = vadd.f32 %v523_v23, %v1133_v17  ;;  %v1156_v51 = vadd.f32 %v547_v5, %v544_v40  ;;  %v1158_v34 = vadd.f32 %v547_v5, %v545_v22  ;;  %v380_v56 = vadd.f32 %v378_v16, %v348_v53 }
  0x77   :  { %v381_v57 = vadd.f32 %v379_v32, %v349_v10  ;;  %v410_v25 = vmul.f32 %v409_v37, %v407_v42  ;;  %v526_v24 = vadd.f32 %v524_v1, %v1135_v28  ;;  %v439_v58 = vmul.f32 %v437_v49, %v1056_v54 }
  0x78   :  { %v527_v52 = vmul.f32 0.7978846, %v525_v18  ;;  %v551_v59 = vmul.f32 %v1156_v51, %v1156_v51  ;;  %v552_v60 = vmul.f32 %v1158_v34, %v1158_v34  ;;  %v411_v47 = vmul.f32 %v409_v37, %v408_v44 }
  0x79   :  { %v440_v61 = vmul.f32 %v438_v7, %v1059_v48  ;;  %v469_v15 = vmul.f32 0.5, %v467_v0  ;;  %v528_v63 = vmul.f32 0.7978846, %v526_v24  ;;  %v470_v54 = vmul.f32 0.5, %v468_v50 }
  0x7a   :  { %v683_v45 = vpop.eup %682  ;;  %686 = vtanh.f32 %v527_v52  ;;  %v553_v53 = vmul.f32 %v551_v59, %v1156_v51  ;;  %v554_v3 = vmul.f32 %v552_v60, %v1158_v34  ;;  %v412_v9 = vadd.f32 %v410_v25, %v380_v56 }
  0x7b   :  { %v685_v4 = vpop.eup %684  ;;  %v473_v10 = vstv %s1150_s21  ;;  %v499_v14 = vadd.f32 1.0, %v683_v45  ;;  %688 = vtanh.f32 %v528_v63  ;;  %v442_v37 = vmul.f32 %v441_v2, %v439_v58 }
  0x7c   :  { %v500_v11 = vadd.f32 1.0, %v685_v4  ;;  %v555_v48 = vmul.f32 0.044715, %v553_v53  ;;  %v556_v13 = vmul.f32 0.044715, %v554_v3  ;;  %v413_v16 = vadd.f32 %v411_v47, %v381_v57 }
  0x7d   :  { %v443_v62 = vmul.f32 %v441_v2, %v440_v61  ;;  %v471_v19 = vmul.f32 %v469_v15, %v1084_v29  ;;  %v501_v27 = vmul.f32 0.5, %v499_v14  ;;  %v472_v20 = vmul.f32 %v470_v54, %v1090_v31 }
  0x7e   :  { %v502_v26 = vmul.f32 0.5, %v500_v11  ;;  %v557_v30 = vadd.f32 %v555_v48, %v1156_v51  ;;  %v558_v8 = vadd.f32 %v556_v13, %v1158_v34  ;;  %v444_v32 = vadd.f32 %v442_v37, %v412_v9 }
  0x7f   :  { %v505_v35 = vstv %s1164_s4  ;;  %v445_v39 = vadd.f32 %v443_v62, %v413_v16  ;;  %v474_v2 = vmul.f32 %v473_v10, %v471_v19  ;;  %v503_v29 = vmul.f32 %v501_v27, %v1108_v46 }
  0x80   :  { %v687_v21 = vpop.eup %686  ;;  %v559_v36 = vmul.f32 0.7978846, %v557_v30  ;;  %v560_v38 = vmul.f32 0.7978846, %v558_v8  ;;  %v475_v31 = vmul.f32 %v473_v10, %v472_v20  ;;  %v504_v22 = vmul.f32 %v502_v26, %v1110_v55 }
  0x81   :  { %v689_v12 = vpop.eup %688  ;;  %v531_v40 = vadd.f32 1.0, %v687_v21  ;;  %v476_v33 = vadd.f32 %v474_v2, %v444_v32  ;;  %v506_v5 = vmul.f32 %v505_v35, %v503_v29  ;;  %v537_v46 = vstv %s1182_s22 }
  0x82   :  { %v532_v41 = vadd.f32 1.0, %v689_v12  ;;  %690 = vtanh.f32 %v559_v36  ;;  %v477_v44 = vadd.f32 %v475_v31, %v445_v39  ;;  %v507_v49 = vmul.f32 %v505_v35, %v504_v22 }
  0x83   :  { %v533_v42 = vmul.f32 0.5, %v531_v40  ;;  %692 = vtanh.f32 %v560_v38  ;;  %v508_v1 = vadd.f32 %v506_v5, %v476_v33  ;;  %v569_v58 = vstv %s626_s23 }
  0x84   :  { %v534_v43 = vmul.f32 0.5, %v532_v41  ;;  %v509_v18 = vadd.f32 %v507_v49, %v477_v44 }
  0x85   :  { %v535_v6 = vmul.f32 %v533_v42, %v1133_v17 }
  0x86   :  { %v536_v23 = vmul.f32 %v534_v43, %v1135_v28 }
  0x87   :  { %v538_v50 = vmul.f32 %v537_v46, %v535_v6 }
  0x88   :  { %v691_v7 = vpop.eup %690  ;;  %v539_v56 = vmul.f32 %v537_v46, %v536_v23 }
  0x89   :  { %v693_v0 = vpop.eup %692  ;;  %v563_v55 = vadd.f32 1.0, %v691_v7  ;;  %v540_v52 = vadd.f32 %v538_v50, %v508_v1 }
  0x8a   :  { %v564_v57 = vadd.f32 1.0, %v693_v0  ;;  %v541_v17 = vadd.f32 %v539_v56, %v509_v18 }
  0x8b   :  { %v565_v25 = vmul.f32 0.5, %v563_v55 }
  0x8c   :  { %v566_v24 = vmul.f32 0.5, %v564_v57 }
  0x8d   :  { %v567_v59 = vmul.f32 %v565_v25, %v1156_v51 }
  0x8e   :  { %v568_v60 = vmul.f32 %v566_v24, %v1158_v34 }
  0x8f   :  { %v570_v47 = vmul.f32 %v569_v58, %v567_v59 }
  0x90   :  { %v571_v28 = vmul.f32 %v569_v58, %v568_v60 }
  0x91   :  { %v572_v61 = vadd.f32 %v570_v47, %v540_v52 }
  0x92   :  { %v573_v15 = vadd.f32 %v571_v28, %v541_v17 }
  0x93   :  { %574 = vst [vmem:[%s1205_s5] sm:$0xff] %v572_v61 }
  0x94   :  { %575 = vst [vmem:[%s1205_s5 + $0x8] sm:$0xff] %v573_v15 }
  0x95   :  { %580 = vsyncpa [#allocation4], 1 }
  0x96   :  { %581 = vsyncpa [#allocation6], 1 }

// kernel: operator_encoder_forward.5
= control target key start
LH: loop header
LB: loop body
LE: loop exit
PB: predicated region body
PF: predicated region fallthrough
CT: control target
= control target key end

     0   :  { %s1477_s0 = inlined_call_operand.vmem [shape: f32[2,1024], index: 0, kind: input, shape index: {}]   ;;  %s1478_s1 = inlined_call_operand.vmem [shape: f32[1,1024], index: 1, kind: input, shape index: {}]   ;;  %s1479_s2 = inlined_call_operand.vmem [shape: bf16[1024,32], index: 2, kind: input, shape index: {}]   ;;  %s1480_s3 = inlined_call_operand.vmem [shape: f32[1,32], index: 3, kind: input, shape index: {}]   ;;  %s1481_s4 = inlined_call_operand.hbm [shape: f32[2,32], index: 4, kind: output, shape index: {}]  }
   0x1   :  { %v18_v0 = vld [vmem:[%s1477_s0] sm:$0xff]  ;;  %v19_v1 = vld [vmem:[%s1477_s0 + $0x8] sm:$0xff] }
   0x2   :  { %22 = vst [vmem:[#allocation1] ss:$4 sm:$0xff] %v18_v0 }
   0x3   :  { %9 = vsyncpa [#allocation3], 0  ;;  %24 = vst [vmem:[#allocation1 + $0x20] ss:$4 sm:$0xff] %v19_v1  ;;  %vm41_vm0 = vcmask 1041408   ;;  %v1193_v25 = vmov 1024.0  }
   0x4   :  { %1161 = vrcp.f32 %v1193_v25  ;;  %v1194_v31 = vmov 269488144   ;;  %v1100_v38 = vld [vmem:[%s1479_s2 + $0x38] sm:$0xff]  ;;  %v1099_v44 = vld [vmem:[%s1479_s2 + $0x30] sm:$0xff]  ;;  %v1094_v25 = vld [vmem:[%s1479_s2 + $0x8] sm:$0xff]  ;;  %vm152_vm2 = vcmask 1045508  }
   0x5   :  { %v1235_v32 = vunpack.c.l.s4 %v1194_v31  ;;  %v1108_v39 = vld [vmem:[%s1479_s2 + $0x78] sm:$0xff]  ;;  %708 = vmatpush.bf16.msra.mxu0 %v1100_v38  ;;  %v1107_v45 = vld [vmem:[%s1479_s2 + $0x70] sm:$0xff]  ;;  %v1109_v31 = vld [vmem:[%s1479_s2 + $0x80] sm:$0xff]  ;;  %vm154_vm4 = vcmask 1043456   ;;  %s827_s17 = sshll.u32 %s1481_s4, 4  ;;  %vm818_vm7 = vcmask 254976   ;;  %s828_s17 = int_to_ptr.hbm [resolvable:$true] %s827_s17 }
   0x6   :  { %v1116_v40 = vld [vmem:[%s1479_s2 + $0xb8] sm:$0xff]  ;;  %721 = vmatpush.bf16.msra.mxu1 %v1108_v39  ;;  %v1115_v46 = vld [vmem:[%s1479_s2 + $0xb0] sm:$0xff] }
   0x7   :  { %v70_v34 = vunpack.c.0.s8 %v1235_v32  ;;  %v1124_v41 = vld [vmem:[%s1479_s2 + $0xf8] sm:$0xff]  ;;  %734 = vmatpush.bf16.msra.mxu2 %v1116_v40  ;;  %v1123_v47 = vld [vmem:[%s1479_s2 + $0xf0] sm:$0xff] }
   0x8   :  { %747 = vmatpush.bf16.msra.mxu3 %v1124_v41  ;;  %v1148_v38 = vld [vmem:[%s1479_s2 + $0x1b8] sm:$0xff]  ;;  %v1131_v40 = vld [vmem:[%s1479_s2 + $0x130] sm:$0xff] }
   0x9   :  { %v25_v2 = vld.sshfl [vmem:[#allocation1] sm:$0xff pattern:$0x73625140]  ;;  %v26_v3 = vld.sshfl [vmem:[#allocation1 + $0x8] sm:$0xff pattern:$0x73625140]  ;;  %709 = vmatpush.bf16.msra.mxu0 %v1099_v44 }
   0xa   :  { %v27_v4 = vld.sshfl [vmem:[#allocation1 + $0x10] sm:$0xff pattern:$0x73625140]  ;;  %v28_v5 = vld.sshfl [vmem:[#allocation1 + $0x18] sm:$0xff pattern:$0x73625140]  ;;  %v1162_v26 = vpop.eup %1161  ;;  %722 = vmatpush.bf16.msra.mxu1 %v1107_v45 }
   0xb   :  { %v42_v6 = vsel %vm41_vm0, %v25_v2, 0.0  ;;  %v43_v7 = vsel %vm41_vm0, %v26_v3, 0.0  ;;  %v45_v8 = vsel %vm41_vm0, %v27_v4, 0.0  ;;  %v29_v9 = vld.sshfl [vmem:[#allocation1 + $0x20] sm:$0xff pattern:$0x73625140]  ;;  %vm64_vm1 = vweird.f32 %v1162_v26  ;;  %735 = vmatpush.bf16.msra.mxu2 %v1115_v46 }
   0xc   :  { %v44_v10 = vadd.f32 %v43_v7, %v42_v6  ;;  %v47_v11 = vsel %vm41_vm0, %v28_v5, 0.0  ;;  %v30_v12 = vld.sshfl [vmem:[#allocation1 + $0x28] sm:$0xff pattern:$0x73625140]  ;;  %v49_v14 = vsel %vm41_vm0, %v29_v9, 0.0  ;;  %v60_v27 = vmul.f32 1024.0, %v1162_v26  ;;  %748 = vmatpush.bf16.msra.mxu3 %v1123_v47 }
   0xd   :  { %v31_v15 = vld.sshfl [vmem:[#allocation1 + $0x30] sm:$0xff pattern:$0x73625140]  ;;  %v51_v17 = vsel %vm41_vm0, %v30_v12, 0.0  ;;  %v1098_v9 = vld [vmem:[%s1479_s2 + $0x28] sm:$0xff]  ;;  %v1156_v39 = vld [vmem:[%s1479_s2 + $0x1f8] sm:$0xff] }
   0xe   :  { %v46_v13 = vadd.f32 %v45_v8, %v44_v10  ;;  %v32_v18 = vld.sshfl [vmem:[#allocation1 + $0x38] sm:$0xff pattern:$0x73625140]  ;;  %v53_v20 = vsel %vm41_vm0, %v31_v15, 0.0  ;;  %v61_v28 = vsub.f32 1.0, %v60_v27  ;;  %v1106_v10 = vld [vmem:[%s1479_s2 + $0x68] sm:$0xff]  ;;  %710 = vmatpush.bf16.msra.mxu0 %v1098_v9 }
   0xf   :  { %v55_v22 = vsel %vm41_vm0, %v32_v18, 0.0  ;;  %v1122_v12 = vld [vmem:[%s1479_s2 + $0xe8] sm:$0xff]  ;;  %723 = vmatpush.bf16.msra.mxu1 %v1106_v10  ;;  %v1113_v15 = vld [vmem:[%s1479_s2 + $0xa0] sm:$0xff]  ;;  %v1104_v18 = vld [vmem:[%s1479_s2 + $0x58] sm:$0xff] }
  0x10   :  { %v48_v16 = vadd.f32 %v47_v11, %v46_v13  ;;  %v62_v29 = vmul.f32 %v1162_v26, %v61_v28  ;;  %v1114_v11 = vld [vmem:[%s1479_s2 + $0xa8] sm:$0xff]  ;;  %749 = vmatpush.bf16.msra.mxu3 %v1122_v12  ;;  %v1097_v13 = vld [vmem:[%s1479_s2 + $0x20] sm:$0xff]  ;;  %v1139_v41 = vld [vmem:[%s1479_s2 + $0x170] sm:$0xff] }
  0x11   :  { %736 = vmatpush.bf16.msra.mxu2 %v1114_v11  ;;  %v1110_v27 = vld [vmem:[%s1479_s2 + $0x88] sm:$0xff]  ;;  %v1147_v44 = vld [vmem:[%s1479_s2 + $0x1b0] sm:$0xff] }
  0x12   :  { %v50_v19 = vadd.f32 %v49_v14, %v48_v16  ;;  %v63_v30 = vadd.f32 %v1162_v26, %v62_v29  ;;  %v1105_v14 = vld [vmem:[%s1479_s2 + $0x60] sm:$0xff]  ;;  %711 = vmatpush.bf16.msra.mxu0 %v1097_v13  ;;  %v1118_v28 = vld [vmem:[%s1479_s2 + $0xc8] sm:$0xff]  ;;  %v1155_v45 = vld [vmem:[%s1479_s2 + $0x1f0] sm:$0xff] }
  0x13   :  { %v1121_v16 = vld [vmem:[%s1479_s2 + $0xe0] sm:$0xff]  ;;  %724 = vmatpush.bf16.msra.mxu1 %v1105_v14  ;;  %v1130_v46 = vld [vmem:[%s1479_s2 + $0x128] sm:$0xff] }
  0x14   :  { %v52_v21 = vadd.f32 %v51_v17, %v50_v19  ;;  %v1237_v33 = vsel %vm64_vm1, %v1162_v26, %v63_v30  ;;  %750 = vmatpush.bf16.msra.mxu3 %v1121_v16  ;;  %v1096_v17 = vld [vmem:[%s1479_s2 + $0x18] sm:$0xff]  ;;  %v1102_v26 = vld [vmem:[%s1479_s2 + $0x48] sm:$0xff]  ;;  %v1093_v29 = vld [vmem:[%s1479_s2] sm:$0xff] }
  0x15   :  { %737 = vmatpush.bf16.msra.mxu2 %v1113_v15  ;;  %v1112_v19 = vld [vmem:[%s1479_s2 + $0x98] sm:$0xff]  ;;  %v1101_v30 = vld [vmem:[%s1479_s2 + $0x40] sm:$0xff]  ;;  %v1138_v47 = vld [vmem:[%s1479_s2 + $0x168] sm:$0xff] }
  0x16   :  { %v54_v23 = vadd.f32 %v53_v20, %v52_v21  ;;  %v1120_v20 = vld [vmem:[%s1479_s2 + $0xd8] sm:$0xff]  ;;  %712 = vmatpush.bf16.msra.mxu0 %v1096_v17  ;;  %v1095_v21 = vld [vmem:[%s1479_s2 + $0x10] sm:$0xff]  ;;  %v1126_v11 = vld [vmem:[%s1479_s2 + $0x108] sm:$0xff] }
  0x17   :  { %725 = vmatpush.bf16.msra.mxu1 %v1104_v18  ;;  %v1134_v12 = vld [vmem:[%s1479_s2 + $0x148] sm:$0xff] }
  0x18   :  { %v56_v24 = vadd.f32 %v55_v22, %v54_v23  ;;  %751 = vmatpush.bf16.msra.mxu3 %v1120_v20  ;;  %v1103_v22 = vld [vmem:[%s1479_s2 + $0x50] sm:$0xff]  ;;  %v1142_v17 = vld [vmem:[%s1479_s2 + $0x188] sm:$0xff] }
  0x19   :  { %738 = vmatpush.bf16.msra.mxu2 %v1112_v19  ;;  %v1111_v23 = vld [vmem:[%s1479_s2 + $0x90] sm:$0xff]  ;;  %v1150_v18 = vld [vmem:[%s1479_s2 + $0x1c8] sm:$0xff] }
  0x1a   :  { %57 = vadd.xlane.f32.xlu0 %v56_v24  ;;  %v1119_v24 = vld [vmem:[%s1479_s2 + $0xd0] sm:$0xff]  ;;  %713 = vmatpush.bf16.msra.mxu0 %v1095_v21 }
  0x1b   :  { %726 = vmatpush.bf16.msra.mxu1 %v1103_v22 }
  0x1c   :  { %752 = vmatpush.bf16.msra.mxu3 %v1119_v24  ;;  %v1125_v24 = vld [vmem:[%s1479_s2 + $0x100] sm:$0xff] }
  0x1d   :  { %739 = vmatpush.bf16.msra.mxu2 %v1111_v23 }
  0x1e   :  { %714 = vmatpush.bf16.msra.mxu0 %v1094_v25  ;;  %v1133_v25 = vld [vmem:[%s1479_s2 + $0x140] sm:$0xff] }
  0x1f   :  { %727 = vmatpush.bf16.msra.mxu1 %v1102_v26 }
  0x20   :  { %753 = vmatpush.bf16.msra.mxu3 %v1118_v28  ;;  %v1149_v28 = vld [vmem:[%s1479_s2 + $0x1c0] sm:$0xff] }
  0x21   :  { %740 = vmatpush.bf16.msra.mxu2 %v1110_v27  ;;  %v1141_v27 = vld [vmem:[%s1479_s2 + $0x180] sm:$0xff] }
  0x22   :  { %715 = vmatpush.bf16.msra.mxu0 %v1093_v29 }
  0x23   :  { %728 = vmatpush.bf16.msra.mxu1 %v1101_v30 }
  0x25   :  { %741 = vmatpush.bf16.msra.mxu2 %v1109_v31 }
  0x29   :  { %786 = vmatpush.bf16.msrb.mxu2 %v1148_v38 }
  0x2d   :  { %787 = vmatpush.bf16.msrb.mxu2 %v1147_v44 }
  0x8d   :  { %v58_v35 = vpop.xlane.xlu0 %57 }
  0x8e   :  { %v66_v36 = vmul.f32 %v1237_v33, %v58_v35  ;;  %v1117_v35 = vld [vmem:[%s1479_s2 + $0xc0] sm:$0xff] }
  0x8f   :  { %754 = vmatpush.bf16.msra.mxu3 %v1117_v35 }
  0x90   :  { %v71_v37 = vperm.slane %v66_v36, %v70_v34  ;;  %v1132_v36 = vld [vmem:[%s1479_s2 + $0x138] sm:$0xff] }
  0x91   :  { %760 = vmatpush.bf16.msrb.mxu0 %v1132_v36 }
  0x92   :  { %v1255_v42 = vsub.f32 %v18_v0, %v71_v37  ;;  %v1257_v43 = vsub.f32 %v19_v1, %v71_v37  ;;  %v1140_v37 = vld [vmem:[%s1479_s2 + $0x178] sm:$0xff] }
  0x93   :  { %773 = vmatpush.bf16.msrb.mxu1 %v1140_v37  ;;  %799 = vmatpush.bf16.msrb.mxu3 %v1156_v39 }
  0x94   :  { %v75_v48 = vmul.f32 %v1255_v42, %v1255_v42  ;;  %v76_v49 = vmul.f32 %v1257_v43, %v1257_v43 }
  0x95   :  { %761 = vmatpush.bf16.msrb.mxu0 %v1131_v40 }
  0x96   :  { %79 = vst [vmem:[#allocation1] ss:$4 sm:$0xff] %v75_v48 }
  0x97   :  { %81 = vst [vmem:[#allocation1 + $0x20] ss:$4 sm:$0xff] %v76_v49  ;;  %774 = vmatpush.bf16.msrb.mxu1 %v1139_v41  ;;  %800 = vmatpush.bf16.msrb.mxu3 %v1155_v45  ;;  %v1146_v49 = vld [vmem:[%s1479_s2 + $0x1a8] sm:$0xff] }
  0x98   :  { %788 = vmatpush.bf16.msrb.mxu2 %v1146_v49 }
  0x99   :  { %762 = vmatpush.bf16.msrb.mxu0 %v1130_v46 }
  0x9b   :  { %775 = vmatpush.bf16.msrb.mxu1 %v1138_v47 }
  0x9d   :  { %v82_v50 = vld.sshfl [vmem:[#allocation1] sm:$0xff pattern:$0x73625140]  ;;  %v83_v51 = vld.sshfl [vmem:[#allocation1 + $0x8] sm:$0xff pattern:$0x73625140] }
  0x9e   :  { %v84_v52 = vld.sshfl [vmem:[#allocation1 + $0x10] sm:$0xff pattern:$0x73625140]  ;;  %v98_v53 = vsel %vm41_vm0, %v82_v50, 0.0  ;;  %v99_v54 = vsel %vm41_vm0, %v83_v51, 0.0  ;;  %v1154_v50 = vld [vmem:[%s1479_s2 + $0x1e8] sm:$0xff] }
  0x9f   :  { %v85_v55 = vld.sshfl [vmem:[#allocation1 + $0x18] sm:$0xff pattern:$0x73625140]  ;;  %v100_v56 = vadd.f32 %v99_v54, %v98_v53  ;;  %v101_v57 = vsel %vm41_vm0, %v84_v52, 0.0  ;;  %v1129_v53 = vld [vmem:[%s1479_s2 + $0x120] sm:$0xff]  ;;  %801 = vmatpush.bf16.msrb.mxu3 %v1154_v50 }
  0xa0   :  { %v86_v58 = vld.sshfl [vmem:[#allocation1 + $0x20] sm:$0xff pattern:$0x73625140]  ;;  %v103_v60 = vsel %vm41_vm0, %v85_v55, 0.0  ;;  %763 = vmatpush.bf16.msrb.mxu0 %v1129_v53 }
  0xa1   :  { %v102_v59 = vadd.f32 %v101_v57, %v100_v56  ;;  %v87_v61 = vld.sshfl [vmem:[#allocation1 + $0x28] sm:$0xff pattern:$0x73625140]  ;;  %v105_v63 = vsel %vm41_vm0, %v86_v58, 0.0  ;;  %v1137_v54 = vld [vmem:[%s1479_s2 + $0x160] sm:$0xff]  ;;  %v1128_v56 = vld [vmem:[%s1479_s2 + $0x118] sm:$0xff] }
  0xa2   :  { %v88_v0 = vld.sshfl [vmem:[#allocation1 + $0x30] sm:$0xff pattern:$0x73625140]  ;;  %v107_v2 = vsel %vm41_vm0, %v87_v61, 0.0  ;;  %v1145_v55 = vld [vmem:[%s1479_s2 + $0x1a0] sm:$0xff]  ;;  %776 = vmatpush.bf16.msrb.mxu1 %v1137_v54  ;;  %v1136_v57 = vld [vmem:[%s1479_s2 + $0x158] sm:$0xff] }
  0xa3   :  { %v104_v62 = vadd.f32 %v103_v60, %v102_v59  ;;  %v89_v3 = vld.sshfl [vmem:[#allocation1 + $0x38] sm:$0xff pattern:$0x73625140]  ;;  %v109_v5 = vsel %vm41_vm0, %v88_v0, 0.0  ;;  %789 = vmatpush.bf16.msrb.mxu2 %v1145_v55  ;;  %v135_v59 = vld [vmem:[%s1478_s1] sm:$0xff] }
  0xa4   :  { %v111_v7 = vsel %vm41_vm0, %v89_v3, 0.0  ;;  %v1144_v58 = vld [vmem:[%s1479_s2 + $0x198] sm:$0xff]  ;;  %764 = vmatpush.bf16.msrb.mxu0 %v1128_v56  ;;  %v138_v0 = vperm.slane %v135_v59, 1  ;;  %v1143_v3 = vld [vmem:[%s1479_s2 + $0x190] sm:$0xff]  ;;  %v137_v10 = vperm.slane %v135_v59, 0  ;;  %v141_v13 = vperm.slane %v135_v59, 4 }
  0xa5   :  { %v106_v1 = vadd.f32 %v105_v63, %v104_v62  ;;  %v1152_v60 = vld [vmem:[%s1479_s2 + $0x1d8] sm:$0xff]  ;;  %v1127_v62 = vld [vmem:[%s1479_s2 + $0x110] sm:$0xff] }
  0xa6   :  { %777 = vmatpush.bf16.msrb.mxu1 %v1136_v57  ;;  %v1135_v63 = vld [vmem:[%s1479_s2 + $0x150] sm:$0xff]  ;;  %v145_v14 = vrot.slane %v138_v0, 6 }
  0xa7   :  { %v108_v4 = vadd.f32 %v107_v2, %v106_v1  ;;  %v139_v1 = vperm.slane %v135_v59, 2  ;;  %790 = vmatpush.bf16.msrb.mxu2 %v1144_v58 }
  0xa8   :  { %765 = vmatpush.bf16.msrb.mxu0 %v1127_v62  ;;  %v151_v29 = vsel %vm41_vm0, %v137_v10, %v145_v14 }
  0xa9   :  { %v110_v6 = vadd.f32 %v109_v5, %v108_v4  ;;  %v1151_v4 = vld [vmem:[%s1479_s2 + $0x1d0] sm:$0xff]  ;;  %v140_v5 = vperm.slane %v135_v59, 3  ;;  %v146_v15 = vrot.slane %v139_v1, 4 }
  0xaa   :  { %778 = vmatpush.bf16.msrb.mxu1 %v1135_v63 }
  0xab   :  { %v112_v8 = vadd.f32 %v111_v7, %v110_v6  ;;  %v142_v6 = vperm.slane %v135_v59, 5  ;;  %v143_v7 = vperm.slane %v135_v59, 6  ;;  %791 = vmatpush.bf16.msrb.mxu2 %v1143_v3  ;;  %v147_v19 = vrot.slane %v140_v5, 2 }
  0xac   :  { %766 = vmatpush.bf16.msrb.mxu0 %v1126_v11 }
  0xad   :  { %113 = vadd.xlane.f32.xlu0 %v112_v8  ;;  %v144_v8 = vperm.slane %v135_v59, 7  ;;  %v148_v20 = vrot.slane %v142_v6, 6  ;;  %v149_v21 = vrot.slane %v143_v7, 4  ;;  %v153_v30 = vsel %vm152_vm2, %v146_v15, %v147_v19  ;;  %v1160_v59 = vld [vmem:[%s1480_s3] ss:$0 sm:$0xff]  ;;  %s1195_s3 = smov [#allocation2]  }
  0xae   :  { %779 = vmatpush.bf16.msrb.mxu1 %v1134_v12  ;;  %v155_v38 = vsel %vm154_vm4, %v151_v29, %v153_v30  ;;  %s825_s14 = sshll.u32 %s1195_s3, 4  ;;  %s826_s14 = int_to_ptr.vmem [resolvable:$true] %s825_s14 }
  0xaf   :  { %v150_v22 = vrot.slane %v144_v8, 2  ;;  %792 = vmatpush.bf16.msrb.mxu2 %v1142_v17  ;;  %v156_v31 = vsel %vm41_vm0, %v141_v13, %v148_v20 }
  0xb0   :  { %767 = vmatpush.bf16.msrb.mxu0 %v1125_v24 }
  0xb1   :  { %v157_v35 = vsel %vm152_vm2, %v149_v21, %v150_v22 }
  0xb2   :  { %780 = vmatpush.bf16.msrb.mxu1 %v1133_v25  ;;  %v158_v39 = vsel %vm154_vm4, %v156_v31, %v157_v35 }
  0xb3   :  { %793 = vmatpush.bf16.msrb.mxu2 %v1141_v27 }
 0x120   :  { %v114_v48 = vpop.xlane.xlu0 %113 }
 0x121   :  { %v115_v51 = vmul.f32 %v114_v48, %v1237_v33  ;;  %v1153_v33 = vld [vmem:[%s1479_s2 + $0x1e0] sm:$0xff] }
 0x122   :  { %802 = vmatpush.bf16.msrb.mxu3 %v1153_v33 }
 0x123   :  { %v1392_v52 = vadd.f32 1e-05, %v115_v51 }
 0x125   :  { %1163 = vrsqrt.f32 %v1392_v52  ;;  %vm123_vm5 = vweird.f32 %v1392_v52 }
 0x126   :  { %803 = vmatpush.bf16.msrb.mxu3 %v1152_v60 }
 0x12a   :  { %804 = vmatpush.bf16.msrb.mxu3 %v1151_v4 }
 0x12b   :  { %v1164_v61 = vpop.eup %1163 }
 0x12c   :  { %v118_v2 = vmul.f32 %v1164_v61, %v1392_v52  ;;  %vm124_vm3 = vweird.f32 %v1164_v61 }
 0x12d   :  { %vm125_vm6 = vmor %vm123_vm5, %vm124_vm3 }
 0x12e   :  { %v119_v9 = vmul.f32 %v1164_v61, %v118_v2  ;;  %805 = vmatpush.bf16.msrb.mxu3 %v1150_v18 }
 0x130   :  { %v120_v16 = vmul.f32 0.5, %v119_v9 }
 0x132   :  { %v121_v23 = vsub.f32 1.5, %v120_v16  ;;  %806 = vmatpush.bf16.msrb.mxu3 %v1149_v28 }
 0x134   :  { %v122_v26 = vmul.f32 %v1164_v61, %v121_v23 }
 0x136   :  { %v126_v36 = vsel %vm125_vm6, %v1164_v61, %v122_v26 }
 0x137   :  { %v131_v37 = vperm.slane %v126_v36, %v70_v34 }
 0x139   :  { %v133_v40 = vmul.f32 %v131_v37, %v1255_v42  ;;  %v134_v41 = vmul.f32 %v131_v37, %v1257_v43 }
 0x13b   :  { %v161_v44 = vmul.f32 %v155_v38, %v133_v40  ;;  %v162_v45 = vmul.f32 %v158_v39, %v134_v41 }
 0x13d   :  { %165 = vst [vmem:[#allocation1] ss:$4 sm:$0xff] %v161_v44 }
 0x13e   :  { %167 = vst [vmem:[#allocation1 + $0x20] ss:$4 sm:$0xff] %v162_v45 }
 0x144   :  { %v168_v46 = vld.sshfl [vmem:[#allocation1] sm:$0xff pattern:$0x73625140]  ;;  %v169_v47 = vld.sshfl [vmem:[#allocation1 + $0x8] sm:$0xff pattern:$0x73625140] }
 0x145   :  { %v184_v32 = vpack.c.bf16 %v168_v46, %v168_v46  ;;  %v185_v34 = vpack.c.bf16 %v169_v47, %v169_v47  ;;  %v170_v48 = vld.sshfl [vmem:[#allocation1 + $0x10] sm:$0xff pattern:$0x73625140]  ;;  %v171_v49 = vld.sshfl [vmem:[#allocation1 + $0x18] sm:$0xff pattern:$0x73625140] }
 0x146   :  { %v186_v50 = vpack.c.bf16 %v170_v48, %v170_v48  ;;  %v187_v51 = vpack.c.bf16 %v171_v49, %v171_v49  ;;  %v172_v52 = vld.sshfl [vmem:[#allocation1 + $0x20] sm:$0xff pattern:$0x73625140]  ;;  %v173_v42 = vld.sshfl [vmem:[#allocation1 + $0x28] sm:$0xff pattern:$0x73625140] }
 0x147   :  { %716 = vmatmul.bf16.vlgmr.msra.gmra.mxu0 %v184_v32  ;;  %729 = vmatmul.bf16.vlgmr.msra.gmra.mxu1 %v185_v34  ;;  %v174_v53 = vld.sshfl [vmem:[#allocation1 + $0x30] sm:$0xff pattern:$0x73625140]  ;;  %v175_v43 = vld.sshfl [vmem:[#allocation1 + $0x38] sm:$0xff pattern:$0x73625140]  ;;  %v188_v54 = vpack.c.bf16 %v172_v52, %v172_v52  ;;  %v189_v55 = vpack.c.bf16 %v173_v42, %v173_v42 }
 0x148   :  { %742 = vmatmul.bf16.vlgmr.msra.gmra.mxu2 %v186_v50  ;;  %755 = vmatmul.bf16.vlgmr.msra.gmra.mxu3 %v187_v51  ;;  %v190_v33 = vpack.c.bf16 %v174_v53, %v174_v53  ;;  %v191_v56 = vpack.c.bf16 %v175_v43, %v175_v43 }
 0x157   :  { %768 = vmatmul.bf16.vlgmr.msrb.gmra.mxu0 %v188_v54  ;;  %781 = vmatmul.bf16.vlgmr.msrb.gmra.mxu1 %v189_v55 }
 0x158   :  { %794 = vmatmul.bf16.vlgmr.msrb.gmra.mxu2 %v190_v33  ;;  %807 = vmatmul.bf16.vlgmr.msrb.gmra.mxu3 %v191_v56 }
 0x1c4   :  { %v717_v57 = vpop.f32.mrf.mxu0  ;;  %v730_v58 = vpop.f32.mrf.mxu1 }
 0x1c5   :  { %v718_v60 = vadd.f32 %v1160_v59, %v717_v57 }
 0x1c7   :  { %v731_v1 = vadd.f32 %v730_v58, %v718_v60 }
 0x1cb   :  { %v743_v61 = vpop.f32.mrf.mxu2  ;;  %v756_v62 = vpop.f32.mrf.mxu3 }
 0x1cc   :  { %v719_v63 = vpop.f32.mrf.mxu0  ;;  %v732_v0 = vpop.f32.mrf.mxu1  ;;  %v744_v2 = vadd.f32 %v743_v61, %v731_v1 }
 0x1ce   :  { %v757_v5 = vadd.f32 %v756_v62, %v744_v2 }
 0x1d3   :  { %v745_v3 = vpop.f32.mrf.mxu2  ;;  %v758_v4 = vpop.f32.mrf.mxu3 }
 0x1d4   :  { %v769_v6 = vpop.f32.mrf.mxu0  ;;  %v782_v7 = vpop.f32.mrf.mxu1 }
 0x1d5   :  { %v770_v8 = vadd.f32 %v769_v6, %v757_v5 }
 0x1d7   :  { %v783_v9 = vadd.f32 %v782_v7, %v770_v8 }
 0x1db   :  { %v795_v10 = vpop.f32.mrf.mxu2  ;;  %v808_v11 = vpop.f32.mrf.mxu3 }
 0x1dc   :  { %v796_v12 = vadd.f32 %v795_v10, %v783_v9  ;;  %v771_v13 = vpop.f32.mrf.mxu0  ;;  %v784_v14 = vpop.f32.mrf.mxu1 }
 0x1de   :  { %v809_v15 = vadd.f32 %v808_v11, %v796_v12 }
 0x1e0   :  { %v813_v16 = vmin.f32 %v809_v15, 0.0  ;;  %vm812_vm8 = vcmp.gt.f32.partialorder %v809_v15, 0.0 }
 0x1e2   :  { %v814_v17 = vmul.f32 1.442695, %v813_v16 }
 0x1e3   :  { %v797_v18 = vpop.f32.mrf.mxu2  ;;  %v810_v19 = vpop.f32.mrf.mxu3 }
 0x1e4   :  { %1165 = vpow2.f32 %v814_v17 }
 0x1ea   :  { %v1166_v20 = vpop.eup %1165 }
 0x1eb   :  { %v1092_v21 = vadd.f32 -1.0, %v1166_v20 }
 0x1ed   :  { %v817_v22 = vsel %vm812_vm8, %v809_v15, %v1092_v21 }
 0x1ee   :  { %819 = vst.msk [vmem:[#allocation2] sm:$0x3] %vm818_vm7, %v817_v22 }
 0x1ef   :  { %830 = dma.vmem_to_hbm [thread:$0]  %s826_s14, 32, %s828_s17, [#allocation3]  }
 0x1f0   :  { %1191 = dma.done.wait [#allocation3], 32  }
 0x1f1   :  { %1192 = vsyncadd [#allocation3], 4294967264 }
 0x1f2   :  { %835 = vsyncpa [#allocation3], 1 }

</bundles_post_ra>
